<compile_context>
chip_gen: v5e
topology: v5e:2x2
jax: 0.10.0
libtpu: 0.0.40
codegen_flags: <defaults>
</compile_context>

<pallas_src>
import functools

import jax
import jax.numpy as jnp
from jax.experimental import pallas as pl
from jax.experimental.pallas import tpu as pltpu


# ----------------------------------------------------------------------------- helpers (traced inside kernels)

def _layernorm(x, gamma, beta, eps):
    mu = jnp.mean(x, axis=-1, keepdims=True)
    var = jnp.mean((x - mu) ** 2, axis=-1, keepdims=True)
    return (x - mu) * jax.lax.rsqrt(var + eps) * gamma + beta


def _gelu(x):
    # TODO(synk): nn.GELU() is the exact erf formulation; tanh approximation used here
    # (no reliable Mosaic erf lowering; max abs error ~1e-3).
    c = 0.7978845608028654  # sqrt(2/pi)
    return 0.5 * x * (1.0 + jnp.tanh(c * (x + 0.044715 * x * x * x)))


def _row_tile(n, target):
    """Largest tile <= target that divides n (multiple of 16 for layout friendliness)."""
    if n <= target:
        return n
    for cand in range(target, 15, -1):
        if n % cand == 0 and cand % 16 == 0:
            return cand
    return n


def _wspec(shape):
    nd = len(shape)
    return pl.BlockSpec(shape, lambda *_: (0,) * nd)


_CPARAMS_1D = pltpu.CompilerParams(dimension_semantics=("parallel",),
                                   vmem_limit_bytes=32 * 1024 * 1024)
_CPARAMS_2D = pltpu.CompilerParams(dimension_semantics=("parallel", "parallel"),
                                   vmem_limit_bytes=32 * 1024 * 1024)


# ----------------------------------------------------------------------------- Pallas kernels

def _patch_embed_kernel(p_ref, w_ref, b_ref, g_ref, bt_ref, pos_ref, o_ref, *, eps):
    # p_ref: (1, TP, Cin*ps*ps)  w_ref: (Cin*ps*ps, D) bf16  pos_ref: (1, TP, D)
    y = jnp.dot(p_ref[0].astype(jnp.bfloat16), w_ref[...],
                preferred_element_type=jnp.float32) + b_ref[...]
    y = _layernorm(y, g_ref[...], bt_ref[...], eps)
    o_ref[0] = y + pos_ref[0]


def _kv_kernel_nosr(x_ref, n1g_ref, n1b_ref, kvw_ref, kvb_ref, k_ref, v_ref, *, eps):
    # norm1 fused + KV projection; k/v emitted in bf16.
    D = k_ref.shape[-1]
    xn = _layernorm(x_ref[0], n1g_ref[...], n1b_ref[...], eps)
    kv = jnp.dot(xn.astype(jnp.bfloat16), kvw_ref[...],
                 preferred_element_type=jnp.float32) + kvb_ref[...]
    k_ref[0] = kv[:, :D].astype(k_ref.dtype)
    v_ref[0] = kv[:, D:].astype(v_ref.dtype)


def _kv_kernel_sr(srp_ref, n1g_ref, n1b_ref, srw_ref, srb_ref, srng_ref, srnb_ref,
                  kvw_ref, kvb_ref, k_ref, v_ref, *, eps1, eps_sr):
    # srp_ref: (1, sr*sr, TKV, D) raw tokens regrouped per sr-patch tap (bf16 in HBM).
    # norm1 per sub-token, spatial-reduction conv as sum of per-tap (D,D) matmuls, sr-LayerNorm,
    # fused KV projection.  k/v emitted in bf16.
    D = k_ref.shape[-1]
    sr2 = srw_ref.shape[0]
    acc = None
    for j in range(sr2):
        pj = _layernorm(srp_ref[0, j].astype(jnp.float32), n1g_ref[...], n1b_ref[...], eps1)
        contrib = jnp.dot(pj.astype(jnp.bfloat16), srw_ref[j],
                          preferred_element_type=jnp.float32)
        acc = contrib if acc is None else acc + contrib
    xs = acc + srb_ref[...]
    xs = _layernorm(xs, srng_ref[...], srnb_ref[...], eps_sr)
    kv = jnp.dot(xs.astype(jnp.bfloat16), kvw_ref[...],
                 preferred_element_type=jnp.float32) + kvb_ref[...]
    k_ref[0] = kv[:, :D].astype(k_ref.dtype)
    v_ref[0] = kv[:, D:].astype(v_ref.dtype)


def _attn_kernel(x_ref, k_ref, v_ref, n1g_ref, n1b_ref, qw_ref, qb_ref, pw_ref, pb_ref,
                 o_ref, oh_ref, *, num_heads, scale, eps):
    # x_ref: (1, TQ, D) residual/query tokens; k_ref/v_ref: (1, Ns, D) bf16 resident per batch.
    x = x_ref[0]
    xn = _layernorm(x, n1g_ref[...], n1b_ref[...], eps)
    q = jnp.dot(xn.astype(jnp.bfloat16), qw_ref[...],
                preferred_element_type=jnp.float32) + qb_ref[...]
    q = q * scale                               # fold scale into q (TQ x D, not TQ x Ns)
    k = k_ref[0]
    v = v_ref[0]
    D = q.shape[-1]
    hd = D // num_heads
    for h in range(num_heads):
        qh = q[:, h * hd:(h + 1) * hd].astype(jnp.bfloat16)
        kh = k[:, h * hd:(h + 1) * hd]
        vh = v[:, h * hd:(h + 1) * hd]
        s = jax.lax.dot_general(qh, kh, (((1,), (1,)), ((), ())),
                                preferred_element_type=jnp.float32)          # (TQ, Ns)
        s = s - jnp.max(s, axis=-1, keepdims=True)
        p = jnp.exp(s)
        p = p * pl.reciprocal(jnp.sum(p, axis=-1, keepdims=True), approx=True)
        oh_ref[:, h * hd:(h + 1) * hd] = jnp.dot(p.astype(jnp.bfloat16), vh,
                                                 preferred_element_type=jnp.float32)
    o = jnp.dot(oh_ref[...].astype(jnp.bfloat16), pw_ref[...],
                preferred_element_type=jnp.float32) + pb_ref[...]
    o_ref[0] = x + o


def _mlp_kernel(x_ref, g_ref, b_ref, w1_ref, b1_ref, w2_ref, b2_ref, o_ref, *, eps):
    x = x_ref[...]
    xn = _layernorm(x, g_ref[...], b_ref[...], eps)
    h = jnp.dot(xn.astype(jnp.bfloat16), w1_ref[...],
                preferred_element_type=jnp.float32) + b1_ref[...]
    h = _gelu(h)
    y = jnp.dot(h.astype(jnp.bfloat16), w2_ref[...],
                preferred_element_type=jnp.float32) + b2_ref[...]
    o_ref[...] = x + y


# ----------------------------------------------------------------------------- wrappers

def _block_forward(x, p, H, W, num_heads, sr_ratio):
    B, N, D = x.shape
    hd = D // num_heads
    scale = hd ** -0.5
    kv_dtype = jnp.bfloat16

    # ---- KV preparation (norm1 fused; SR conv as per-tap matmuls when sr_ratio > 1) ----
    if sr_ratio > 1:
        Hs, Ws = H // sr_ratio, W // sr_ratio
        Ns = Hs * Ws
        sr2 = sr_ratio * sr_ratio
        # pure data reshuffle in glue: group the sr*sr source tokens of every reduced token
        # per tap -> (B, sr*sr, Ns, D); kept in bf16 to halve the HBM intermediate.
        srp = x.reshape(B, Hs, sr_ratio, Ws, sr_ratio, D).transpose(0, 2, 4, 1, 3, 5)
        srp = srp.reshape(B, sr2, Ns, D).astype(jnp.bfloat16)
        tkv = _row_tile(Ns, 512)
        k, v = pl.pallas_call(
            functools.partial(_kv_kernel_sr, eps1=1e-6, eps_sr=1e-5),
            grid=(B, Ns // tkv),
            in_specs=[
                pl.BlockSpec((1, sr2, tkv, D), lambda b, i: (b, 0, i, 0)),
                _wspec((1, D)), _wspec((1, D)),          # norm1
                _wspec((sr2, D, D)), _wspec((1, D)),     # sr conv (per-tap weights) + bias
                _wspec((1, D)), _wspec((1, D)),          # sr LayerNorm
                _wspec((D, 2 * D)), _wspec((1, 2 * D)),  # kv projection
            ],
            out_specs=[pl.BlockSpec((1, tkv, D), lambda b, i: (b, i, 0)),
                       pl.BlockSpec((1, tkv, D), lambda b, i: (b, i, 0))],
            out_shape=[jax.ShapeDtypeStruct((B, Ns, D), kv_dtype),
                       jax.ShapeDtypeStruct((B, Ns, D), kv_dtype)],
            compiler_params=_CPARAMS_2D,
        )(srp, p['n1_g'], p['n1_b'], p['sr_w'], p['sr_b'],
          p['srn_g'], p['srn_b'], p['kv_w'], p['kv_b'])
    else:
        Ns = N
        tkv = _row_tile(N, 512)
        k, v = pl.pallas_call(
            functools.partial(_kv_kernel_nosr, eps=1e-6),
            grid=(B, N // tkv),
            in_specs=[
                pl.BlockSpec((1, tkv, D), lambda b, i: (b, i, 0)),
                _wspec((1, D)), _wspec((1, D)),
                _wspec((D, 2 * D)), _wspec((1, 2 * D)),
            ],
            out_specs=[pl.BlockSpec((1, tkv, D), lambda b, i: (b, i, 0)),
                       pl.BlockSpec((1, tkv, D), lambda b, i: (b, i, 0))],
            out_shape=[jax.ShapeDtypeStruct((B, N, D), kv_dtype),
                       jax.ShapeDtypeStruct((B, N, D), kv_dtype)],
            compiler_params=_CPARAMS_2D,
        )(x, p['n1_g'], p['n1_b'], p['kv_w'], p['kv_b'])

    # ---- attention (norm1 fused, query-tiled, K/V resident per batch, residual aliased) ----
    tq = _row_tile(N, 512)
    x = pl.pallas_call(
        functools.partial(_attn_kernel, num_heads=num_heads, scale=scale, eps=1e-6),
        grid=(B, N // tq),
        in_specs=[
            pl.BlockSpec((1, tq, D), lambda b, i: (b, i, 0)),   # x (residual + query source)
            pl.BlockSpec((1, Ns, D), lambda b, i: (b, 0, 0)),   # k (resident across query tiles)
            pl.BlockSpec((1, Ns, D), lambda b, i: (b, 0, 0)),   # v
            _wspec((1, D)), _wspec((1, D)),                     # norm1
            _wspec((D, D)), _wspec((1, D)),                     # q projection
            _wspec((D, D)), _wspec((1, D)),                     # output projection
        ],
        out_specs=pl.BlockSpec((1, tq, D), lambda b, i: (b, i, 0)),
        out_shape=jax.ShapeDtypeStruct((B, N, D), jnp.float32),
        scratch_shapes=[pltpu.VMEM((tq, D), jnp.float32)],      # per-head output slab
        input_output_aliases={0: 0},
        compiler_params=_CPARAMS_2D,
    )(x, k, v, p['n1_g'], p['n1_b'], p['q_w'], p['q_b'], p['proj_w'], p['proj_b'])

    # ---- MLP branch (norm2 + fc1 + GELU + fc2 + residual), row-tiled over all tokens ----
    Dh = p['fc1_w'].shape[1]
    tm = _row_tile(B * N, 1024)
    y = pl.pallas_call(
        functools.partial(_mlp_kernel, eps=1e-6),
        grid=((B * N) // tm,),
        in_specs=[
            pl.BlockSpec((tm, D), lambda i: (i, 0)),
            _wspec((1, D)), _wspec((1, D)),
            _wspec((D, Dh)), _wspec((1, Dh)),
            _wspec((Dh, D)), _wspec((1, D)),
        ],
        out_specs=pl.BlockSpec((tm, D), lambda i: (i, 0)),
        out_shape=jax.ShapeDtypeStruct((B * N, D), jnp.float32),
        input_output_aliases={0: 0},
        compiler_params=_CPARAMS_1D,
    )(x.reshape(B * N, D), p['n2_g'], p['n2_b'],
      p['fc1_w'], p['fc1_b'], p['fc2_w'], p['fc2_b'])
    return y.reshape(B, N, D)


def _get_pos_embed(pos_embed, stage_H, stage_W, H, W, num_patches_stage1):
    # Mirrors PVT_Feature._get_pos_embed (bilinear resize when grid mismatches stage-1 count).
    if H * W == num_patches_stage1:
        return pos_embed
    D = pos_embed.shape[-1]
    pe = pos_embed.reshape(1, stage_H, stage_W, D).transpose(0, 3, 1, 2)
    pe = jax.image.resize(pe, (1, D, H, W), method='bilinear')
    return pe.reshape(1, D, H * W).transpose(0, 2, 1)


def pvt_feature_forward(params, cfg, img_sizes, x, index, patch_size=2):
    """Equivalent of PVT_Feature.forward(x, index); x is NCHW float32."""
    dims = cfg['EMBEDED_DIMS']
    D = dims[index]
    B, C, Himg, Wimg = x.shape
    ps = patch_size
    H, W = Himg // ps, Wimg // ps
    N = H * W
    P = C * ps * ps

    # --- PatchEmbed: non-overlapping conv (k=s=ps) as unfold + Pallas matmul/LN/pos-add ---
    patches = x.reshape(B, C, H, ps, W, ps).transpose(0, 2, 4, 1, 3, 5)
    patches = patches.reshape(B, N, P)                         # (c, kh, kw) patch order

    stage_H = img_sizes[index] // ps
    num_patches_stage1 = (img_sizes[0] // ps) ** 2
    pos = _get_pos_embed(params['pos_embed'][index], stage_H, stage_H, H, W, num_patches_stage1)

    pe = params['patch_embed'][index]
    tp = _row_tile(N, 512)
    x_tok = pl.pallas_call(
        functools.partial(_patch_embed_kernel, eps=1e-5),
        grid=(B, N // tp),
        in_specs=[
            pl.BlockSpec((1, tp, P), lambda b, i: (b, i, 0)),
            _wspec((P, D)), _wspec((1, D)),
            _wspec((1, D)), _wspec((1, D)),
            pl.BlockSpec((1, tp, D), lambda b, i: (0, i, 0)),   # pos broadcast over batch
        ],
        out_specs=pl.BlockSpec((1, tp, D), lambda b, i: (b, i, 0)),
        out_shape=jax.ShapeDtypeStruct((B, N, D), jnp.float32),
        compiler_params=_CPARAMS_2D,
    )(patches, pe['w'], pe['b'], pe['g'], pe['beta'], pos)

    # --- transformer blocks ---
    num_heads = cfg['NUM_HEADS'][index]
    sr_ratio = cfg['SR_RATIOS'][index]
    for blk in params['blocks'][index]:
        x_tok = _block_forward(x_tok, blk, H, W, num_heads, sr_ratio)

    return x_tok, (H, W)


# ----------------------------------------------------------------------------- deterministic parameter init

def init_params(key, cfg, img_sizes, patch_size=2, in_channels=3):
    dims = cfg['EMBEDED_DIMS']
    keys = iter(jax.random.split(key, 1024))
    bf16 = jnp.bfloat16

    def nrm(shape, scale=0.02):
        return (scale * jax.random.normal(next(keys), shape)).astype(jnp.float32)

    params = {'patch_embed': [], 'pos_embed': [], 'blocks': []}
    cin = in_channels
    for s in range(4):
        D = dims[s]
        ps = patch_size
        Hs = img_sizes[s] // ps
        conv_w = nrm((D, cin, ps, ps))                            # torch Conv2d weight
        params['patch_embed'].append({
            'w': conv_w.reshape(D, cin * ps * ps).T.astype(bf16),  # (Cin*ps*ps, D), (c,kh,kw) order
            'b': nrm((1, D)),
            'g': jnp.ones((1, D), jnp.float32),
            'beta': jnp.zeros((1, D), jnp.float32),
        })
        params['pos_embed'].append(nrm((1, Hs * Hs, D)))
        hidden = D * cfg['MLP_RATIO'][s]
        sr = cfg['SR_RATIOS'][s]
        blocks = []
        for _ in range(cfg['NUM_BLOCKS'][s]):
            blk = {
                'n1_g': jnp.ones((1, D), jnp.float32), 'n1_b': jnp.zeros((1, D), jnp.float32),
                'q_w': nrm((D, D)).astype(bf16), 'q_b': nrm((1, D)),
                'kv_w': nrm((D, 2 * D)).astype(bf16), 'kv_b': nrm((1, 2 * D)),
                'proj_w': nrm((D, D)).astype(bf16), 'proj_b': nrm((1, D)),
                'n2_g': jnp.ones((1, D), jnp.float32), 'n2_b': jnp.zeros((1, D), jnp.float32),
                'fc1_w': nrm((D, hidden)).astype(bf16), 'fc1_b': nrm((1, hidden)),
                'fc2_w': nrm((hidden, D)).astype(bf16), 'fc2_b': nrm((1, D)),
            }
            if sr > 1:
                sr_conv_w = nrm((D, D, sr, sr))                   # torch sr-Conv2d weight
                # per-tap layout: (kh*sr+kw, Cin, Cout) matching the (B, sr*sr, Ns, D) unfold
                blk['sr_w'] = sr_conv_w.transpose(2, 3, 1, 0).reshape(sr * sr, D, D).astype(bf16)
                blk['sr_b'] = nrm((1, D))
                blk['srn_g'] = jnp.ones((1, D), jnp.float32)
                blk['srn_b'] = jnp.zeros((1, D), jnp.float32)
            blocks.append(blk)
        params['blocks'].append(blocks)
        cin = D
    return params


# ----------------------------------------------------------------------------- main

if __name__ == "__main__":
    CONFIG = {'PVT-FEATURES': {
        'EMBEDED_DIMS': [32, 64, 128, 256],
        'NUM_BLOCKS':   [2, 2, 2, 2],
        'NUM_HEADS':    [1, 2, 4, 8],
        'MLP_RATIO':    [4, 4, 4, 4],
        'PROJ_DROP':    [0.0, 0.0, 0.0, 0.0],
        'SR_RATIOS':    [2, 2, 1, 1],
    }}
    cfg = CONFIG['PVT-FEATURES']
    # Small synthetic image sizes (PyTorch module hardcodes 256/128/64/32; scaled down for demo).
    IMG_SIZES = [16, 8, 4, 2]

    key = jax.random.PRNGKey(0)
    pkey, xkey = jax.random.split(key)
    params = init_params(pkey, cfg, IMG_SIZES)

    x = jax.random.normal(xkey, (2, 3, 16, 16), jnp.float32)   # NCHW, stage index 0

    fwd = jax.jit(lambda p, xx: pvt_feature_forward(p, cfg, IMG_SIZES, xx, index=0))
    out, (H, W) = fwd(params, x)
    out = jax.block_until_ready(out)
    assert out.shape == (2, int(H) * int(W), cfg['EMBEDED_DIMS'][0])
    print("KERNEL_OK")
</pallas_src>

<mosaic_0001>
module attributes {stable_mosaic.version = 11 : i64} {
  func.func @_attn_kernel(%arg0: i32, %arg1: i32, %arg2: memref<1x64x32xf32, #tpu.memory_space<vmem>>, %arg3: memref<1x16x32xbf16, #tpu.memory_space<vmem>>, %arg4: memref<1x16x32xbf16, #tpu.memory_space<vmem>>, %arg5: memref<1x32xf32, #tpu.memory_space<vmem>>, %arg6: memref<1x32xf32, #tpu.memory_space<vmem>>, %arg7: memref<32x32xbf16, #tpu.memory_space<vmem>>, %arg8: memref<1x32xf32, #tpu.memory_space<vmem>>, %arg9: memref<32x32xbf16, #tpu.memory_space<vmem>>, %arg10: memref<1x32xf32, #tpu.memory_space<vmem>>, %arg11: memref<1x64x32xf32, #tpu.memory_space<vmem>>, %arg12: memref<64x32xf32, #tpu.memory_space<vmem>>) attributes {dimension_semantics = [#tpu.dimension_semantics<parallel>, #tpu.dimension_semantics<parallel>], iteration_bounds = array<i64: 2, 1>, scalar_prefetch = 0 : i64, scratch_operands = 1 : i64, tpu.core_type = #tpu.core_type<tc>, window_params = [{transform_indices = @transform_0, window_bounds = array<i64: 1, 64, 32>}, {transform_indices = @transform_1, window_bounds = array<i64: 1, 16, 32>}, {transform_indices = @transform_2, window_bounds = array<i64: 1, 16, 32>}, {pipeline_mode = #tpu.pipeline_mode<synchronous>, transform_indices = @transform_3, window_bounds = array<i64: 1, 32>}, {pipeline_mode = #tpu.pipeline_mode<synchronous>, transform_indices = @transform_4, window_bounds = array<i64: 1, 32>}, {pipeline_mode = #tpu.pipeline_mode<synchronous>, transform_indices = @transform_5, window_bounds = array<i64: 32, 32>}, {pipeline_mode = #tpu.pipeline_mode<synchronous>, transform_indices = @transform_6, window_bounds = array<i64: 1, 32>}, {pipeline_mode = #tpu.pipeline_mode<synchronous>, transform_indices = @transform_7, window_bounds = array<i64: 32, 32>}, {pipeline_mode = #tpu.pipeline_mode<synchronous>, transform_indices = @transform_8, window_bounds = array<i64: 1, 32>}, {transform_indices = @transform_9, window_bounds = array<i64: 1, 64, 32>}]} {
    %c0 = arith.constant 0 : index
    %c0_0 = arith.constant 0 : index
    %c0_1 = arith.constant 0 : index
    %0 = vector.load %arg2[%c0, %c0_0, %c0_1] : memref<1x64x32xf32, #tpu.memory_space<vmem>>, vector<1x64x32xf32>
    %1 = vector.shape_cast %0 : vector<1x64x32xf32> to vector<64x32xf32>
    %c0_2 = arith.constant 0 : index
    %c0_3 = arith.constant 0 : index
    %2 = vector.load %arg5[%c0_2, %c0_3] : memref<1x32xf32, #tpu.memory_space<vmem>>, vector<1x32xf32>
    %c0_4 = arith.constant 0 : index
    %c0_5 = arith.constant 0 : index
    %3 = vector.load %arg6[%c0_4, %c0_5] : memref<1x32xf32, #tpu.memory_space<vmem>>, vector<1x32xf32>
    %cst = arith.constant dense<0.000000e+00> : vector<64xf32>
    %4 = vector.multi_reduction <add>, %1, %cst [1] : vector<64x32xf32> to vector<64xf32>
    %5 = vector.shape_cast %4 : vector<64xf32> to vector<64x1xf32>
    %cst_6 = arith.constant 3.200000e+01 : f32
    %6 = vector.broadcast %cst_6 : f32 to vector<64x1xf32>
    %7 = arith.divf %5, %6 : vector<64x1xf32>
    %8 = vector.broadcast %7 : vector<64x1xf32> to vector<64x32xf32>
    %9 = arith.subf %1, %8 : vector<64x32xf32>
    %10 = arith.mulf %9, %9 : vector<64x32xf32>
    %cst_7 = arith.constant dense<0.000000e+00> : vector<64xf32>
    %11 = vector.multi_reduction <add>, %10, %cst_7 [1] : vector<64x32xf32> to vector<64xf32>
    %12 = vector.shape_cast %11 : vector<64xf32> to vector<64x1xf32>
    %cst_8 = arith.constant 3.200000e+01 : f32
    %13 = vector.broadcast %cst_8 : f32 to vector<64x1xf32>
    %14 = arith.divf %12, %13 : vector<64x1xf32>
    %15 = vector.broadcast %7 : vector<64x1xf32> to vector<64x32xf32>
    %16 = arith.subf %1, %15 : vector<64x32xf32>
    %cst_9 = arith.constant 9.99999997E-7 : f32
    %17 = vector.broadcast %cst_9 : f32 to vector<64x1xf32>
    %18 = arith.addf %14, %17 : vector<64x1xf32>
    %19 = math.rsqrt %18 : vector<64x1xf32>
    %20 = vector.broadcast %19 : vector<64x1xf32> to vector<64x32xf32>
    %21 = arith.mulf %16, %20 : vector<64x32xf32>
    %22 = vector.broadcast %2 : vector<1x32xf32> to vector<64x32xf32>
    %23 = arith.mulf %21, %22 : vector<64x32xf32>
    %24 = vector.broadcast %3 : vector<1x32xf32> to vector<64x32xf32>
    %25 = arith.addf %23, %24 : vector<64x32xf32>
    %26 = arith.truncf %25 : vector<64x32xf32> to vector<64x32xbf16>
    %c0_10 = arith.constant 0 : index
    %c0_11 = arith.constant 0 : index
    %27 = vector.load %arg7[%c0_10, %c0_11] : memref<32x32xbf16, #tpu.memory_space<vmem>>, vector<32x32xbf16>
    %cst_12 = arith.constant dense<0.000000e+00> : vector<64x32xf32>
    %28 = tpu.matmul %26, %27, %cst_12 {dimension_numbers = #tpu.dot_dimension_numbers<[1], [0], [0], [1], [0, 0, 1, 1], [], []>} : vector<64x32xbf16>, vector<32x32xbf16>, vector<64x32xf32> -> vector<64x32xf32>
    %c0_13 = arith.constant 0 : index
    %c0_14 = arith.constant 0 : index
    %29 = vector.load %arg8[%c0_13, %c0_14] : memref<1x32xf32, #tpu.memory_space<vmem>>, vector<1x32xf32>
    %30 = vector.broadcast %29 : vector<1x32xf32> to vector<64x32xf32>
    %31 = arith.addf %28, %30 : vector<64x32xf32>
    %cst_15 = arith.constant 0.176776692 : f32
    %32 = vector.broadcast %cst_15 : f32 to vector<64x32xf32>
    %33 = arith.mulf %31, %32 : vector<64x32xf32>
    %c0_16 = arith.constant 0 : index
    %c0_17 = arith.constant 0 : index
    %c0_18 = arith.constant 0 : index
    %34 = vector.load %arg3[%c0_16, %c0_17, %c0_18] : memref<1x16x32xbf16, #tpu.memory_space<vmem>>, vector<1x16x32xbf16>
    %35 = vector.shape_cast %34 : vector<1x16x32xbf16> to vector<16x32xbf16>
    %c0_19 = arith.constant 0 : index
    %c0_20 = arith.constant 0 : index
    %c0_21 = arith.constant 0 : index
    %36 = vector.load %arg4[%c0_19, %c0_20, %c0_21] : memref<1x16x32xbf16, #tpu.memory_space<vmem>>, vector<1x16x32xbf16>
    %37 = vector.shape_cast %36 : vector<1x16x32xbf16> to vector<16x32xbf16>
    %38 = arith.truncf %33 : vector<64x32xf32> to vector<64x32xbf16>
    %cst_22 = arith.constant dense<0.000000e+00> : vector<64x16xf32>
    %39 = tpu.matmul %38, %35, %cst_22 {dimension_numbers = #tpu.dot_dimension_numbers<[1], [1], [0], [0], [0, 0, 1, 0], [], []>} : vector<64x32xbf16>, vector<16x32xbf16>, vector<64x16xf32> -> vector<64x16xf32>
    %cst_23 = arith.constant dense<0xFF800000> : vector<64xf32>
    %40 = vector.multi_reduction <maximumf>, %39, %cst_23 [1] : vector<64x16xf32> to vector<64xf32>
    %41 = vector.shape_cast %40 : vector<64xf32> to vector<64x1xf32>
    %42 = vector.broadcast %41 : vector<64x1xf32> to vector<64x16xf32>
    %43 = arith.subf %39, %42 : vector<64x16xf32>
    %44 = math.exp %43 : vector<64x16xf32>
    %cst_24 = arith.constant dense<0.000000e+00> : vector<64xf32>
    %45 = vector.multi_reduction <add>, %44, %cst_24 [1] : vector<64x16xf32> to vector<64xf32>
    %46 = vector.shape_cast %45 : vector<64xf32> to vector<64x1xf32>
    %47 = tpu.reciprocal %46 {approx = true} : vector<64x1xf32> -> vector<64x1xf32>
    %48 = vector.broadcast %47 : vector<64x1xf32> to vector<64x16xf32>
    %49 = arith.mulf %44, %48 : vector<64x16xf32>
    %50 = arith.truncf %49 : vector<64x16xf32> to vector<64x16xbf16>
    %cst_25 = arith.constant dense<0.000000e+00> : vector<64x32xf32>
    %51 = tpu.matmul %50, %37, %cst_25 {dimension_numbers = #tpu.dot_dimension_numbers<[1], [0], [0], [1], [0, 0, 1, 1], [], []>} : vector<64x16xbf16>, vector<16x32xbf16>, vector<64x32xf32> -> vector<64x32xf32>
    %c0_26 = arith.constant 0 : index
    %c0_27 = arith.constant 0 : index
    %52 = vector.load %arg12[%c0_26, %c0_27] : memref<64x32xf32, #tpu.memory_space<vmem>>, vector<64x32xf32>
    tpu.vector_store %arg12[%c0_26, %c0_27], %51 {strides = array<i32>} : memref<64x32xf32, #tpu.memory_space<vmem>>, vector<64x32xf32>,
    %c0_28 = arith.constant 0 : index
    %c0_29 = arith.constant 0 : index
    %53 = vector.load %arg12[%c0_28, %c0_29] : memref<64x32xf32, #tpu.memory_space<vmem>>, vector<64x32xf32>
    %54 = arith.truncf %53 : vector<64x32xf32> to vector<64x32xbf16>
    %c0_30 = arith.constant 0 : index
    %c0_31 = arith.constant 0 : index
    %55 = vector.load %arg9[%c0_30, %c0_31] : memref<32x32xbf16, #tpu.memory_space<vmem>>, vector<32x32xbf16>
    %cst_32 = arith.constant dense<0.000000e+00> : vector<64x32xf32>
    %56 = tpu.matmul %54, %55, %cst_32 {dimension_numbers = #tpu.dot_dimension_numbers<[1], [0], [0], [1], [0, 0, 1, 1], [], []>} : vector<64x32xbf16>, vector<32x32xbf16>, vector<64x32xf32> -> vector<64x32xf32>
    %c0_33 = arith.constant 0 : index
    %c0_34 = arith.constant 0 : index
    %57 = vector.load %arg10[%c0_33, %c0_34] : memref<1x32xf32, #tpu.memory_space<vmem>>, vector<1x32xf32>
    %58 = vector.broadcast %57 : vector<1x32xf32> to vector<64x32xf32>
    %59 = arith.addf %56, %58 : vector<64x32xf32>
    %60 = arith.addf %1, %59 : vector<64x32xf32>
    %c0_35 = arith.constant 0 : index
    %c0_36 = arith.constant 0 : index
    %c0_37 = arith.constant 0 : index
    %61 = vector.load %arg11[%c0_35, %c0_36, %c0_37] : memref<1x64x32xf32, #tpu.memory_space<vmem>>, vector<1x64x32xf32>
    %62 = vector.shape_cast %61 : vector<1x64x32xf32> to vector<64x32xf32>
    %63 = vector.shape_cast %60 : vector<64x32xf32> to vector<1x64x32xf32>
    tpu.vector_store %arg11[%c0_35, %c0_36, %c0_37], %63 {strides = array<i32>} : memref<1x64x32xf32, #tpu.memory_space<vmem>>, vector<1x64x32xf32>,
    return
  }
  func.func @transform_0(%arg0: i32, %arg1: i32) -> (i32, i32, i32) {
    %c0_i32 = arith.constant 0 : i32
    %c0_i32_0 = arith.constant 0 : i32
    return %arg0, %arg1, %c0_i32 : i32, i32, i32
  }
  func.func @transform_1(%arg0: i32, %arg1: i32) -> (i32, i32, i32) {
    %c0_i32 = arith.constant 0 : i32
    %c0_i32_0 = arith.constant 0 : i32
    %c0_i32_1 = arith.constant 0 : i32
    return %arg0, %c0_i32, %c0_i32_0 : i32, i32, i32
  }
  func.func @transform_2(%arg0: i32, %arg1: i32) -> (i32, i32, i32) {
    %c0_i32 = arith.constant 0 : i32
    %c0_i32_0 = arith.constant 0 : i32
    %c0_i32_1 = arith.constant 0 : i32
    return %arg0, %c0_i32, %c0_i32_0 : i32, i32, i32
  }
  func.func @transform_3(%arg0: i32, %arg1: i32) -> (i32, i32) {
    %c0_i32 = arith.constant 0 : i32
    %c0_i32_0 = arith.constant 0 : i32
    %c0_i32_1 = arith.constant 0 : i32
    return %c0_i32, %c0_i32_0 : i32, i32
  }
  func.func @transform_4(%arg0: i32, %arg1: i32) -> (i32, i32) {
    %c0_i32 = arith.constant 0 : i32
    %c0_i32_0 = arith.constant 0 : i32
    %c0_i32_1 = arith.constant 0 : i32
    return %c0_i32, %c0_i32_0 : i32, i32
  }
  func.func @transform_5(%arg0: i32, %arg1: i32) -> (i32, i32) {
    %c0_i32 = arith.constant 0 : i32
    %c0_i32_0 = arith.constant 0 : i32
    %c0_i32_1 = arith.constant 0 : i32
    return %c0_i32, %c0_i32_0 : i32, i32
  }
  func.func @transform_6(%arg0: i32, %arg1: i32) -> (i32, i32) {
    %c0_i32 = arith.constant 0 : i32
    %c0_i32_0 = arith.constant 0 : i32
    %c0_i32_1 = arith.constant 0 : i32
    return %c0_i32, %c0_i32_0 : i32, i32
  }
  func.func @transform_7(%arg0: i32, %arg1: i32) -> (i32, i32) {
    %c0_i32 = arith.constant 0 : i32
    %c0_i32_0 = arith.constant 0 : i32
    %c0_i32_1 = arith.constant 0 : i32
    return %c0_i32, %c0_i32_0 : i32, i32
  }
  func.func @transform_8(%arg0: i32, %arg1: i32) -> (i32, i32) {
    %c0_i32 = arith.constant 0 : i32
    %c0_i32_0 = arith.constant 0 : i32
    %c0_i32_1 = arith.constant 0 : i32
    return %c0_i32, %c0_i32_0 : i32, i32
  }
  func.func @transform_9(%arg0: i32, %arg1: i32) -> (i32, i32, i32) {
    %c0_i32 = arith.constant 0 : i32
    %c0_i32_0 = arith.constant 0 : i32
    return %arg0, %arg1, %c0_i32 : i32, i32, i32
  }
}

module attributes {stable_mosaic.version = 11 : i64} {
  func.func @_patch_embed_kernel(%arg0: i32, %arg1: i32, %arg2: memref<1x64x12xf32, #tpu.memory_space<vmem>>, %arg3: memref<12x32xbf16, #tpu.memory_space<vmem>>, %arg4: memref<1x32xf32, #tpu.memory_space<vmem>>, %arg5: memref<1x32xf32, #tpu.memory_space<vmem>>, %arg6: memref<1x32xf32, #tpu.memory_space<vmem>>, %arg7: memref<1x64x32xf32, #tpu.memory_space<vmem>>, %arg8: memref<1x64x32xf32, #tpu.memory_space<vmem>>) attributes {dimension_semantics = [#tpu.dimension_semantics<parallel>, #tpu.dimension_semantics<parallel>], iteration_bounds = array<i64: 2, 1>, scalar_prefetch = 0 : i64, scratch_operands = 0 : i64, tpu.core_type = #tpu.core_type<tc>, window_params = [{transform_indices = @transform_0, window_bounds = array<i64: 1, 64, 12>}, {pipeline_mode = #tpu.pipeline_mode<synchronous>, transform_indices = @transform_1, window_bounds = array<i64: 12, 32>}, {pipeline_mode = #tpu.pipeline_mode<synchronous>, transform_indices = @transform_2, window_bounds = array<i64: 1, 32>}, {pipeline_mode = #tpu.pipeline_mode<synchronous>, transform_indices = @transform_3, window_bounds = array<i64: 1, 32>}, {pipeline_mode = #tpu.pipeline_mode<synchronous>, transform_indices = @transform_4, window_bounds = array<i64: 1, 32>}, {transform_indices = @transform_5, window_bounds = array<i64: 1, 64, 32>}, {transform_indices = @transform_6, window_bounds = array<i64: 1, 64, 32>}]} {
    %c0 = arith.constant 0 : index
    %c0_0 = arith.constant 0 : index
    %c0_1 = arith.constant 0 : index
    %0 = vector.load %arg2[%c0, %c0_0, %c0_1] : memref<1x64x12xf32, #tpu.memory_space<vmem>>, vector<1x64x12xf32>
    %1 = vector.shape_cast %0 : vector<1x64x12xf32> to vector<64x12xf32>
    %2 = arith.truncf %1 : vector<64x12xf32> to vector<64x12xbf16>
    %c0_2 = arith.constant 0 : index
    %c0_3 = arith.constant 0 : index
    %3 = vector.load %arg3[%c0_2, %c0_3] : memref<12x32xbf16, #tpu.memory_space<vmem>>, vector<12x32xbf16>
    %cst = arith.constant dense<0.000000e+00> : vector<64x32xf32>
    %4 = tpu.matmul %2, %3, %cst {dimension_numbers = #tpu.dot_dimension_numbers<[1], [0], [0], [1], [0, 0, 1, 1], [], []>} : vector<64x12xbf16>, vector<12x32xbf16>, vector<64x32xf32> -> vector<64x32xf32>
    %c0_4 = arith.constant 0 : index
    %c0_5 = arith.constant 0 : index
    %5 = vector.load %arg4[%c0_4, %c0_5] : memref<1x32xf32, #tpu.memory_space<vmem>>, vector<1x32xf32>
    %6 = vector.broadcast %5 : vector<1x32xf32> to vector<64x32xf32>
    %7 = arith.addf %4, %6 : vector<64x32xf32>
    %c0_6 = arith.constant 0 : index
    %c0_7 = arith.constant 0 : index
    %8 = vector.load %arg5[%c0_6, %c0_7] : memref<1x32xf32, #tpu.memory_space<vmem>>, vector<1x32xf32>
    %c0_8 = arith.constant 0 : index
    %c0_9 = arith.constant 0 : index
    %9 = vector.load %arg6[%c0_8, %c0_9] : memref<1x32xf32, #tpu.memory_space<vmem>>, vector<1x32xf32>
    %cst_10 = arith.constant dense<0.000000e+00> : vector<64xf32>
    %10 = vector.multi_reduction <add>, %7, %cst_10 [1] : vector<64x32xf32> to vector<64xf32>
    %11 = vector.shape_cast %10 : vector<64xf32> to vector<64x1xf32>
    %cst_11 = arith.constant 3.200000e+01 : f32
    %12 = vector.broadcast %cst_11 : f32 to vector<64x1xf32>
    %13 = arith.divf %11, %12 : vector<64x1xf32>
    %14 = vector.broadcast %13 : vector<64x1xf32> to vector<64x32xf32>
    %15 = arith.subf %7, %14 : vector<64x32xf32>
    %16 = arith.mulf %15, %15 : vector<64x32xf32>
    %cst_12 = arith.constant dense<0.000000e+00> : vector<64xf32>
    %17 = vector.multi_reduction <add>, %16, %cst_12 [1] : vector<64x32xf32> to vector<64xf32>
    %18 = vector.shape_cast %17 : vector<64xf32> to vector<64x1xf32>
    %cst_13 = arith.constant 3.200000e+01 : f32
    %19 = vector.broadcast %cst_13 : f32 to vector<64x1xf32>
    %20 = arith.divf %18, %19 : vector<64x1xf32>
    %21 = vector.broadcast %13 : vector<64x1xf32> to vector<64x32xf32>
    %22 = arith.subf %7, %21 : vector<64x32xf32>
    %cst_14 = arith.constant 9.99999974E-6 : f32
    %23 = vector.broadcast %cst_14 : f32 to vector<64x1xf32>
    %24 = arith.addf %20, %23 : vector<64x1xf32>
    %25 = math.rsqrt %24 : vector<64x1xf32>
    %26 = vector.broadcast %25 : vector<64x1xf32> to vector<64x32xf32>
    %27 = arith.mulf %22, %26 : vector<64x32xf32>
    %28 = vector.broadcast %8 : vector<1x32xf32> to vector<64x32xf32>
    %29 = arith.mulf %27, %28 : vector<64x32xf32>
    %30 = vector.broadcast %9 : vector<1x32xf32> to vector<64x32xf32>
    %31 = arith.addf %29, %30 : vector<64x32xf32>
    %c0_15 = arith.constant 0 : index
    %c0_16 = arith.constant 0 : index
    %c0_17 = arith.constant 0 : index
    %32 = vector.load %arg7[%c0_15, %c0_16, %c0_17] : memref<1x64x32xf32, #tpu.memory_space<vmem>>, vector<1x64x32xf32>
    %33 = vector.shape_cast %32 : vector<1x64x32xf32> to vector<64x32xf32>
    %34 = arith.addf %31, %33 : vector<64x32xf32>
    %c0_18 = arith.constant 0 : index
    %c0_19 = arith.constant 0 : index
    %c0_20 = arith.constant 0 : index
    %35 = vector.load %arg8[%c0_18, %c0_19, %c0_20] : memref<1x64x32xf32, #tpu.memory_space<vmem>>, vector<1x64x32xf32>
    %36 = vector.shape_cast %35 : vector<1x64x32xf32> to vector<64x32xf32>
    %37 = vector.shape_cast %34 : vector<64x32xf32> to vector<1x64x32xf32>
    tpu.vector_store %arg8[%c0_18, %c0_19, %c0_20], %37 {strides = array<i32>} : memref<1x64x32xf32, #tpu.memory_space<vmem>>, vector<1x64x32xf32>,
    return
  }
  func.func @transform_0(%arg0: i32, %arg1: i32) -> (i32, i32, i32) {
    %c0_i32 = arith.constant 0 : i32
    %c0_i32_0 = arith.constant 0 : i32
    return %arg0, %arg1, %c0_i32 : i32, i32, i32
  }
  func.func @transform_1(%arg0: i32, %arg1: i32) -> (i32, i32) {
    %c0_i32 = arith.constant 0 : i32
    %c0_i32_0 = arith.constant 0 : i32
    %c0_i32_1 = arith.constant 0 : i32
    return %c0_i32, %c0_i32_0 : i32, i32
  }
  func.func @transform_2(%arg0: i32, %arg1: i32) -> (i32, i32) {
    %c0_i32 = arith.constant 0 : i32
    %c0_i32_0 = arith.constant 0 : i32
    %c0_i32_1 = arith.constant 0 : i32
    return %c0_i32, %c0_i32_0 : i32, i32
  }
  func.func @transform_3(%arg0: i32, %arg1: i32) -> (i32, i32) {
    %c0_i32 = arith.constant 0 : i32
    %c0_i32_0 = arith.constant 0 : i32
    %c0_i32_1 = arith.constant 0 : i32
    return %c0_i32, %c0_i32_0 : i32, i32
  }
  func.func @transform_4(%arg0: i32, %arg1: i32) -> (i32, i32) {
    %c0_i32 = arith.constant 0 : i32
    %c0_i32_0 = arith.constant 0 : i32
    %c0_i32_1 = arith.constant 0 : i32
    return %c0_i32, %c0_i32_0 : i32, i32
  }
  func.func @transform_5(%arg0: i32, %arg1: i32) -> (i32, i32, i32) {
    %c0_i32 = arith.constant 0 : i32
    %c0_i32_0 = arith.constant 0 : i32
    %c0_i32_1 = arith.constant 0 : i32
    return %c0_i32, %arg1, %c0_i32_0 : i32, i32, i32
  }
  func.func @transform_6(%arg0: i32, %arg1: i32) -> (i32, i32, i32) {
    %c0_i32 = arith.constant 0 : i32
    %c0_i32_0 = arith.constant 0 : i32
    return %arg0, %arg1, %c0_i32 : i32, i32, i32
  }
}

module attributes {stable_mosaic.version = 11 : i64} {
  func.func @_kv_kernel_sr(%arg0: i32, %arg1: i32, %arg2: memref<1x4x16x32xbf16, #tpu.memory_space<vmem>>, %arg3: memref<1x32xf32, #tpu.memory_space<vmem>>, %arg4: memref<1x32xf32, #tpu.memory_space<vmem>>, %arg5: memref<4x32x32xbf16, #tpu.memory_space<vmem>>, %arg6: memref<1x32xf32, #tpu.memory_space<vmem>>, %arg7: memref<1x32xf32, #tpu.memory_space<vmem>>, %arg8: memref<1x32xf32, #tpu.memory_space<vmem>>, %arg9: memref<32x64xbf16, #tpu.memory_space<vmem>>, %arg10: memref<1x64xf32, #tpu.memory_space<vmem>>, %arg11: memref<1x16x32xbf16, #tpu.memory_space<vmem>>, %arg12: memref<1x16x32xbf16, #tpu.memory_space<vmem>>) attributes {dimension_semantics = [#tpu.dimension_semantics<parallel>, #tpu.dimension_semantics<parallel>], iteration_bounds = array<i64: 2, 1>, scalar_prefetch = 0 : i64, scratch_operands = 0 : i64, tpu.core_type = #tpu.core_type<tc>, window_params = [{transform_indices = @transform_0, window_bounds = array<i64: 1, 4, 16, 32>}, {pipeline_mode = #tpu.pipeline_mode<synchronous>, transform_indices = @transform_1, window_bounds = array<i64: 1, 32>}, {pipeline_mode = #tpu.pipeline_mode<synchronous>, transform_indices = @transform_2, window_bounds = array<i64: 1, 32>}, {pipeline_mode = #tpu.pipeline_mode<synchronous>, transform_indices = @transform_3, window_bounds = array<i64: 4, 32, 32>}, {pipeline_mode = #tpu.pipeline_mode<synchronous>, transform_indices = @transform_4, window_bounds = array<i64: 1, 32>}, {pipeline_mode = #tpu.pipeline_mode<synchronous>, transform_indices = @transform_5, window_bounds = array<i64: 1, 32>}, {pipeline_mode = #tpu.pipeline_mode<synchronous>, transform_indices = @transform_6, window_bounds = array<i64: 1, 32>}, {pipeline_mode = #tpu.pipeline_mode<synchronous>, transform_indices = @transform_7, window_bounds = array<i64: 32, 64>}, {pipeline_mode = #tpu.pipeline_mode<synchronous>, transform_indices = @transform_8, window_bounds = array<i64: 1, 64>}, {transform_indices = @transform_9, window_bounds = array<i64: 1, 16, 32>}, {transform_indices = @transform_10, window_bounds = array<i64: 1, 16, 32>}]} {
    %c0 = arith.constant 0 : index
    %c0_0 = arith.constant 0 : index
    %c0_1 = arith.constant 0 : index
    %c0_2 = arith.constant 0 : index
    %0 = vector.load %arg2[%c0, %c0_0, %c0_1, %c0_2] : memref<1x4x16x32xbf16, #tpu.memory_space<vmem>>, vector<1x1x16x32xbf16>
    %1 = vector.shape_cast %0 : vector<1x1x16x32xbf16> to vector<16x32xbf16>
    %2 = arith.extf %1 : vector<16x32xbf16> to vector<16x32xf32>
    %c0_3 = arith.constant 0 : index
    %c0_4 = arith.constant 0 : index
    %3 = vector.load %arg3[%c0_3, %c0_4] : memref<1x32xf32, #tpu.memory_space<vmem>>, vector<1x32xf32>
    %c0_5 = arith.constant 0 : index
    %c0_6 = arith.constant 0 : index
    %4 = vector.load %arg4[%c0_5, %c0_6] : memref<1x32xf32, #tpu.memory_space<vmem>>, vector<1x32xf32>
    %cst = arith.constant dense<0.000000e+00> : vector<16xf32>
    %5 = vector.multi_reduction <add>, %2, %cst [1] : vector<16x32xf32> to vector<16xf32>
    %6 = vector.shape_cast %5 : vector<16xf32> to vector<16x1xf32>
    %cst_7 = arith.constant 3.200000e+01 : f32
    %7 = vector.broadcast %cst_7 : f32 to vector<16x1xf32>
    %8 = arith.divf %6, %7 : vector<16x1xf32>
    %9 = vector.broadcast %8 : vector<16x1xf32> to vector<16x32xf32>
    %10 = arith.subf %2, %9 : vector<16x32xf32>
    %11 = arith.mulf %10, %10 : vector<16x32xf32>
    %cst_8 = arith.constant dense<0.000000e+00> : vector<16xf32>
    %12 = vector.multi_reduction <add>, %11, %cst_8 [1] : vector<16x32xf32> to vector<16xf32>
    %13 = vector.shape_cast %12 : vector<16xf32> to vector<16x1xf32>
    %cst_9 = arith.constant 3.200000e+01 : f32
    %14 = vector.broadcast %cst_9 : f32 to vector<16x1xf32>
    %15 = arith.divf %13, %14 : vector<16x1xf32>
    %16 = vector.broadcast %8 : vector<16x1xf32> to vector<16x32xf32>
    %17 = arith.subf %2, %16 : vector<16x32xf32>
    %cst_10 = arith.constant 9.99999997E-7 : f32
    %18 = vector.broadcast %cst_10 : f32 to vector<16x1xf32>
    %19 = arith.addf %15, %18 : vector<16x1xf32>
    %20 = math.rsqrt %19 : vector<16x1xf32>
    %21 = vector.broadcast %20 : vector<16x1xf32> to vector<16x32xf32>
    %22 = arith.mulf %17, %21 : vector<16x32xf32>
    %23 = vector.broadcast %3 : vector<1x32xf32> to vector<16x32xf32>
    %24 = arith.mulf %22, %23 : vector<16x32xf32>
    %25 = vector.broadcast %4 : vector<1x32xf32> to vector<16x32xf32>
    %26 = arith.addf %24, %25 : vector<16x32xf32>
    %27 = arith.truncf %26 : vector<16x32xf32> to vector<16x32xbf16>
    %c0_11 = arith.constant 0 : index
    %c0_12 = arith.constant 0 : index
    %c0_13 = arith.constant 0 : index
    %28 = vector.load %arg5[%c0_11, %c0_12, %c0_13] : memref<4x32x32xbf16, #tpu.memory_space<vmem>>, vector<1x32x32xbf16>
    %29 = vector.shape_cast %28 : vector<1x32x32xbf16> to vector<32x32xbf16>
    %cst_14 = arith.constant dense<0.000000e+00> : vector<16x32xf32>
    %30 = tpu.matmul %27, %29, %cst_14 {dimension_numbers = #tpu.dot_dimension_numbers<[1], [0], [0], [1], [0, 0, 1, 1], [], []>} : vector<16x32xbf16>, vector<32x32xbf16>, vector<16x32xf32> -> vector<16x32xf32>
    %c0_15 = arith.constant 0 : index
    %c1 = arith.constant 1 : index
    %c0_16 = arith.constant 0 : index
    %c0_17 = arith.constant 0 : index
    %31 = vector.load %arg2[%c0_15, %c1, %c0_16, %c0_17] : memref<1x4x16x32xbf16, #tpu.memory_space<vmem>>, vector<1x1x16x32xbf16>
    %32 = vector.shape_cast %31 : vector<1x1x16x32xbf16> to vector<16x32xbf16>
    %33 = arith.extf %32 : vector<16x32xbf16> to vector<16x32xf32>
    %c0_18 = arith.constant 0 : index
    %c0_19 = arith.constant 0 : index
    %34 = vector.load %arg3[%c0_18, %c0_19] : memref<1x32xf32, #tpu.memory_space<vmem>>, vector<1x32xf32>
    %c0_20 = arith.constant 0 : index
    %c0_21 = arith.constant 0 : index
    %35 = vector.load %arg4[%c0_20, %c0_21] : memref<1x32xf32, #tpu.memory_space<vmem>>, vector<1x32xf32>
    %cst_22 = arith.constant dense<0.000000e+00> : vector<16xf32>
    %36 = vector.multi_reduction <add>, %33, %cst_22 [1] : vector<16x32xf32> to vector<16xf32>
    %37 = vector.shape_cast %36 : vector<16xf32> to vector<16x1xf32>
    %cst_23 = arith.constant 3.200000e+01 : f32
    %38 = vector.broadcast %cst_23 : f32 to vector<16x1xf32>
    %39 = arith.divf %37, %38 : vector<16x1xf32>
    %40 = vector.broadcast %39 : vector<16x1xf32> to vector<16x32xf32>
    %41 = arith.subf %33, %40 : vector<16x32xf32>
    %42 = arith.mulf %41, %41 : vector<16x32xf32>
    %cst_24 = arith.constant dense<0.000000e+00> : vector<16xf32>
    %43 = vector.multi_reduction <add>, %42, %cst_24 [1] : vector<16x32xf32> to vector<16xf32>
    %44 = vector.shape_cast %43 : vector<16xf32> to vector<16x1xf32>
    %cst_25 = arith.constant 3.200000e+01 : f32
    %45 = vector.broadcast %cst_25 : f32 to vector<16x1xf32>
    %46 = arith.divf %44, %45 : vector<16x1xf32>
    %47 = vector.broadcast %39 : vector<16x1xf32> to vector<16x32xf32>
    %48 = arith.subf %33, %47 : vector<16x32xf32>
    %cst_26 = arith.constant 9.99999997E-7 : f32
    %49 = vector.broadcast %cst_26 : f32 to vector<16x1xf32>
    %50 = arith.addf %46, %49 : vector<16x1xf32>
    %51 = math.rsqrt %50 : vector<16x1xf32>
    %52 = vector.broadcast %51 : vector<16x1xf32> to vector<16x32xf32>
    %53 = arith.mulf %48, %52 : vector<16x32xf32>
    %54 = vector.broadcast %34 : vector<1x32xf32> to vector<16x32xf32>
    %55 = arith.mulf %53, %54 : vector<16x32xf32>
    %56 = vector.broadcast %35 : vector<1x32xf32> to vector<16x32xf32>
    %57 = arith.addf %55, %56 : vector<16x32xf32>
    %58 = arith.truncf %57 : vector<16x32xf32> to vector<16x32xbf16>
    %c1_27 = arith.constant 1 : index
    %c0_28 = arith.constant 0 : index
    %c0_29 = arith.constant 0 : index
    %59 = vector.load %arg5[%c1_27, %c0_28, %c0_29] : memref<4x32x32xbf16, #tpu.memory_space<vmem>>, vector<1x32x32xbf16>
    %60 = vector.shape_cast %59 : vector<1x32x32xbf16> to vector<32x32xbf16>
    %cst_30 = arith.constant dense<0.000000e+00> : vector<16x32xf32>
    %61 = tpu.matmul %58, %60, %cst_30 {dimension_numbers = #tpu.dot_dimension_numbers<[1], [0], [0], [1], [0, 0, 1, 1], [], []>} : vector<16x32xbf16>, vector<32x32xbf16>, vector<16x32xf32> -> vector<16x32xf32>
    %62 = arith.addf %30, %61 : vector<16x32xf32>
    %c0_31 = arith.constant 0 : index
    %c2 = arith.constant 2 : index
    %c0_32 = arith.constant 0 : index
    %c0_33 = arith.constant 0 : index
    %63 = vector.load %arg2[%c0_31, %c2, %c0_32, %c0_33] : memref<1x4x16x32xbf16, #tpu.memory_space<vmem>>, vector<1x1x16x32xbf16>
    %64 = vector.shape_cast %63 : vector<1x1x16x32xbf16> to vector<16x32xbf16>
    %65 = arith.extf %64 : vector<16x32xbf16> to vector<16x32xf32>
    %c0_34 = arith.constant 0 : index
    %c0_35 = arith.constant 0 : index
    %66 = vector.load %arg3[%c0_34, %c0_35] : memref<1x32xf32, #tpu.memory_space<vmem>>, vector<1x32xf32>
    %c0_36 = arith.constant 0 : index
    %c0_37 = arith.constant 0 : index
    %67 = vector.load %arg4[%c0_36, %c0_37] : memref<1x32xf32, #tpu.memory_space<vmem>>, vector<1x32xf32>
    %cst_38 = arith.constant dense<0.000000e+00> : vector<16xf32>
    %68 = vector.multi_reduction <add>, %65, %cst_38 [1] : vector<16x32xf32> to vector<16xf32>
    %69 = vector.shape_cast %68 : vector<16xf32> to vector<16x1xf32>
    %cst_39 = arith.constant 3.200000e+01 : f32
    %70 = vector.broadcast %cst_39 : f32 to vector<16x1xf32>
    %71 = arith.divf %69, %70 : vector<16x1xf32>
    %72 = vector.broadcast %71 : vector<16x1xf32> to vector<16x32xf32>
    %73 = arith.subf %65, %72 : vector<16x32xf32>
    %74 = arith.mulf %73, %73 : vector<16x32xf32>
    %cst_40 = arith.constant dense<0.000000e+00> : vector<16xf32>
    %75 = vector.multi_reduction <add>, %74, %cst_40 [1] : vector<16x32xf32> to vector<16xf32>
    %76 = vector.shape_cast %75 : vector<16xf32> to vector<16x1xf32>
    %cst_41 = arith.constant 3.200000e+01 : f32
    %77 = vector.broadcast %cst_41 : f32 to vector<16x1xf32>
    %78 = arith.divf %76, %77 : vector<16x1xf32>
    %79 = vector.broadcast %71 : vector<16x1xf32> to vector<16x32xf32>
    %80 = arith.subf %65, %79 : vector<16x32xf32>
    %cst_42 = arith.constant 9.99999997E-7 : f32
    %81 = vector.broadcast %cst_42 : f32 to vector<16x1xf32>
    %82 = arith.addf %78, %81 : vector<16x1xf32>
    %83 = math.rsqrt %82 : vector<16x1xf32>
    %84 = vector.broadcast %83 : vector<16x1xf32> to vector<16x32xf32>
    %85 = arith.mulf %80, %84 : vector<16x32xf32>
    %86 = vector.broadcast %66 : vector<1x32xf32> to vector<16x32xf32>
    %87 = arith.mulf %85, %86 : vector<16x32xf32>
    %88 = vector.broadcast %67 : vector<1x32xf32> to vector<16x32xf32>
    %89 = arith.addf %87, %88 : vector<16x32xf32>
    %90 = arith.truncf %89 : vector<16x32xf32> to vector<16x32xbf16>
    %c2_43 = arith.constant 2 : index
    %c0_44 = arith.constant 0 : index
    %c0_45 = arith.constant 0 : index
    %91 = vector.load %arg5[%c2_43, %c0_44, %c0_45] : memref<4x32x32xbf16, #tpu.memory_space<vmem>>, vector<1x32x32xbf16>
    %92 = vector.shape_cast %91 : vector<1x32x32xbf16> to vector<32x32xbf16>
    %cst_46 = arith.constant dense<0.000000e+00> : vector<16x32xf32>
    %93 = tpu.matmul %90, %92, %cst_46 {dimension_numbers = #tpu.dot_dimension_numbers<[1], [0], [0], [1], [0, 0, 1, 1], [], []>} : vector<16x32xbf16>, vector<32x32xbf16>, vector<16x32xf32> -> vector<16x32xf32>
    %94 = arith.addf %62, %93 : vector<16x32xf32>
    %c0_47 = arith.constant 0 : index
    %c3 = arith.constant 3 : index
    %c0_48 = arith.constant 0 : index
    %c0_49 = arith.constant 0 : index
    %95 = vector.load %arg2[%c0_47, %c3, %c0_48, %c0_49] : memref<1x4x16x32xbf16, #tpu.memory_space<vmem>>, vector<1x1x16x32xbf16>
    %96 = vector.shape_cast %95 : vector<1x1x16x32xbf16> to vector<16x32xbf16>
    %97 = arith.extf %96 : vector<16x32xbf16> to vector<16x32xf32>
    %c0_50 = arith.constant 0 : index
    %c0_51 = arith.constant 0 : index
    %98 = vector.load %arg3[%c0_50, %c0_51] : memref<1x32xf32, #tpu.memory_space<vmem>>, vector<1x32xf32>
    %c0_52 = arith.constant 0 : index
    %c0_53 = arith.constant 0 : index
    %99 = vector.load %arg4[%c0_52, %c0_53] : memref<1x32xf32, #tpu.memory_space<vmem>>, vector<1x32xf32>
    %cst_54 = arith.constant dense<0.000000e+00> : vector<16xf32>
    %100 = vector.multi_reduction <add>, %97, %cst_54 [1] : vector<16x32xf32> to vector<16xf32>
    %101 = vector.shape_cast %100 : vector<16xf32> to vector<16x1xf32>
    %cst_55 = arith.constant 3.200000e+01 : f32
    %102 = vector.broadcast %cst_55 : f32 to vector<16x1xf32>
    %103 = arith.divf %101, %102 : vector<16x1xf32>
    %104 = vector.broadcast %103 : vector<16x1xf32> to vector<16x32xf32>
    %105 = arith.subf %97, %104 : vector<16x32xf32>
    %106 = arith.mulf %105, %105 : vector<16x32xf32>
    %cst_56 = arith.constant dense<0.000000e+00> : vector<16xf32>
    %107 = vector.multi_reduction <add>, %106, %cst_56 [1] : vector<16x32xf32> to vector<16xf32>
    %108 = vector.shape_cast %107 : vector<16xf32> to vector<16x1xf32>
    %cst_57 = arith.constant 3.200000e+01 : f32
    %109 = vector.broadcast %cst_57 : f32 to vector<16x1xf32>
    %110 = arith.divf %108, %109 : vector<16x1xf32>
    %111 = vector.broadcast %103 : vector<16x1xf32> to vector<16x32xf32>
    %112 = arith.subf %97, %111 : vector<16x32xf32>
    %cst_58 = arith.constant 9.99999997E-7 : f32
    %113 = vector.broadcast %cst_58 : f32 to vector<16x1xf32>
    %114 = arith.addf %110, %113 : vector<16x1xf32>
    %115 = math.rsqrt %114 : vector<16x1xf32>
    %116 = vector.broadcast %115 : vector<16x1xf32> to vector<16x32xf32>
    %117 = arith.mulf %112, %116 : vector<16x32xf32>
    %118 = vector.broadcast %98 : vector<1x32xf32> to vector<16x32xf32>
    %119 = arith.mulf %117, %118 : vector<16x32xf32>
    %120 = vector.broadcast %99 : vector<1x32xf32> to vector<16x32xf32>
    %121 = arith.addf %119, %120 : vector<16x32xf32>
    %122 = arith.truncf %121 : vector<16x32xf32> to vector<16x32xbf16>
    %c3_59 = arith.constant 3 : index
    %c0_60 = arith.constant 0 : index
    %c0_61 = arith.constant 0 : index
    %123 = vector.load %arg5[%c3_59, %c0_60, %c0_61] : memref<4x32x32xbf16, #tpu.memory_space<vmem>>, vector<1x32x32xbf16>
    %124 = vector.shape_cast %123 : vector<1x32x32xbf16> to vector<32x32xbf16>
    %cst_62 = arith.constant dense<0.000000e+00> : vector<16x32xf32>
    %125 = tpu.matmul %122, %124, %cst_62 {dimension_numbers = #tpu.dot_dimension_numbers<[1], [0], [0], [1], [0, 0, 1, 1], [], []>} : vector<16x32xbf16>, vector<32x32xbf16>, vector<16x32xf32> -> vector<16x32xf32>
    %126 = arith.addf %94, %125 : vector<16x32xf32>
    %c0_63 = arith.constant 0 : index
    %c0_64 = arith.constant 0 : index
    %127 = vector.load %arg6[%c0_63, %c0_64] : memref<1x32xf32, #tpu.memory_space<vmem>>, vector<1x32xf32>
    %128 = vector.broadcast %127 : vector<1x32xf32> to vector<16x32xf32>
    %129 = arith.addf %126, %128 : vector<16x32xf32>
    %c0_65 = arith.constant 0 : index
    %c0_66 = arith.constant 0 : index
    %130 = vector.load %arg7[%c0_65, %c0_66] : memref<1x32xf32, #tpu.memory_space<vmem>>, vector<1x32xf32>
    %c0_67 = arith.constant 0 : index
    %c0_68 = arith.constant 0 : index
    %131 = vector.load %arg8[%c0_67, %c0_68] : memref<1x32xf32, #tpu.memory_space<vmem>>, vector<1x32xf32>
    %cst_69 = arith.constant dense<0.000000e+00> : vector<16xf32>
    %132 = vector.multi_reduction <add>, %129, %cst_69 [1] : vector<16x32xf32> to vector<16xf32>
    %133 = vector.shape_cast %132 : vector<16xf32> to vector<16x1xf32>
    %cst_70 = arith.constant 3.200000e+01 : f32
    %134 = vector.broadcast %cst_70 : f32 to vector<16x1xf32>
    %135 = arith.divf %133, %134 : vector<16x1xf32>
    %136 = vector.broadcast %135 : vector<16x1xf32> to vector<16x32xf32>
    %137 = arith.subf %129, %136 : vector<16x32xf32>
    %138 = arith.mulf %137, %137 : vector<16x32xf32>
    %cst_71 = arith.constant dense<0.000000e+00> : vector<16xf32>
    %139 = vector.multi_reduction <add>, %138, %cst_71 [1] : vector<16x32xf32> to vector<16xf32>
    %140 = vector.shape_cast %139 : vector<16xf32> to vector<16x1xf32>
    %cst_72 = arith.constant 3.200000e+01 : f32
    %141 = vector.broadcast %cst_72 : f32 to vector<16x1xf32>
    %142 = arith.divf %140, %141 : vector<16x1xf32>
    %143 = vector.broadcast %135 : vector<16x1xf32> to vector<16x32xf32>
    %144 = arith.subf %129, %143 : vector<16x32xf32>
    %cst_73 = arith.constant 9.99999974E-6 : f32
    %145 = vector.broadcast %cst_73 : f32 to vector<16x1xf32>
    %146 = arith.addf %142, %145 : vector<16x1xf32>
    %147 = math.rsqrt %146 : vector<16x1xf32>
    %148 = vector.broadcast %147 : vector<16x1xf32> to vector<16x32xf32>
    %149 = arith.mulf %144, %148 : vector<16x32xf32>
    %150 = vector.broadcast %130 : vector<1x32xf32> to vector<16x32xf32>
    %151 = arith.mulf %149, %150 : vector<16x32xf32>
    %152 = vector.broadcast %131 : vector<1x32xf32> to vector<16x32xf32>
    %153 = arith.addf %151, %152 : vector<16x32xf32>
    %154 = arith.truncf %153 : vector<16x32xf32> to vector<16x32xbf16>
    %c0_74 = arith.constant 0 : index
    %c0_75 = arith.constant 0 : index
    %155 = vector.load %arg9[%c0_74, %c0_75] : memref<32x64xbf16, #tpu.memory_space<vmem>>, vector<32x64xbf16>
    %cst_76 = arith.constant dense<0.000000e+00> : vector<16x64xf32>
    %156 = tpu.matmul %154, %155, %cst_76 {dimension_numbers = #tpu.dot_dimension_numbers<[1], [0], [0], [1], [0, 0, 1, 1], [], []>} : vector<16x32xbf16>, vector<32x64xbf16>, vector<16x64xf32> -> vector<16x64xf32>
    %c0_77 = arith.constant 0 : index
    %c0_78 = arith.constant 0 : index
    %157 = vector.load %arg10[%c0_77, %c0_78] : memref<1x64xf32, #tpu.memory_space<vmem>>, vector<1x64xf32>
    %158 = vector.broadcast %157 : vector<1x64xf32> to vector<16x64xf32>
    %159 = arith.addf %156, %158 : vector<16x64xf32>
    %160 = vector.extract_strided_slice %159 {offsets = [0, 0], sizes = [16, 32], strides = [1, 1]} : vector<16x64xf32> to vector<16x32xf32>
    %161 = arith.truncf %160 : vector<16x32xf32> to vector<16x32xbf16>
    %c0_79 = arith.constant 0 : index
    %c0_80 = arith.constant 0 : index
    %c0_81 = arith.constant 0 : index
    %162 = vector.load %arg11[%c0_79, %c0_80, %c0_81] : memref<1x16x32xbf16, #tpu.memory_space<vmem>>, vector<1x16x32xbf16>
    %163 = vector.shape_cast %162 : vector<1x16x32xbf16> to vector<16x32xbf16>
    %164 = vector.shape_cast %161 : vector<16x32xbf16> to vector<1x16x32xbf16>
    tpu.vector_store %arg11[%c0_79, %c0_80, %c0_81], %164 {strides = array<i32>} : memref<1x16x32xbf16, #tpu.memory_space<vmem>>, vector<1x16x32xbf16>,
    %165 = vector.extract_strided_slice %159 {offsets = [0, 32], sizes = [16, 32], strides = [1, 1]} : vector<16x64xf32> to vector<16x32xf32>
    %166 = arith.truncf %165 : vector<16x32xf32> to vector<16x32xbf16>
    %c0_82 = arith.constant 0 : index
    %c0_83 = arith.constant 0 : index
    %c0_84 = arith.constant 0 : index
    %167 = vector.load %arg12[%c0_82, %c0_83, %c0_84] : memref<1x16x32xbf16, #tpu.memory_space<vmem>>, vector<1x16x32xbf16>
    %168 = vector.shape_cast %167 : vector<1x16x32xbf16> to vector<16x32xbf16>
    %169 = vector.shape_cast %166 : vector<16x32xbf16> to vector<1x16x32xbf16>
    tpu.vector_store %arg12[%c0_82, %c0_83, %c0_84], %169 {strides = array<i32>} : memref<1x16x32xbf16, #tpu.memory_space<vmem>>, vector<1x16x32xbf16>,
    return
  }
  func.func @transform_0(%arg0: i32, %arg1: i32) -> (i32, i32, i32, i32) {
    %c0_i32 = arith.constant 0 : i32
    %c0_i32_0 = arith.constant 0 : i32
    %c0_i32_1 = arith.constant 0 : i32
    return %arg0, %c0_i32, %arg1, %c0_i32_0 : i32, i32, i32, i32
  }
  func.func @transform_1(%arg0: i32, %arg1: i32) -> (i32, i32) {
    %c0_i32 = arith.constant 0 : i32
    %c0_i32_0 = arith.constant 0 : i32
    %c0_i32_1 = arith.constant 0 : i32
    return %c0_i32, %c0_i32_0 : i32, i32
  }
  func.func @transform_2(%arg0: i32, %arg1: i32) -> (i32, i32) {
    %c0_i32 = arith.constant 0 : i32
    %c0_i32_0 = arith.constant 0 : i32
    %c0_i32_1 = arith.constant 0 : i32
    return %c0_i32, %c0_i32_0 : i32, i32
  }
  func.func @transform_3(%arg0: i32, %arg1: i32) -> (i32, i32, i32) {
    %c0_i32 = arith.constant 0 : i32
    %c0_i32_0 = arith.constant 0 : i32
    %c0_i32_1 = arith.constant 0 : i32
    %c0_i32_2 = arith.constant 0 : i32
    return %c0_i32, %c0_i32_0, %c0_i32_1 : i32, i32, i32
  }
  func.func @transform_4(%arg0: i32, %arg1: i32) -> (i32, i32) {
    %c0_i32 = arith.constant 0 : i32
    %c0_i32_0 = arith.constant 0 : i32
    %c0_i32_1 = arith.constant 0 : i32
    return %c0_i32, %c0_i32_0 : i32, i32
  }
  func.func @transform_5(%arg0: i32, %arg1: i32) -> (i32, i32) {
    %c0_i32 = arith.constant 0 : i32
    %c0_i32_0 = arith.constant 0 : i32
    %c0_i32_1 = arith.constant 0 : i32
    return %c0_i32, %c0_i32_0 : i32, i32
  }
  func.func @transform_6(%arg0: i32, %arg1: i32) -> (i32, i32) {
    %c0_i32 = arith.constant 0 : i32
    %c0_i32_0 = arith.constant 0 : i32
    %c0_i32_1 = arith.constant 0 : i32
    return %c0_i32, %c0_i32_0 : i32, i32
  }
  func.func @transform_7(%arg0: i32, %arg1: i32) -> (i32, i32) {
    %c0_i32 = arith.constant 0 : i32
    %c0_i32_0 = arith.constant 0 : i32
    %c0_i32_1 = arith.constant 0 : i32
    return %c0_i32, %c0_i32_0 : i32, i32
  }
  func.func @transform_8(%arg0: i32, %arg1: i32) -> (i32, i32) {
    %c0_i32 = arith.constant 0 : i32
    %c0_i32_0 = arith.constant 0 : i32
    %c0_i32_1 = arith.constant 0 : i32
    return %c0_i32, %c0_i32_0 : i32, i32
  }
  func.func @transform_9(%arg0: i32, %arg1: i32) -> (i32, i32, i32) {
    %c0_i32 = arith.constant 0 : i32
    %c0_i32_0 = arith.constant 0 : i32
    return %arg0, %arg1, %c0_i32 : i32, i32, i32
  }
  func.func @transform_10(%arg0: i32, %arg1: i32) -> (i32, i32, i32) {
    %c0_i32 = arith.constant 0 : i32
    %c0_i32_0 = arith.constant 0 : i32
    return %arg0, %arg1, %c0_i32 : i32, i32, i32
  }
}

module attributes {stable_mosaic.version = 11 : i64} {
  func.func @_mlp_kernel(%arg0: i32, %arg1: memref<128x32xf32, #tpu.memory_space<vmem>>, %arg2: memref<1x32xf32, #tpu.memory_space<vmem>>, %arg3: memref<1x32xf32, #tpu.memory_space<vmem>>, %arg4: memref<32x128xbf16, #tpu.memory_space<vmem>>, %arg5: memref<1x128xf32, #tpu.memory_space<vmem>>, %arg6: memref<128x32xbf16, #tpu.memory_space<vmem>>, %arg7: memref<1x32xf32, #tpu.memory_space<vmem>>, %arg8: memref<128x32xf32, #tpu.memory_space<vmem>>) attributes {dimension_semantics = [#tpu.dimension_semantics<parallel>], iteration_bounds = array<i64: 1>, scalar_prefetch = 0 : i64, scratch_operands = 0 : i64, tpu.core_type = #tpu.core_type<tc>, window_params = [{transform_indices = @transform_0, window_bounds = array<i64: 128, 32>}, {pipeline_mode = #tpu.pipeline_mode<synchronous>, transform_indices = @transform_1, window_bounds = array<i64: 1, 32>}, {pipeline_mode = #tpu.pipeline_mode<synchronous>, transform_indices = @transform_2, window_bounds = array<i64: 1, 32>}, {pipeline_mode = #tpu.pipeline_mode<synchronous>, transform_indices = @transform_3, window_bounds = array<i64: 32, 128>}, {pipeline_mode = #tpu.pipeline_mode<synchronous>, transform_indices = @transform_4, window_bounds = array<i64: 1, 128>}, {pipeline_mode = #tpu.pipeline_mode<synchronous>, transform_indices = @transform_5, window_bounds = array<i64: 128, 32>}, {pipeline_mode = #tpu.pipeline_mode<synchronous>, transform_indices = @transform_6, window_bounds = array<i64: 1, 32>}, {transform_indices = @transform_7, window_bounds = array<i64: 128, 32>}]} {
    %c0 = arith.constant 0 : index
    %c0_0 = arith.constant 0 : index
    %0 = vector.load %arg1[%c0, %c0_0] : memref<128x32xf32, #tpu.memory_space<vmem>>, vector<128x32xf32>
    %c0_1 = arith.constant 0 : index
    %c0_2 = arith.constant 0 : index
    %1 = vector.load %arg2[%c0_1, %c0_2] : memref<1x32xf32, #tpu.memory_space<vmem>>, vector<1x32xf32>
    %c0_3 = arith.constant 0 : index
    %c0_4 = arith.constant 0 : index
    %2 = vector.load %arg3[%c0_3, %c0_4] : memref<1x32xf32, #tpu.memory_space<vmem>>, vector<1x32xf32>
    %cst = arith.constant dense<0.000000e+00> : vector<128xf32>
    %3 = vector.multi_reduction <add>, %0, %cst [1] : vector<128x32xf32> to vector<128xf32>
    %4 = vector.shape_cast %3 : vector<128xf32> to vector<128x1xf32>
    %cst_5 = arith.constant 3.200000e+01 : f32
    %5 = vector.broadcast %cst_5 : f32 to vector<128x1xf32>
    %6 = arith.divf %4, %5 : vector<128x1xf32>
    %7 = vector.broadcast %6 : vector<128x1xf32> to vector<128x32xf32>
    %8 = arith.subf %0, %7 : vector<128x32xf32>
    %9 = arith.mulf %8, %8 : vector<128x32xf32>
    %cst_6 = arith.constant dense<0.000000e+00> : vector<128xf32>
    %10 = vector.multi_reduction <add>, %9, %cst_6 [1] : vector<128x32xf32> to vector<128xf32>
    %11 = vector.shape_cast %10 : vector<128xf32> to vector<128x1xf32>
    %cst_7 = arith.constant 3.200000e+01 : f32
    %12 = vector.broadcast %cst_7 : f32 to vector<128x1xf32>
    %13 = arith.divf %11, %12 : vector<128x1xf32>
    %14 = vector.broadcast %6 : vector<128x1xf32> to vector<128x32xf32>
    %15 = arith.subf %0, %14 : vector<128x32xf32>
    %cst_8 = arith.constant 9.99999997E-7 : f32
    %16 = vector.broadcast %cst_8 : f32 to vector<128x1xf32>
    %17 = arith.addf %13, %16 : vector<128x1xf32>
    %18 = math.rsqrt %17 : vector<128x1xf32>
    %19 = vector.broadcast %18 : vector<128x1xf32> to vector<128x32xf32>
    %20 = arith.mulf %15, %19 : vector<128x32xf32>
    %21 = vector.broadcast %1 : vector<1x32xf32> to vector<128x32xf32>
    %22 = arith.mulf %20, %21 : vector<128x32xf32>
    %23 = vector.broadcast %2 : vector<1x32xf32> to vector<128x32xf32>
    %24 = arith.addf %22, %23 : vector<128x32xf32>
    %25 = arith.truncf %24 : vector<128x32xf32> to vector<128x32xbf16>
    %c0_9 = arith.constant 0 : index
    %c0_10 = arith.constant 0 : index
    %26 = vector.load %arg4[%c0_9, %c0_10] : memref<32x128xbf16, #tpu.memory_space<vmem>>, vector<32x128xbf16>
    %cst_11 = arith.constant dense<0.000000e+00> : vector<128x128xf32>
    %27 = tpu.matmul %25, %26, %cst_11 {dimension_numbers = #tpu.dot_dimension_numbers<[1], [0], [0], [1], [0, 0, 1, 1], [], []>} : vector<128x32xbf16>, vector<32x128xbf16>, vector<128x128xf32> -> vector<128x128xf32>
    %c0_12 = arith.constant 0 : index
    %c0_13 = arith.constant 0 : index
    %28 = vector.load %arg5[%c0_12, %c0_13] : memref<1x128xf32, #tpu.memory_space<vmem>>, vector<1x128xf32>
    %29 = vector.broadcast %28 : vector<1x128xf32> to vector<128x128xf32>
    %30 = arith.addf %27, %29 : vector<128x128xf32>
    %cst_14 = arith.constant 5.000000e-01 : f32
    %31 = vector.broadcast %cst_14 : f32 to vector<128x128xf32>
    %32 = arith.mulf %31, %30 : vector<128x128xf32>
    %cst_15 = arith.constant 4.471500e-02 : f32
    %33 = vector.broadcast %cst_15 : f32 to vector<128x128xf32>
    %34 = arith.mulf %33, %30 : vector<128x128xf32>
    %35 = arith.mulf %34, %30 : vector<128x128xf32>
    %36 = arith.mulf %35, %30 : vector<128x128xf32>
    %37 = arith.addf %30, %36 : vector<128x128xf32>
    %cst_16 = arith.constant 0.797884583 : f32
    %38 = vector.broadcast %cst_16 : f32 to vector<128x128xf32>
    %39 = arith.mulf %38, %37 : vector<128x128xf32>
    %40 = math.tanh %39 : vector<128x128xf32>
    %cst_17 = arith.constant 1.000000e+00 : f32
    %41 = vector.broadcast %cst_17 : f32 to vector<128x128xf32>
    %42 = arith.addf %41, %40 : vector<128x128xf32>
    %43 = arith.mulf %32, %42 : vector<128x128xf32>
    %44 = arith.truncf %43 : vector<128x128xf32> to vector<128x128xbf16>
    %c0_18 = arith.constant 0 : index
    %c0_19 = arith.constant 0 : index
    %45 = vector.load %arg6[%c0_18, %c0_19] : memref<128x32xbf16, #tpu.memory_space<vmem>>, vector<128x32xbf16>
    %cst_20 = arith.constant dense<0.000000e+00> : vector<128x32xf32>
    %46 = tpu.matmul %44, %45, %cst_20 {dimension_numbers = #tpu.dot_dimension_numbers<[1], [0], [0], [1], [0, 0, 1, 1], [], []>} : vector<128x128xbf16>, vector<128x32xbf16>, vector<128x32xf32> -> vector<128x32xf32>
    %c0_21 = arith.constant 0 : index
    %c0_22 = arith.constant 0 : index
    %47 = vector.load %arg7[%c0_21, %c0_22] : memref<1x32xf32, #tpu.memory_space<vmem>>, vector<1x32xf32>
    %48 = vector.broadcast %47 : vector<1x32xf32> to vector<128x32xf32>
    %49 = arith.addf %46, %48 : vector<128x32xf32>
    %50 = arith.addf %0, %49 : vector<128x32xf32>
    %c0_23 = arith.constant 0 : index
    %c0_24 = arith.constant 0 : index
    %51 = vector.load %arg8[%c0_23, %c0_24] : memref<128x32xf32, #tpu.memory_space<vmem>>, vector<128x32xf32>
    tpu.vector_store %arg8[%c0_23, %c0_24], %50 {strides = array<i32>} : memref<128x32xf32, #tpu.memory_space<vmem>>, vector<128x32xf32>,
    return
  }
  func.func @transform_0(%arg0: i32) -> (i32, i32) {
    %c0_i32 = arith.constant 0 : i32
    %c0_i32_0 = arith.constant 0 : i32
    return %arg0, %c0_i32 : i32, i32
  }
  func.func @transform_1(%arg0: i32) -> (i32, i32) {
    %c0_i32 = arith.constant 0 : i32
    %c0_i32_0 = arith.constant 0 : i32
    %c0_i32_1 = arith.constant 0 : i32
    return %c0_i32, %c0_i32_0 : i32, i32
  }
  func.func @transform_2(%arg0: i32) -> (i32, i32) {
    %c0_i32 = arith.constant 0 : i32
    %c0_i32_0 = arith.constant 0 : i32
    %c0_i32_1 = arith.constant 0 : i32
    return %c0_i32, %c0_i32_0 : i32, i32
  }
  func.func @transform_3(%arg0: i32) -> (i32, i32) {
    %c0_i32 = arith.constant 0 : i32
    %c0_i32_0 = arith.constant 0 : i32
    %c0_i32_1 = arith.constant 0 : i32
    return %c0_i32, %c0_i32_0 : i32, i32
  }
  func.func @transform_4(%arg0: i32) -> (i32, i32) {
    %c0_i32 = arith.constant 0 : i32
    %c0_i32_0 = arith.constant 0 : i32
    %c0_i32_1 = arith.constant 0 : i32
    return %c0_i32, %c0_i32_0 : i32, i32
  }
  func.func @transform_5(%arg0: i32) -> (i32, i32) {
    %c0_i32 = arith.constant 0 : i32
    %c0_i32_0 = arith.constant 0 : i32
    %c0_i32_1 = arith.constant 0 : i32
    return %c0_i32, %c0_i32_0 : i32, i32
  }
  func.func @transform_6(%arg0: i32) -> (i32, i32) {
    %c0_i32 = arith.constant 0 : i32
    %c0_i32_0 = arith.constant 0 : i32
    %c0_i32_1 = arith.constant 0 : i32
    return %c0_i32, %c0_i32_0 : i32, i32
  }
  func.func @transform_7(%arg0: i32) -> (i32, i32) {
    %c0_i32 = arith.constant 0 : i32
    %c0_i32_0 = arith.constant 0 : i32
    return %arg0, %c0_i32 : i32, i32
  }
}

</mosaic_0001>

<bundles_post_ra>
// kernel: _lambda_.7
= control target key start
LH: loop header
LB: loop body
LE: loop exit
PB: predicated region body
PF: predicated region fallthrough
CT: control target
= control target key end

     0   :  { %s849_s21 = smov 0   ;;  %s851_s22 = smov 0   ;;  %s1074_s0 = inlined_call_operand.vmem [shape: f32[2,64,12], index: 0, kind: input, shape index: {}]   ;;  %s1075_s1 = inlined_call_operand.vmem [shape: bf16[12,32], index: 1, kind: input, shape index: {}]   ;;  %s1076_s2 = inlined_call_operand.vmem [shape: f32[1,32], index: 2, kind: input, shape index: {}]   ;;  %s1077_s3 = inlined_call_operand.vmem [shape: f32[1,32], index: 3, kind: input, shape index: {}]   ;;  %s1078_s4 = inlined_call_operand.vmem [shape: f32[1,32], index: 4, kind: input, shape index: {}]   ;;  %s1079_s5 = inlined_call_operand.vmem [shape: f32[1,64,32], index: 5, kind: input, shape index: {}]   ;;  %s1080_s6 = inlined_call_operand.vmem [shape: f32[2,64,32], index: 6, kind: output, shape index: {}]  }
   0x1   :  { %s853_s23 = smov 0  }
   0x2 LB: > { %s28_s24 = sadd.s32 1, %s807_s22  ;;  %p722_p0 = scmp.ge.s32.totalorder %s811_s23, 1  ;;  %s811_s23 = sphi %s853_s23, %s16_s23   ;;  %s807_s22 = sphi %s851_s22, %s1082_s22   ;;  %s803_s21 = sphi %s849_s21, %s1081_s21  }
   0x3   : > { %p30_p1 = scmp.ge.s32.totalorder %s28_s24, 2  ;;  %p244_p2 = scmp.lt.s32.totalorder %s811_s23, 3 }
   0x5   : > { %s1084_s24 = smov (%p30_p1, %s28_s24), 0  ;;  %p245_p3 = pnand %p722_p0, %p244_p2 }
   0x6   : > { %p288_p4 = scmp.lt.s32.totalorder (!%p245_p3), %s803_s21, 1 }
   0x7   : > { %248 = sbr.rel (%p245_p3) target bundleno = 441 (0x1b9), region = 44 }
   0xc   : > { %v729_v0 = vld [vmem:[%s1075_s1] sm:$0xf]  ;;  %v739_v1 = vld [vmem:[%s1075_s1] sm:$0x30]  ;;  %vm350_vm0 = vcmask 1045504   ;;  %s1086_s21 = smov (!%p288_p4, %s803_s21), 1 }
   0xd   : > { %v730_v2 = vor.u32 %v739_v1, %v729_v0  ;;  %s737_s29 = sshll.u32 %s1086_s21, 6  ;;  %vm337_vm1 = vcmask 97280   ;;  %v768_v16 = vld [vmem:[%s1076_s2] ss:$0 sm:$0xff]  ;;  %vm385_vm2 = vcmask 261120   ;;  %v813_v41 = vmov 32.0  }
   0xe   : > { %s295_s8 = scalar_lea.vmem %s1074_s0, %s737_s29  ;;  %771 = vrcp.f32 %v813_v41  ;;  %s999_s25 = scalar_lea.vmem %s1080_s6, %s737_s29 }
   0xf   : > { %v352_v3 = vsel %vm350_vm0, %v730_v2, 0  ;;  %v314_v4 = vld [vmem:[%s295_s8] sm:$0xff]  ;;  %v315_v5 = vld [vmem:[%s295_s8 + $0x8] sm:$0xff]  ;;  %v316_v6 = vld [vmem:[%s295_s8 + $0x10] sm:$0xff] }
  0x10   : > { %361 = vmatpush.bf16.msra.mxu0 %v352_v3  ;;  %740 = vmatpush.bf16.msra.mxu1 %v352_v3  ;;  %v322_v7 = vpack.c.bf16 %v315_v5, %v314_v4  ;;  %v317_v8 = vld [vmem:[%s295_s8 + $0x18] sm:$0xff]  ;;  %v318_v9 = vld [vmem:[%s295_s8 + $0x20] sm:$0xff]  ;;  %v319_v10 = vld [vmem:[%s295_s8 + $0x28] sm:$0xff] }
  0x11   : > { %741 = vmatpush.bf16.msra.mxu2 %v352_v3  ;;  %742 = vmatpush.bf16.msra.mxu3 %v352_v3  ;;  %v323_v11 = vpack.c.bf16 %v317_v8, %v316_v6  ;;  %v324_v12 = vpack.c.bf16 %v319_v10, %v318_v9  ;;  %v320_v13 = vld [vmem:[%s295_s8 + $0x30] sm:$0xff]  ;;  %v321_v14 = vld [vmem:[%s295_s8 + $0x38] sm:$0xff] }
  0x12   : > { %v325_v15 = vpack.c.bf16 %v321_v14, %v320_v13 }
  0x13   : > { %731 = vmatmul.msk.bf16.vlgmr.msra.gmra.mxu0 %vm337_vm1, %v322_v7  ;;  %732 = vmatmul.msk.bf16.vlgmr.msra.gmra.mxu1 %vm337_vm1, %v323_v11 }
  0x14   : > { %733 = vmatmul.msk.bf16.vlgmr.msra.gmra.mxu2 %vm337_vm1, %v324_v12  ;;  %734 = vmatmul.msk.bf16.vlgmr.msra.gmra.mxu3 %vm337_vm1, %v325_v15  ;;  %v772_v42 = vpop.eup %771 }
  0x15   : > { %v411_v43 = vmul.f32 32.0, %v772_v42  ;;  %vm415_vm3 = vweird.f32 %v772_v42 }
  0x17   : > { %v412_v44 = vsub.f32 1.0, %v411_v43 }
  0x19   : > { %v413_v45 = vmul.f32 %v772_v42, %v412_v44 }
  0x1b   : > { %v414_v46 = vadd.f32 %v772_v42, %v413_v45 }
  0x1d   : > { %v892_v47 = vsel %vm415_vm3, %v772_v42, %v414_v46 }
  0x90   : > { %v363_v17 = vpop.f32.mrf.mxu0  ;;  %v368_v19 = vpop.f32.mrf.mxu1 }
  0x91   : > { %v364_v18 = vadd.f32 %v768_v16, %v363_v17  ;;  %v369_v20 = vadd.f32 %v768_v16, %v368_v19 }
  0x93   : > { %v386_v21 = vsel %vm385_vm2, %v364_v18, 0.0  ;;  %v392_v22 = vsel %vm385_vm2, %v369_v20, 0.0 }
  0x94   : > { %387 = vadd.xlane.f32.xlu0 %v386_v21  ;;  %393 = vadd.xlane.f32.xlu1 %v392_v22 }
  0x97   : > { %v373_v23 = vpop.f32.mrf.mxu2  ;;  %v378_v25 = vpop.f32.mrf.mxu3 }
  0x98   : > { %v374_v24 = vadd.f32 %v768_v16, %v373_v23  ;;  %v365_v26 = vpop.f32.mrf.mxu0  ;;  %v370_v28 = vpop.f32.mrf.mxu1  ;;  %v379_v33 = vadd.f32 %v768_v16, %v378_v25 }
  0x99   : > { %v366_v27 = vadd.f32 %v768_v16, %v365_v26  ;;  %v371_v29 = vadd.f32 %v768_v16, %v370_v28 }
  0x9a   : > { %v398_v30 = vsel %vm385_vm2, %v374_v24, 0.0  ;;  %v404_v39 = vsel %vm385_vm2, %v379_v33, 0.0 }
  0x9b   : > { %399 = vadd.xlane.f32.xlu2 %v398_v30  ;;  %v389_v31 = vsel %vm385_vm2, %v366_v27, 0.0  ;;  %v395_v32 = vsel %vm385_vm2, %v371_v29, 0.0 }
  0x9c   : > { %390 = vadd.xlane.f32.xlu0 %v389_v31  ;;  %396 = vadd.xlane.f32.xlu1 %v395_v32 }
  0x9f   : > { %v375_v34 = vpop.f32.mrf.mxu2  ;;  %v380_v36 = vpop.f32.mrf.mxu3 }
  0xa0   : > { %v376_v35 = vadd.f32 %v768_v16, %v375_v34  ;;  %v381_v37 = vadd.f32 %v768_v16, %v380_v36 }
  0xa2   : > { %v401_v38 = vsel %vm385_vm2, %v376_v35, 0.0  ;;  %v407_v40 = vsel %vm385_vm2, %v381_v37, 0.0 }
  0xa3   : > { %402 = vadd.xlane.f32.xlu2 %v401_v38 }
  0xa4   : > { %405 = vadd.xlane.f32.xlu0 %v404_v39  ;;  %408 = vadd.xlane.f32.xlu1 %v407_v40 }
 0x107   : > { %v388_v48 = vpop.xlane.xlu0 %387  ;;  %v394_v49 = vpop.xlane.xlu1 %393 }
 0x108   : > { %v417_v50 = vmul.f32 %v892_v47, %v388_v48  ;;  %v419_v51 = vmul.f32 %v892_v47, %v394_v49 }
 0x10a   : > { %v896_v52 = vsub.f32 %v364_v18, %v417_v50  ;;  %v898_v53 = vsub.f32 %v369_v20, %v419_v51 }
 0x10c   : > { %v433_v54 = vmul.f32 %v896_v52, %v896_v52  ;;  %v435_v55 = vmul.f32 %v898_v53, %v898_v53 }
 0x10e   : > { %v400_v56 = vpop.xlane.xlu2 %399  ;;  %v441_v57 = vsel %vm385_vm2, %v433_v54, 0.0  ;;  %v447_v59 = vsel %vm385_vm2, %v435_v55, 0.0 }
 0x10f   : > { %v421_v58 = vmul.f32 %v892_v47, %v400_v56  ;;  %442 = vadd.xlane.f32.xlu2 %v441_v57  ;;  %v391_v60 = vpop.xlane.xlu0 %390  ;;  %448 = vadd.xlane.f32.xlu1 %v447_v59  ;;  %v397_v61 = vpop.xlane.xlu1 %396 }
 0x110   : > { %v420_v63 = vmul.f32 %v892_v47, %v397_v61  ;;  %v418_v0 = vmul.f32 %v892_v47, %v391_v60  ;;  %v964_v61 = vld [vmem:[%s1077_s3] ss:$0 sm:$0xff] }
 0x111   : > { %v907_v62 = vsub.f32 %v374_v24, %v421_v58 }
 0x112   : > { %v911_v1 = vsub.f32 %v371_v29, %v420_v63  ;;  %v915_v3 = vsub.f32 %v366_v27, %v418_v0 }
 0x113   : > { %v437_v2 = vmul.f32 %v907_v62, %v907_v62 }
 0x114   : > { %v436_v5 = vmul.f32 %v911_v1, %v911_v1  ;;  %v434_v14 = vmul.f32 %v915_v3, %v915_v3 }
 0x115   : > { %v453_v4 = vsel %vm385_vm2, %v437_v2, 0.0 }
 0x116   : > { %v403_v6 = vpop.xlane.xlu2 %402  ;;  %454 = vadd.xlane.f32.xlu0 %v453_v4  ;;  %v450_v8 = vsel %vm385_vm2, %v436_v5, 0.0  ;;  %v444_v20 = vsel %vm385_vm2, %v434_v14, 0.0 }
 0x117   : > { %v422_v7 = vmul.f32 %v892_v47, %v403_v6  ;;  %v406_v9 = vpop.xlane.xlu0 %405  ;;  %v409_v10 = vpop.xlane.xlu1 %408  ;;  %451 = vadd.xlane.f32.xlu2 %v450_v8  ;;  %v974_v6 = vld [vmem:[%s1078_s4] ss:$0 sm:$0xff] }
 0x118   : > { %v423_v11 = vmul.f32 %v892_v47, %v406_v9  ;;  %v424_v13 = vmul.f32 %v892_v47, %v409_v10 }
 0x119   : > { %v923_v12 = vsub.f32 %v376_v35, %v422_v7 }
 0x11a   : > { %v928_v15 = vsub.f32 %v379_v33, %v423_v11  ;;  %v934_v18 = vsub.f32 %v381_v37, %v424_v13 }
 0x11b   : > { %v438_v16 = vmul.f32 %v923_v12, %v923_v12 }
 0x11c   : > { %v439_v17 = vmul.f32 %v928_v15, %v928_v15  ;;  %v440_v22 = vmul.f32 %v934_v18, %v934_v18 }
 0x11d   : > { %v456_v19 = vsel %vm385_vm2, %v438_v16, 0.0 }
 0x11e   : > { %457 = vadd.xlane.f32.xlu1 %v456_v19  ;;  %445 = vadd.xlane.f32.xlu0 %v444_v20  ;;  %v459_v21 = vsel %vm385_vm2, %v439_v17, 0.0  ;;  %v462_v23 = vsel %vm385_vm2, %v440_v22, 0.0 }
 0x11f   : > { %460 = vadd.xlane.f32.xlu2 %v459_v21 }
 0x126   : > { %463 = vadd.xlane.f32.xlu0 %v462_v23 }
 0x182   : > { %v443_v24 = vpop.xlane.xlu2 %442  ;;  %v449_v25 = vpop.xlane.xlu1 %448 }
 0x183   : > { %v465_v26 = vmul.f32 %v443_v24, %v892_v47  ;;  %v467_v27 = vmul.f32 %v449_v25, %v892_v47 }
 0x185   : > { %v473_v28 = vadd.f32 1e-05, %v465_v26  ;;  %v475_v29 = vadd.f32 1e-05, %v467_v27 }
 0x187   : > { %773 = vrsqrt.f32 %v473_v28  ;;  %vm507_vm6 = vweird.f32 %v475_v29  ;;  %vm487_vm7 = vweird.f32 %v473_v28 }
 0x188   : > { %775 = vrsqrt.f32 %v475_v29 }
 0x189   : > { %v455_v30 = vpop.xlane.xlu0 %454 }
 0x18a   : > { %v469_v31 = vmul.f32 %v455_v30, %v892_v47  ;;  %v452_v32 = vpop.xlane.xlu2 %451 }
 0x18b   : > { %v468_v34 = vmul.f32 %v452_v32, %v892_v47 }
 0x18c   : > { %v945_v33 = vadd.f32 1e-05, %v469_v31 }
 0x18d   : > { %v774_v35 = vpop.eup %773  ;;  %v949_v39 = vadd.f32 1e-05, %v468_v34 }
 0x18e   : > { %v776_v36 = vpop.eup %775  ;;  %v482_v37 = vmul.f32 %v774_v35, %v473_v28  ;;  %777 = vrsqrt.f32 %v945_v33  ;;  %vm488_vm4 = vweird.f32 %v774_v35  ;;  %vm527_vm11 = vweird.f32 %v945_v33 }
 0x18f   : > { %v502_v38 = vmul.f32 %v776_v36, %v475_v29  ;;  %779 = vrsqrt.f32 %v949_v39  ;;  %vm508_vm5 = vweird.f32 %v776_v36  ;;  %vm489_vm8 = vmor %vm487_vm7, %vm488_vm4  ;;  %vm517_vm12 = vweird.f32 %v949_v39 }
 0x190   : > { %v483_v40 = vmul.f32 %v774_v35, %v482_v37  ;;  %vm509_vm9 = vmor %vm507_vm6, %vm508_vm5 }
 0x191   : > { %v503_v41 = vmul.f32 %v776_v36, %v502_v38  ;;  %v458_v42 = vpop.xlane.xlu1 %457  ;;  %v446_v43 = vpop.xlane.xlu0 %445 }
 0x192   : > { %v484_v44 = vmul.f32 0.5, %v483_v40  ;;  %v470_v45 = vmul.f32 %v458_v42, %v892_v47  ;;  %v466_v46 = vmul.f32 %v446_v43, %v892_v47  ;;  %v461_v49 = vpop.xlane.xlu2 %460 }
 0x193   : > { %v504_v48 = vmul.f32 0.5, %v503_v41  ;;  %v471_v56 = vmul.f32 %v461_v49, %v892_v47 }
 0x194   : > { %v778_v50 = vpop.eup %777  ;;  %v485_v51 = vsub.f32 1.5, %v484_v44  ;;  %v954_v54 = vadd.f32 1e-05, %v470_v45  ;;  %v956_v55 = vadd.f32 1e-05, %v466_v46 }
 0x195   : > { %v505_v57 = vsub.f32 1.5, %v504_v48  ;;  %v522_v58 = vmul.f32 %v778_v50, %v945_v33  ;;  %v780_v60 = vpop.eup %779  ;;  %v968_v2 = vadd.f32 1e-05, %v471_v56  ;;  %vm528_vm10 = vweird.f32 %v778_v50 }
 0x196   : > { %v486_v59 = vmul.f32 %v774_v35, %v485_v51  ;;  %781 = vrsqrt.f32 %v954_v54  ;;  %v512_v5 = vmul.f32 %v780_v60, %v949_v39  ;;  %vm529_vm13 = vmor %vm527_vm11, %vm528_vm10  ;;  %vm518_vm14 = vweird.f32 %v780_v60 }
 0x197   : > { %v506_v63 = vmul.f32 %v776_v36, %v505_v57  ;;  %v523_v0 = vmul.f32 %v778_v50, %v522_v58  ;;  %783 = vrsqrt.f32 %v956_v55  ;;  %vm519_vm15 = vmor %vm517_vm12, %vm518_vm14  ;;  %vm537_vm3 = vweird.f32 %v954_v54 }
 0x198   : > { %v490_v4 = vsel %vm489_vm8, %v774_v35, %v486_v59  ;;  %785 = vrsqrt.f32 %v968_v2  ;;  %v513_v13 = vmul.f32 %v780_v60, %v512_v5  ;;  %vm497_vm5 = vweird.f32 %v956_v55 }
 0x199   : > { %v510_v7 = vsel %vm509_vm9, %v776_v36, %v506_v63  ;;  %v561_v8 = vmul.f32 %v490_v4, %v896_v52  ;;  %v524_v9 = vmul.f32 0.5, %v523_v0  ;;  %v464_v10 = vpop.xlane.xlu0 %463  ;;  %v591_v52 = vld [vmem:[%s1079_s5] sm:$0xff]  ;;  %vm547_vm8 = vweird.f32 %v968_v2 }
 0x19a   : > { %v563_v11 = vmul.f32 %v510_v7, %v898_v53  ;;  %v472_v14 = vmul.f32 %v464_v10, %v892_v47  ;;  %v514_v21 = vmul.f32 0.5, %v513_v13  ;;  %v593_v47 = vld [vmem:[%s1079_s5 + $0x10] sm:$0xff]  ;;  %v596_v10 = vld [vmem:[%s1079_s5 + $0x28] sm:$0xff] }
 0x19b   : > { %v572_v16 = vmul.f32 %v964_v61, %v561_v8  ;;  %v525_v17 = vsub.f32 1.5, %v524_v9 }
 0x19c   : > { %v782_v19 = vpop.eup %781  ;;  %v574_v20 = vmul.f32 %v964_v61, %v563_v11  ;;  %v986_v22 = vadd.f32 1e-05, %v472_v14  ;;  %v515_v27 = vsub.f32 1.5, %v514_v21  ;;  %v597_v21 = vld [vmem:[%s1079_s5 + $0x30] sm:$0xff] }
 0x19d   : > { %v784_v53 = vpop.eup %783  ;;  %v583_v23 = vadd.f32 %v974_v6, %v572_v16  ;;  %v526_v24 = vmul.f32 %v778_v50, %v525_v17  ;;  %v532_v25 = vmul.f32 %v782_v19, %v954_v54  ;;  %vm538_vm0 = vweird.f32 %v782_v19 }
 0x19e   : > { %v585_v26 = vadd.f32 %v974_v6, %v574_v20  ;;  %v492_v28 = vmul.f32 %v784_v53, %v956_v55  ;;  %v786_v29 = vpop.eup %785  ;;  %787 = vrsqrt.f32 %v986_v22  ;;  %v516_v35 = vmul.f32 %v780_v60, %v515_v27  ;;  %vm539_vm4 = vmor %vm537_vm3, %vm538_vm0 }
 0x19f   : > { %v599_v30 = vadd.f32 %v591_v52, %v583_v23  ;;  %v530_v31 = vsel %vm529_vm13, %v778_v50, %v526_v24  ;;  %v533_v32 = vmul.f32 %v782_v19, %v532_v25  ;;  %v542_v38 = vmul.f32 %v786_v29, %v968_v2 }
 0x1a0   : > { %v601_v33 = vadd.f32 %v593_v47, %v585_v26  ;;  %v565_v34 = vmul.f32 %v530_v31, %v907_v62  ;;  %v493_v36 = vmul.f32 %v784_v53, %v492_v28  ;;  %v520_v41 = vsel %vm519_vm15, %v780_v60, %v516_v35  ;;  %v595_v62 = vld [vmem:[%s1079_s5 + $0x20] sm:$0xff] }
 0x1a1   : > { %607 = vst.msk [vmem:[%s999_s25] sm:$0xff] %vm385_vm2, %v599_v30  ;;  %v534_v37 = vmul.f32 0.5, %v533_v32  ;;  %v564_v43 = vmul.f32 %v520_v41, %v911_v1  ;;  %v543_v45 = vmul.f32 %v786_v29, %v542_v38  ;;  %vm498_vm1 = vweird.f32 %v784_v53  ;;  %v594_v1 = vld [vmem:[%s1079_s5 + $0x18] sm:$0xff] }
 0x1a2   : > { %609 = vst.msk [vmem:[%s999_s25 + $0x10] sm:$0xff] %vm385_vm2, %v601_v33  ;;  %v576_v40 = vmul.f32 %v964_v61, %v565_v34  ;;  %v494_v42 = vmul.f32 0.5, %v493_v36  ;;  %vm499_vm6 = vmor %vm497_vm5, %vm498_vm1  ;;  %vm548_vm7 = vweird.f32 %v786_v29  ;;  %vm557_vm11 = vweird.f32 %v986_v22 }
 0x1a3   : > { %v535_v44 = vsub.f32 1.5, %v534_v37  ;;  %v575_v49 = vmul.f32 %v964_v61, %v564_v43  ;;  %v544_v51 = vmul.f32 0.5, %v543_v45  ;;  %vm549_vm9 = vmor %vm547_vm8, %vm548_vm7 }
 0x1a4   : > { %v587_v39 = vadd.f32 %v974_v6, %v576_v40  ;;  %v495_v46 = vsub.f32 1.5, %v494_v42  ;;  %v788_v48 = vpop.eup %787 }
 0x1a5   : > { %v536_v50 = vmul.f32 %v782_v19, %v535_v44  ;;  %v552_v58 = vmul.f32 %v788_v48, %v986_v22  ;;  %v586_v59 = vadd.f32 %v974_v6, %v575_v49  ;;  %v545_v63 = vsub.f32 1.5, %v544_v51  ;;  %v598_v22 = vld [vmem:[%s1079_s5 + $0x38] sm:$0xff] }
 0x1a6   : > { %v603_v56 = vadd.f32 %v595_v62, %v587_v39  ;;  %v496_v57 = vmul.f32 %v784_v53, %v495_v46  ;;  %vm558_vm10 = vweird.f32 %v788_v48 }
 0x1a7   : > { %v540_v60 = vsel %vm539_vm4, %v782_v19, %v536_v50  ;;  %v553_v4 = vmul.f32 %v788_v48, %v552_v58  ;;  %v602_v5 = vadd.f32 %v594_v1, %v586_v59  ;;  %v546_v8 = vmul.f32 %v786_v29, %v545_v63  ;;  %vm559_vm12 = vmor %vm557_vm11, %vm558_vm10 }
 0x1a8   : > { %611 = vst.msk [vmem:[%s999_s25 + $0x20] sm:$0xff] %vm385_vm2, %v603_v56  ;;  %v566_v54 = vmul.f32 %v540_v60, %v923_v12  ;;  %v500_v0 = vsel %vm499_vm6, %v784_v53, %v496_v57 }
 0x1a9   : > { %v562_v7 = vmul.f32 %v500_v0, %v915_v3  ;;  %v554_v9 = vmul.f32 0.5, %v553_v4  ;;  %610 = vst.msk [vmem:[%s999_s25 + $0x18] sm:$0xff] %vm385_vm2, %v602_v5  ;;  %v550_v11 = vsel %vm549_vm9, %v786_v29, %v546_v8  ;;  %v592_v3 = vld [vmem:[%s1079_s5 + $0x8] sm:$0xff] }
 0x1aa   : > { %v577_v55 = vmul.f32 %v964_v61, %v566_v54  ;;  %v567_v2 = vmul.f32 %v550_v11, %v928_v15 }
 0x1ab   : > { %v573_v12 = vmul.f32 %v964_v61, %v562_v7  ;;  %v555_v14 = vsub.f32 1.5, %v554_v9 }
 0x1ac   : > { %v588_v13 = vadd.f32 %v974_v6, %v577_v55  ;;  %v578_v19 = vmul.f32 %v964_v61, %v567_v2 }
 0x1ad   : > { %v584_v16 = vadd.f32 %v974_v6, %v573_v12  ;;  %v556_v20 = vmul.f32 %v788_v48, %v555_v14 }
 0x1ae   : > { %v604_v17 = vadd.f32 %v596_v10, %v588_v13  ;;  %v589_v15 = vadd.f32 %v974_v6, %v578_v19 }
 0x1af   : > { %v600_v52 = vadd.f32 %v592_v3, %v584_v16  ;;  %v560_v53 = vsel %vm559_vm12, %v788_v48, %v556_v20 }
 0x1b0   : > { %612 = vst.msk [vmem:[%s999_s25 + $0x28] sm:$0xff] %vm385_vm2, %v604_v17  ;;  %v568_v47 = vmul.f32 %v560_v53, %v934_v18  ;;  %v605_v23 = vadd.f32 %v597_v21, %v589_v15 }
 0x1b1   : > { %608 = vst.msk [vmem:[%s999_s25 + $0x8] sm:$0xff] %vm385_vm2, %v600_v52 }
 0x1b2   : > { %v579_v24 = vmul.f32 %v964_v61, %v568_v47  ;;  %613 = vst.msk [vmem:[%s999_s25 + $0x30] sm:$0xff] %vm385_vm2, %v605_v23 }
 0x1b4   : > { %v590_v25 = vadd.f32 %v974_v6, %v579_v24 }
 0x1b6   : > { %v606_v26 = vadd.f32 %v598_v22, %v590_v25 }
 0x1b8   : > { %614 = vst.msk [vmem:[%s999_s25 + $0x38] sm:$0xff] %vm385_vm2, %v606_v26 }
 0x1b9 PF: > { %s16_s23 = sadd.s32 1, %s811_s23   ;;  %s1081_s21 = smov %s807_s22 }
 0x1ba   : > { %p13_p5 = scmp.ge.s32.totalorder %s16_s23, 4   ;;  %s1082_s22 = smov %s1084_s24 }
 0x1bc   :  { %15 = sbr.rel (!%p13_p5) target bundleno = 2 (0x2), region = 77 }

// kernel: _lambda_.9
= control target key start
LH: loop header
LB: loop body
LE: loop exit
PB: predicated region body
PF: predicated region fallthrough
CT: control target
= control target key end

     0   :  { %s1326_s30 = smov 0   ;;  %s1328_s10 = smov 0   ;;  %s1606_s0 = inlined_call_operand.vmem [shape: f32[2,64,32], index: 0, kind: input, shape index: {}, may-alias: {0,9}]   ;;  %s1607_s1 = inlined_call_operand.vmem [shape: bf16[2,16,32], index: 1, kind: input, shape index: {}]   ;;  %s1608_s2 = inlined_call_operand.vmem [shape: bf16[2,16,32], index: 2, kind: input, shape index: {}]   ;;  %s1609_s3 = inlined_call_operand.vmem [shape: f32[1,32], index: 3, kind: input, shape index: {}]   ;;  %s1610_s4 = inlined_call_operand.vmem [shape: f32[1,32], index: 4, kind: input, shape index: {}]   ;;  %s1611_s5 = inlined_call_operand.vmem [shape: bf16[32,32], index: 5, kind: input, shape index: {}]   ;;  %s1612_s6 = inlined_call_operand.vmem [shape: f32[1,32], index: 6, kind: input, shape index: {}]   ;;  %s1613_s7 = inlined_call_operand.vmem [shape: bf16[32,32], index: 7, kind: input, shape index: {}]   ;;  %s1614_s8 = inlined_call_operand.vmem [shape: f32[1,32], index: 8, kind: input, shape index: {}]   ;;  %s1615_s9 = inlined_call_operand.vmem [shape: f32[2,64,32], index: 9, kind: output, shape index: {}, may-alias: {0,9}]  }
   0x1   :  { %s1330_s11 = smov 0  }
   0x2 LB: > { %s31_s12 = sadd.s32 1, %s1269_s10  ;;  %p1111_p0 = scmp.ge.s32.totalorder %s1273_s11, 1  ;;  %s1273_s11 = sphi %s1330_s11, %s19_s11   ;;  %s1269_s10 = sphi %s1328_s10, %s1617_s10   ;;  %s1265_s30 = sphi %s1326_s30, %s1616_s30  }
   0x3   : > { %p33_p1 = scmp.ge.s32.totalorder %s31_s12, 2  ;;  %p328_p2 = scmp.lt.s32.totalorder %s1273_s11, 3 }
   0x5   : > { %s1619_s12 = smov (%p33_p1, %s31_s12), 0  ;;  %p329_p3 = pnand %p1111_p0, %p328_p2 }
   0x6   : > { %p383_p4 = scmp.lt.s32.totalorder (!%p329_p3), %s1265_s30, 1 }
   0x7   : > { %332 = sbr.rel (%p329_p3) target bundleno = 1243 (0x4db), region = 56 }
   0xc   : > { %s1621_s30 = smov (!%p383_p4, %s1265_s30), 1  ;;  %vm423_vm0 = vcmask 261120   ;;  %v1275_v14 = vmov 32.0   ;;  %v1167_v58 = vld [vmem:[%s1611_s5 + $0x8] sm:$0xff]  ;;  %v1166_v62 = vld [vmem:[%s1611_s5] sm:$0xff] }
   0xd   : > { %s1162_s13 = sshll.u32 %s1621_s30, 6  ;;  %1201 = vrcp.f32 %v1275_v14  ;;  %671 = vmatpush.bf16.msra.mxu0 %v1167_v58  ;;  %s1163_s25 = sshll.u32 %s1621_s30, 3 }
   0xe   : > { %s1352_s16 = scalar_lea.vmem %s1606_s0, %s1162_s13  ;;  %s396_s28 = scalar_lea.vmem %s1607_s1, %s1163_s25 }
   0xf   : > { %v1355_v0 = vld [vmem:[%s1352_s16 + $0x20] sm:$0xff]  ;;  %v1358_v1 = vld [vmem:[%s1352_s16 + $0x10] sm:$0xff]  ;;  %v1370_v6 = vld [vmem:[%s1352_s16 + $0x28] sm:$0xff]  ;;  %s401_s17 = scalar_lea.vmem %s1608_s2, %s1163_s25  ;;  %s410_s26 = scalar_lea.vmem %s1615_s9, %s1162_s13 }
  0x10   : > { %v1361_v2 = vld [vmem:[%s1352_s16] sm:$0xff]  ;;  %v436_v3 = vsel %vm423_vm0, %v1355_v0, 0.0  ;;  %v430_v4 = vsel %vm423_vm0, %v1358_v1, 0.0  ;;  %v1373_v7 = vld [vmem:[%s1352_s16 + $0x18] sm:$0xff]  ;;  %v1376_v8 = vld [vmem:[%s1352_s16 + $0x8] sm:$0xff]  ;;  %v439_v9 = vsel %vm423_vm0, %v1370_v6, 0.0 }
  0x11   : > { %v424_v5 = vsel %vm423_vm0, %v1361_v2, 0.0  ;;  %437 = vadd.xlane.f32.xlu2 %v436_v3  ;;  %431 = vadd.xlane.f32.xlu1 %v430_v4  ;;  %v433_v10 = vsel %vm423_vm0, %v1373_v7, 0.0  ;;  %v427_v11 = vsel %vm423_vm0, %v1376_v8, 0.0  ;;  %v1385_v12 = vld [vmem:[%s1352_s16 + $0x30] sm:$0xff]  ;;  %v1406_v36 = vld [vmem:[%s1352_s16 + $0x38] sm:$0xff] }
  0x12   : > { %425 = vadd.xlane.f32.xlu0 %v424_v5  ;;  %v442_v13 = vsel %vm423_vm0, %v1385_v12, 0.0  ;;  %v445_v41 = vsel %vm423_vm0, %v1406_v36, 0.0  ;;  %672 = vmatpush.bf16.msra.mxu0 %v1166_v62 }
  0x13   : > { %v1202_v15 = vpop.eup %1201 }
  0x14   : > { %v449_v16 = vmul.f32 32.0, %v1202_v15  ;;  %vm453_vm1 = vweird.f32 %v1202_v15 }
  0x16   : > { %v450_v17 = vsub.f32 1.0, %v449_v16 }
  0x18   : > { %v451_v18 = vmul.f32 %v1202_v15, %v450_v17 }
  0x19   : > { %440 = vadd.xlane.f32.xlu2 %v439_v9  ;;  %434 = vadd.xlane.f32.xlu1 %v433_v10 }
  0x1a   : > { %428 = vadd.xlane.f32.xlu0 %v427_v11  ;;  %v452_v19 = vadd.f32 %v1202_v15, %v451_v18 }
  0x1c   : > { %v1389_v20 = vsel %vm453_vm1, %v1202_v15, %v452_v19 }
  0x21   : > { %443 = vadd.xlane.f32.xlu2 %v442_v13 }
  0x84   : > { %v438_v21 = vpop.xlane.xlu2 %437  ;;  %v432_v22 = vpop.xlane.xlu1 %431 }
  0x85   : > { %v426_v23 = vpop.xlane.xlu0 %425  ;;  %v459_v32 = vmul.f32 %v1389_v20, %v438_v21  ;;  %v457_v33 = vmul.f32 %v1389_v20, %v432_v22 }
  0x86   : > { %v455_v24 = vmul.f32 %v1389_v20, %v426_v23 }
  0x87   : > { %v1414_v39 = vsub.f32 %v1355_v0, %v459_v32  ;;  %v1417_v40 = vsub.f32 %v1358_v1, %v457_v33 }
  0x88   : > { %v1393_v25 = vsub.f32 %v1361_v2, %v455_v24 }
  0x89   : > { %v475_v48 = vmul.f32 %v1414_v39, %v1414_v39  ;;  %v473_v49 = vmul.f32 %v1417_v40, %v1417_v40 }
  0x8a   : > { %v471_v26 = vmul.f32 %v1393_v25, %v1393_v25 }
  0x8b   : > { %v491_v53 = vsel %vm423_vm0, %v475_v48, 0.0  ;;  %v485_v54 = vsel %vm423_vm0, %v473_v49, 0.0 }
  0x8c   : > { %v441_v27 = vpop.xlane.xlu2 %440  ;;  %v435_v28 = vpop.xlane.xlu1 %434  ;;  %v479_v29 = vsel %vm423_vm0, %v471_v26, 0.0 }
  0x8d   : > { %v458_v30 = vmul.f32 %v1389_v20, %v435_v28  ;;  %480 = vadd.xlane.f32.xlu0 %v479_v29  ;;  %v429_v31 = vpop.xlane.xlu0 %428  ;;  %v460_v47 = vmul.f32 %v1389_v20, %v441_v27 }
  0x8e   : > { %v456_v34 = vmul.f32 %v1389_v20, %v429_v31 }
  0x8f   : > { %v1403_v35 = vsub.f32 %v1373_v7, %v458_v30  ;;  %v1437_v52 = vsub.f32 %v1370_v6, %v460_v47 }
  0x90   : > { %v1409_v37 = vsub.f32 %v1376_v8, %v456_v34 }
  0x91   : > { %v474_v38 = vmul.f32 %v1403_v35, %v1403_v35  ;;  %v476_v56 = vmul.f32 %v1437_v52, %v1437_v52 }
  0x92   : > { %v472_v42 = vmul.f32 %v1409_v37, %v1409_v37 }
  0x93   : > { %v488_v43 = vsel %vm423_vm0, %v474_v38, 0.0  ;;  %v494_v57 = vsel %vm423_vm0, %v476_v56, 0.0 }
  0x94   : > { %v444_v44 = vpop.xlane.xlu2 %443  ;;  %489 = vadd.xlane.f32.xlu2 %v488_v43  ;;  %v482_v45 = vsel %vm423_vm0, %v472_v42, 0.0 }
  0x95   : > { %v461_v46 = vmul.f32 %v1389_v20, %v444_v44  ;;  %446 = vadd.xlane.f32.xlu0 %v445_v41  ;;  %483 = vadd.xlane.f32.xlu1 %v482_v45 }
  0x97   : > { %v1432_v50 = vsub.f32 %v1385_v12, %v461_v46 }
  0x99   : > { %v477_v51 = vmul.f32 %v1432_v50, %v1432_v50 }
  0x9b   : > { %v497_v55 = vsel %vm423_vm0, %v477_v51, 0.0 }
  0x9c   : > { %498 = vadd.xlane.f32.xlu2 %v497_v55 }
  0x9d   : > { %492 = vadd.xlane.f32.xlu0 %v491_v53  ;;  %486 = vadd.xlane.f32.xlu1 %v485_v54  ;;  %v1476_v54 = vld [vmem:[%s1609_s3] ss:$0 sm:$0xff] }
  0xa5   : > { %495 = vadd.xlane.f32.xlu1 %v494_v57 }
 0x100   : > { %v481_v59 = vpop.xlane.xlu0 %480 }
 0x101   : > { %v503_v60 = vmul.f32 %v481_v59, %v1389_v20 }
 0x103   : > { %v511_v61 = vadd.f32 1e-06, %v503_v60 }
 0x105   : > { %1203 = vrsqrt.f32 %v511_v61  ;;  %vm525_vm3 = vweird.f32 %v511_v61 }
 0x107   : > { %v490_v63 = vpop.xlane.xlu2 %489 }
 0x108   : > { %v506_v3 = vmul.f32 %v490_v63, %v1389_v20  ;;  %v484_v4 = vpop.xlane.xlu1 %483  ;;  %v447_v5 = vpop.xlane.xlu0 %446 }
 0x109   : > { %v504_v9 = vmul.f32 %v484_v4, %v1389_v20  ;;  %v462_v10 = vmul.f32 %v1389_v20, %v447_v5 }
 0x10a   : > { %v1455_v11 = vadd.f32 1e-06, %v506_v3 }
 0x10b   : > { %v1204_v13 = vpop.eup %1203  ;;  %v512_v14 = vadd.f32 1e-06, %v504_v9  ;;  %v1458_v15 = vsub.f32 %v1406_v36, %v462_v10 }
 0x10c   : > { %v520_v16 = vmul.f32 %v1204_v13, %v511_v61  ;;  %1205 = vrsqrt.f32 %v1455_v11  ;;  %vm526_vm2 = vweird.f32 %v1204_v13  ;;  %vm555_vm10 = vweird.f32 %v1455_v11 }
 0x10d   : > { %1207 = vrsqrt.f32 %v512_v14  ;;  %v478_v17 = vmul.f32 %v1458_v15, %v1458_v15  ;;  %vm527_vm4 = vmor %vm525_vm3, %vm526_vm2  ;;  %vm535_vm5 = vweird.f32 %v512_v14 }
 0x10e   : > { %v521_v18 = vmul.f32 %v1204_v13, %v520_v16 }
 0x10f   : > { %v500_v19 = vsel %vm423_vm0, %v478_v17, 0.0 }
 0x110   : > { %v522_v21 = vmul.f32 0.5, %v521_v18  ;;  %v487_v22 = vpop.xlane.xlu1 %486  ;;  %501 = vadd.xlane.f32.xlu0 %v500_v19  ;;  %v493_v24 = vpop.xlane.xlu0 %492 }
 0x111   : > { %v505_v23 = vmul.f32 %v487_v22, %v1389_v20  ;;  %v507_v31 = vmul.f32 %v493_v24, %v1389_v20 }
 0x112   : > { %v1465_v26 = vpop.eup %1205  ;;  %v523_v27 = vsub.f32 1.5, %v522_v21 }
 0x113   : > { %v1208_v28 = vpop.eup %1207  ;;  %v513_v29 = vadd.f32 1e-06, %v505_v23  ;;  %v550_v33 = vmul.f32 %v1465_v26, %v1455_v11  ;;  %v515_v41 = vadd.f32 1e-06, %v507_v31  ;;  %vm556_vm11 = vweird.f32 %v1465_v26 }
 0x114   : > { %v530_v30 = vmul.f32 %v1208_v28, %v512_v14  ;;  %v524_v32 = vmul.f32 %v1204_v13, %v523_v27  ;;  %vm536_vm6 = vweird.f32 %v1208_v28  ;;  %vm557_vm13 = vmor %vm555_vm10, %vm556_vm11  ;;  %vm759_vm11 = vcmask 130048  }
 0x115   : > { %1209 = vrsqrt.f32 %v513_v29  ;;  %v551_v44 = vmul.f32 %v1465_v26, %v550_v33  ;;  %vm537_vm7 = vmor %vm535_vm5, %vm536_vm6  ;;  %vm545_vm8 = vweird.f32 %v513_v29  ;;  %vm565_vm1 = vweird.f32 %v515_v41 }
 0x116   : > { %v531_v34 = vmul.f32 %v1208_v28, %v530_v30  ;;  %v528_v43 = vsel %vm527_vm4, %v1204_v13, %v524_v32  ;;  %1211 = vrsqrt.f32 %v515_v41 }
 0x117   : > { %v599_v49 = vmul.f32 %v528_v43, %v1393_v25  ;;  %v552_v55 = vmul.f32 0.5, %v551_v44  ;;  %v1483_v25 = vld [vmem:[%s1610_s4] ss:$0 sm:$0xff] }
 0x118   : > { %v532_v38 = vmul.f32 0.5, %v531_v34  ;;  %v496_v42 = vpop.xlane.xlu1 %495 }
 0x119   : > { %v508_v45 = vmul.f32 %v496_v42, %v1389_v20  ;;  %v610_v60 = vmul.f32 %v1476_v54, %v599_v49  ;;  %v553_v61 = vsub.f32 1.5, %v552_v55 }
 0x11a   : > { %v533_v46 = vsub.f32 1.5, %v532_v38 }
 0x11b   : > { %v1210_v47 = vpop.eup %1209  ;;  %v516_v48 = vadd.f32 1e-06, %v508_v45  ;;  %v621_v9 = vadd.f32 %v1483_v25, %v610_v60  ;;  %v554_v10 = vmul.f32 %v1465_v26, %v553_v61 }
 0x11c   : > { %v534_v51 = vmul.f32 %v1208_v28, %v533_v46  ;;  %v540_v53 = vmul.f32 %v1210_v47, %v513_v29  ;;  %vm546_vm9 = vweird.f32 %v1210_v47  ;;  %v1212_v63 = vpop.eup %1211 }
 0x11d   : > { %1213 = vrsqrt.f32 %v516_v48  ;;  %vm547_vm12 = vmor %vm545_vm8, %vm546_vm9  ;;  %v560_v13 = vmul.f32 %v1212_v63, %v515_v41  ;;  %v558_v11 = vsel %vm557_vm13, %v1465_v26, %v554_v10  ;;  %vm575_vm14 = vweird.f32 %v516_v48 }
 0x11e   : > { %v538_v56 = vsel %vm537_vm7, %v1208_v28, %v534_v51  ;;  %v541_v57 = vmul.f32 %v1210_v47, %v540_v53  ;;  %v602_v23 = vmul.f32 %v558_v11, %v1403_v35  ;;  %vm566_vm2 = vweird.f32 %v1212_v63 }
 0x11f   : > { %v600_v58 = vmul.f32 %v538_v56, %v1409_v37  ;;  %v561_v19 = vmul.f32 %v1212_v63, %v560_v13  ;;  %vm567_vm4 = vmor %vm565_vm1, %vm566_vm2 }
 0x120   : > { %v542_v59 = vmul.f32 0.5, %v541_v57  ;;  %v613_v29 = vmul.f32 %v1476_v54, %v602_v23 }
 0x121   : > { %v611_v62 = vmul.f32 %v1476_v54, %v600_v58  ;;  %v562_v24 = vmul.f32 0.5, %v561_v19  ;;  %v1168_v58 = vld [vmem:[%s396_s28] sm:$0xff] }
 0x122   : > { %v543_v3 = vsub.f32 1.5, %v542_v59  ;;  %v728_v60 = vsel %vm423_vm0, %v1168_v58, 0 }
 0x123   : > { %v622_v37 = vadd.f32 %v1483_v25, %v611_v62  ;;  %v1214_v4 = vpop.eup %1213  ;;  %v563_v30 = vsub.f32 1.5, %v562_v24  ;;  %737 = vmatpush.bf16.xpose.msra.mxu1 %v728_v60 }
 0x124   : > { %v544_v5 = vmul.f32 %v1210_v47, %v543_v3  ;;  %v570_v14 = vmul.f32 %v1214_v4, %v516_v48  ;;  %vm576_vm15 = vweird.f32 %v1214_v4 }
 0x125   : > { %v629_v16 = vpack.c.bf16 %v622_v37, %v621_v9  ;;  %vm577_vm3 = vmor %vm575_vm14, %vm576_vm15  ;;  %v564_v32 = vmul.f32 %v1212_v63, %v563_v30 }
 0x126   : > { %v548_v17 = vsel %vm547_vm12, %v1210_v47, %v544_v5  ;;  %v571_v18 = vmul.f32 %v1214_v4, %v570_v14  ;;  %v499_v47 = vpop.xlane.xlu2 %498 }
 0x127   : > { %1128 = vmatmul.msk.bf16.vlgmr.msra.gmra.mxu0 %vm423_vm0, %v629_v16  ;;  %v601_v21 = vmul.f32 %v548_v17, %v1417_v40  ;;  %v624_v40 = vadd.f32 %v1483_v25, %v613_v29  ;;  %v568_v34 = vsel %vm567_vm4, %v1212_v63, %v564_v32  ;;  %v509_v48 = vmul.f32 %v499_v47, %v1389_v20 }
 0x128   : > { %v572_v22 = vmul.f32 0.5, %v571_v18  ;;  %v603_v42 = vmul.f32 %v568_v34, %v1414_v39 }
 0x129   : > { %v612_v27 = vmul.f32 %v1476_v54, %v601_v21  ;;  %v517_v49 = vadd.f32 1e-06, %v509_v48 }
 0x12a   : > { %v573_v28 = vsub.f32 1.5, %v572_v22  ;;  %v614_v41 = vmul.f32 %v1476_v54, %v603_v42 }
 0x12b   : > { %v623_v31 = vadd.f32 %v1483_v25, %v612_v27  ;;  %1215 = vrsqrt.f32 %v517_v49  ;;  %vm585_vm5 = vweird.f32 %v517_v49 }
 0x12c   : > { %v574_v26 = vmul.f32 %v1214_v4, %v573_v28  ;;  %v625_v45 = vadd.f32 %v1483_v25, %v614_v41 }
 0x12d   : > { %v630_v35 = vpack.c.bf16 %v624_v40, %v623_v31 }
 0x12e   : > { %v578_v33 = vsel %vm577_vm3, %v1214_v4, %v574_v26 }
 0x12f   : > { %v604_v38 = vmul.f32 %v578_v33, %v1437_v52 }
 0x131   : > { %v615_v43 = vmul.f32 %v1476_v54, %v604_v38  ;;  %v1216_v52 = vpop.eup %1215 }
 0x132   : > { %v580_v39 = vmul.f32 %v1216_v52, %v517_v49  ;;  %vm586_vm6 = vweird.f32 %v1216_v52 }
 0x133   : > { %v626_v44 = vadd.f32 %v1483_v25, %v615_v43  ;;  %vm587_vm7 = vmor %vm585_vm5, %vm586_vm6 }
 0x134   : > { %v581_v51 = vmul.f32 %v1216_v52, %v580_v39 }
 0x135   : > { %v631_v46 = vpack.c.bf16 %v626_v44, %v625_v45 }
 0x136   : > { %v582_v57 = vmul.f32 0.5, %v581_v51 }
 0x137   : > { %1129 = vmatmul.msk.bf16.gmra.mxu0 %vm423_vm0, %v630_v35 }
 0x138   : > { %v583_v59 = vsub.f32 1.5, %v582_v57 }
 0x13a   : > { %v584_v62 = vmul.f32 %v1216_v52, %v583_v59 }
 0x13c   : > { %v588_v3 = vsel %vm587_vm7, %v1216_v52, %v584_v62 }
 0x13d   : > { %v605_v5 = vmul.f32 %v588_v3, %v1432_v50  ;;  %v1199_v50 = vld [vmem:[%s1612_s6] ss:$0 sm:$0xff] }
 0x13f   : > { %v616_v14 = vmul.f32 %v1476_v54, %v605_v5 }
 0x141   : > { %v627_v17 = vadd.f32 %v1483_v25, %v616_v14 }
 0x147   : > { %1130 = vmatmul.msk.bf16.gmra.mxu0 %vm423_vm0, %v631_v46 }
 0x183   : > { %v502_v53 = vpop.xlane.xlu0 %501 }
 0x184   : > { %v510_v55 = vmul.f32 %v502_v53, %v1389_v20 }
 0x186   : > { %v518_v56 = vadd.f32 1e-06, %v510_v55 }
 0x188   : > { %1217 = vrsqrt.f32 %v518_v56  ;;  %vm595_vm9 = vweird.f32 %v518_v56 }
 0x18e   : > { %v1218_v61 = vpop.eup %1217 }
 0x18f   : > { %v590_v63 = vmul.f32 %v1218_v61, %v518_v56  ;;  %vm596_vm8 = vweird.f32 %v1218_v61 }
 0x190   : > { %vm597_vm10 = vmor %vm595_vm9, %vm596_vm8 }
 0x191   : > { %v591_v20 = vmul.f32 %v1218_v61, %v590_v63 }
 0x193   : > { %v592_v37 = vmul.f32 0.5, %v591_v20 }
 0x195   : > { %v593_v4 = vsub.f32 1.5, %v592_v37 }
 0x197   : > { %v594_v9 = vmul.f32 %v1218_v61, %v593_v4 }
 0x199   : > { %v598_v10 = vsel %vm597_vm10, %v1218_v61, %v594_v9 }
 0x19a   : > { %v606_v13 = vmul.f32 %v598_v10, %v1458_v15 }
 0x19c   : > { %v617_v16 = vmul.f32 %v1476_v54, %v606_v13 }
 0x19e   : > { %v628_v18 = vadd.f32 %v1483_v25, %v617_v16 }
 0x1a0   : > { %v632_v11 = vpack.c.bf16 %v628_v18, %v627_v17 }
 0x1a2   : > { %1131 = vmatmul.msk.bf16.gmra.mxu0 %vm423_vm0, %v632_v11 }
 0x1a4   : > { %v674_v19 = vpop.f32.mrf.mxu0 }
 0x1a5   : > { %v675_v21 = vadd.f32 %v1199_v50, %v674_v19 }
 0x1a7   : > { %v694_v15 = vmul.f32 0.17677669, %v675_v21 }
 0x1ac   : > { %v676_v22 = vpop.f32.mrf.mxu0 }
 0x1ad   : > { %v677_v23 = vadd.f32 %v1199_v50, %v676_v22 }
 0x1af   : > { %v695_v24 = vmul.f32 0.17677669, %v677_v23 }
 0x1b1   : > { %v706_v27 = vpack.c.bf16 %v695_v24, %v694_v15 }
 0x1b3   : > { %1136 = vmatmul.msk.bf16.vlgmr.msra.gmra.mxu1 %vm423_vm0, %v706_v27 }
 0x1b4   : > { %v679_v54 = vpop.f32.mrf.mxu0 }
 0x1b5   : > { %v680_v28 = vadd.f32 %v1199_v50, %v679_v54 }
 0x1b7   : > { %v696_v30 = vmul.f32 0.17677669, %v680_v28 }
 0x1bc   : > { %v681_v29 = vpop.f32.mrf.mxu0 }
 0x1bd   : > { %v682_v25 = vadd.f32 %v1199_v50, %v681_v29 }
 0x1bf   : > { %v697_v31 = vmul.f32 0.17677669, %v682_v25 }
 0x1c1   : > { %v707_v26 = vpack.c.bf16 %v697_v31, %v696_v30 }
 0x1c3   : > { %1137 = vmatmul.msk.bf16.gmra.mxu1 %vm423_vm0, %v707_v26 }
 0x1c4   : > { %v684_v40 = vpop.f32.mrf.mxu0 }
 0x1c5   : > { %v685_v32 = vadd.f32 %v1199_v50, %v684_v40 }
 0x1c7   : > { %v698_v34 = vmul.f32 0.17677669, %v685_v32 }
 0x1cc   : > { %v686_v35 = vpop.f32.mrf.mxu0 }
 0x1cd   : > { %v687_v33 = vadd.f32 %v1199_v50, %v686_v35 }
 0x1cf   : > { %v699_v38 = vmul.f32 0.17677669, %v687_v33 }
 0x1d1   : > { %v708_v42 = vpack.c.bf16 %v699_v38, %v698_v34  ;;  %v1169_v34 = vld [vmem:[%s401_s17] sm:$0xff] }
 0x1d2   : > { %877 = vmatpush.bf16.msra.mxu2 %v1169_v34 }
 0x1d3   : > { %1138 = vmatmul.msk.bf16.gmra.mxu1 %vm423_vm0, %v708_v42 }
 0x21f   : > { %v689_v43 = vpop.f32.mrf.mxu0 }
 0x220   : > { %v690_v41 = vadd.f32 %v1199_v50, %v689_v43 }
 0x222   : > { %v700_v46 = vmul.f32 0.17677669, %v690_v41 }
 0x227   : > { %v691_v44 = vpop.f32.mrf.mxu0 }
 0x228   : > { %v692_v45 = vadd.f32 %v1199_v50, %v691_v44 }
 0x22a   : > { %v701_v47 = vmul.f32 0.17677669, %v692_v45 }
 0x22c   : > { %v709_v48 = vpack.c.bf16 %v701_v47, %v700_v46 }
 0x22e   : > { %1139 = vmatmul.msk.bf16.gmra.mxu1 %vm423_vm0, %v709_v48 }
 0x230   : > { %v739_v49 = vpop.f32.mrf.mxu1 }
 0x231   : > { %v760_v52 = vsel %vm759_vm11, %v739_v49, -inf }
 0x232   : > { %761 = vmax.xlane.f32.xlu1 %v760_v52 }
 0x238   : > { %v741_v39 = vpop.f32.mrf.mxu1 }
 0x239   : > { %v763_v51 = vsel %vm759_vm11, %v741_v39, -inf }
 0x23a   : > { %764 = vmax.xlane.f32.xlu2 %v763_v51 }
 0x240   : > { %v744_v53 = vpop.f32.mrf.mxu1 }
 0x241   : > { %v766_v55 = vsel %vm759_vm11, %v744_v53, -inf }
 0x242   : > { %767 = vmax.xlane.f32.xlu0 %v766_v55 }
 0x248   : > { %v746_v56 = vpop.f32.mrf.mxu1 }
 0x249   : > { %v769_v57 = vsel %vm759_vm11, %v746_v56, -inf }
 0x24a   : > { %770 = vmax.xlane.f32.xlu1 %v769_v57 }
 0x250   : > { %v749_v58 = vpop.f32.mrf.mxu1 }
 0x251   : > { %v772_v59 = vsel %vm759_vm11, %v749_v58, -inf }
 0x252   : > { %773 = vmax.xlane.f32.xlu2 %v772_v59 }
 0x258   : > { %v751_v60 = vpop.f32.mrf.mxu1 }
 0x259   : > { %v775_v61 = vsel %vm759_vm11, %v751_v60, -inf }
 0x25a   : > { %776 = vmax.xlane.f32.xlu0 %v775_v61 }
 0x2a5   : > { %v762_v62 = vpop.xlane.xlu1 %761 }
 0x2a6   : > { %v784_v63 = vsub.f32 %v739_v49, %v762_v62 }
 0x2a8   : > { %v792_v20 = vmul.f32 1.442695, %v784_v63 }
 0x2aa   : > { %1219 = vpow2.f32 %v792_v20 }
 0x2ab   : > { %v754_v3 = vpop.f32.mrf.mxu1 }
 0x2ac   : > { %v778_v37 = vsel %vm759_vm11, %v754_v3, -inf }
 0x2ad   : > { %779 = vmax.xlane.f32.xlu1 %v778_v37  ;;  %v765_v4 = vpop.xlane.xlu2 %764 }
 0x2ae   : > { %v785_v5 = vsub.f32 %v741_v39, %v765_v4 }
 0x2b0   : > { %v1220_v9 = vpop.eup %1219  ;;  %v794_v10 = vmul.f32 1.442695, %v785_v5 }
 0x2b1   : > { %v808_v13 = vsel %vm759_vm11, %v1220_v9, 0.0 }
 0x2b2   : > { %1221 = vpow2.f32 %v794_v10  ;;  %809 = vadd.xlane.f32.xlu0 %v808_v13 }
 0x2b3   : > { %v756_v14 = vpop.f32.mrf.mxu1 }
 0x2b4   : > { %v781_v16 = vsel %vm759_vm11, %v756_v14, -inf }
 0x2b5   : > { %782 = vmax.xlane.f32.xlu2 %v781_v16  ;;  %v768_v17 = vpop.xlane.xlu0 %767  ;;  %v1171_v16 = vld [vmem:[%s1613_s7 + $0x8] sm:$0xff] }
 0x2b6   : > { %v786_v18 = vsub.f32 %v744_v53, %v768_v17  ;;  %957 = vmatpush.bf16.msra.mxu3 %v1171_v16 }
 0x2b8   : > { %v1222_v11 = vpop.eup %1221  ;;  %v796_v19 = vmul.f32 1.442695, %v786_v18  ;;  %v1170_v18 = vld [vmem:[%s1613_s7] sm:$0xff] }
 0x2b9   : > { %v811_v50 = vsel %vm759_vm11, %v1222_v11, 0.0 }
 0x2ba   : > { %1223 = vpow2.f32 %v796_v19  ;;  %812 = vadd.xlane.f32.xlu1 %v811_v50  ;;  %958 = vmatpush.bf16.msra.mxu3 %v1170_v18 }
 0x2bd   : > { %v771_v21 = vpop.xlane.xlu1 %770 }
 0x2be   : > { %v787_v22 = vsub.f32 %v746_v56, %v771_v21 }
 0x2c0   : > { %v1224_v23 = vpop.eup %1223  ;;  %v798_v15 = vmul.f32 1.442695, %v787_v22 }
 0x2c1   : > { %v814_v24 = vsel %vm759_vm11, %v1224_v23, 0.0 }
 0x2c2   : > { %1225 = vpow2.f32 %v798_v15  ;;  %815 = vadd.xlane.f32.xlu2 %v814_v24 }
 0x2c5   : > { %v774_v27 = vpop.xlane.xlu2 %773 }
 0x2c6   : > { %v788_v54 = vsub.f32 %v749_v58, %v774_v27 }
 0x2c8   : > { %v1226_v28 = vpop.eup %1225  ;;  %v800_v29 = vmul.f32 1.442695, %v788_v54 }
 0x2c9   : > { %v817_v25 = vsel %vm759_vm11, %v1226_v28, 0.0 }
 0x2ca   : > { %1227 = vpow2.f32 %v800_v29  ;;  %818 = vadd.xlane.f32.xlu0 %v817_v25 }
 0x2cd   : > { %v777_v30 = vpop.xlane.xlu0 %776 }
 0x2ce   : > { %v789_v31 = vsub.f32 %v751_v60, %v777_v30 }
 0x2d0   : > { %v1228_v26 = vpop.eup %1227  ;;  %v802_v40 = vmul.f32 1.442695, %v789_v31 }
 0x2d1   : > { %v820_v32 = vsel %vm759_vm11, %v1228_v26, 0.0 }
 0x2d2   : > { %1229 = vpow2.f32 %v802_v40  ;;  %821 = vadd.xlane.f32.xlu1 %v820_v32 }
 0x2d8   : > { %v1230_v35 = vpop.eup %1229 }
 0x2d9   : > { %v823_v33 = vsel %vm759_vm11, %v1230_v35, 0.0 }
 0x2da   : > { %824 = vadd.xlane.f32.xlu2 %v823_v33 }
 0x320   : > { %v780_v38 = vpop.xlane.xlu1 %779 }
 0x321   : > { %v790_v42 = vsub.f32 %v754_v3, %v780_v38 }
 0x323   : > { %v804_v43 = vmul.f32 1.442695, %v790_v42 }
 0x325   : > { %1231 = vpow2.f32 %v804_v43  ;;  %v810_v44 = vpop.xlane.xlu0 %809 }
 0x326   : > { %1233 = vrcp.f32 %v810_v44  ;;  %v1200_v44 = vld [vmem:[%s1614_s8] ss:$0 sm:$0xff] }
 0x328   : > { %v783_v41 = vpop.xlane.xlu2 %782 }
 0x329   : > { %v791_v45 = vsub.f32 %v756_v14, %v783_v41 }
 0x32b   : > { %v1232_v46 = vpop.eup %1231  ;;  %v806_v47 = vmul.f32 1.442695, %v791_v45 }
 0x32c   : > { %v826_v48 = vsel %vm759_vm11, %v1232_v46, 0.0  ;;  %v1234_v52 = vpop.eup %1233 }
 0x32d   : > { %1235 = vpow2.f32 %v806_v47  ;;  %827 = vadd.xlane.f32.xlu0 %v826_v48  ;;  %v813_v49 = vpop.xlane.xlu1 %812  ;;  %v840_v55 = vmul.f32 %v1234_v52, %v1220_v9 }
 0x32e   : > { %1237 = vrcp.f32 %v813_v49 }
 0x333   : > { %v1236_v39 = vpop.eup %1235 }
 0x334   : > { %v829_v51 = vsel %vm759_vm11, %v1236_v39, 0.0  ;;  %v1238_v53 = vpop.eup %1237 }
 0x335   : > { %830 = vadd.xlane.f32.xlu1 %v829_v51  ;;  %v841_v56 = vmul.f32 %v1238_v53, %v1222_v11  ;;  %v816_v58 = vpop.xlane.xlu2 %815 }
 0x336   : > { %1239 = vrcp.f32 %v816_v58 }
 0x337   : > { %v848_v57 = vpack.c.bf16 %v841_v56, %v840_v55 }
 0x339   : > { %1144 = vmatmul.msk.bf16.vlgmr.msra.gmra.mxu2 %vm759_vm11, %v848_v57 }
 0x33c   : > { %v1240_v60 = vpop.eup %1239 }
 0x33d   : > { %v819_v59 = vpop.xlane.xlu0 %818  ;;  %v842_v62 = vmul.f32 %v1240_v60, %v1224_v23 }
 0x33e   : > { %1241 = vrcp.f32 %v819_v59 }
 0x344   : > { %v1242_v61 = vpop.eup %1241 }
 0x345   : > { %v843_v63 = vmul.f32 %v1242_v61, %v1226_v28  ;;  %v822_v3 = vpop.xlane.xlu1 %821 }
 0x346   : > { %1243 = vrcp.f32 %v822_v3 }
 0x347   : > { %v849_v20 = vpack.c.bf16 %v843_v63, %v842_v62 }
 0x349   : > { %1145 = vmatmul.msk.bf16.gmra.mxu2 %vm759_vm11, %v849_v20 }
 0x34c   : > { %v1244_v4 = vpop.eup %1243 }
 0x34d   : > { %v825_v37 = vpop.xlane.xlu2 %824  ;;  %v844_v9 = vmul.f32 %v1244_v4, %v1228_v26 }
 0x34e   : > { %1245 = vrcp.f32 %v825_v37 }
 0x354   : > { %v1246_v5 = vpop.eup %1245 }
 0x355   : > { %v845_v10 = vmul.f32 %v1246_v5, %v1230_v35 }
 0x357   : > { %v850_v13 = vpack.c.bf16 %v845_v10, %v844_v9 }
 0x359   : > { %1146 = vmatmul.msk.bf16.gmra.mxu2 %vm759_vm11, %v850_v13 }
 0x3a0   : > { %v828_v14 = vpop.xlane.xlu0 %827 }
 0x3a1   : > { %1247 = vrcp.f32 %v828_v14 }
 0x3a7   : > { %v1248_v11 = vpop.eup %1247 }
 0x3a8   : > { %v831_v17 = vpop.xlane.xlu1 %830  ;;  %v846_v50 = vmul.f32 %v1248_v11, %v1232_v46 }
 0x3a9   : > { %1249 = vrcp.f32 %v831_v17 }
 0x3af   : > { %v1250_v19 = vpop.eup %1249 }
 0x3b0   : > { %v847_v21 = vmul.f32 %v1250_v19, %v1236_v39 }
 0x3b2   : > { %v851_v22 = vpack.c.bf16 %v847_v21, %v846_v50 }
 0x3b4   : > { %1147 = vmatmul.msk.bf16.gmra.mxu2 %vm759_vm11, %v851_v22 }
 0x3bc   : > { %v879_v23 = vpop.f32.mrf.mxu2 }
 0x3bd   : > { %899 = vst.msk [vmem:[#allocation2] sm:$0xff] %vm423_vm0, %v879_v23 }
 0x3c4   : > { %v881_v15 = vpop.f32.mrf.mxu2  ;;  %v907_v27 = vld [vmem:[#allocation2] sm:$0xff] }
 0x3c5   : > { %900 = vst.msk [vmem:[#allocation2 + $0x8] sm:$0xff] %vm423_vm0, %v881_v15 }
 0x3cc   : > { %v884_v24 = vpop.f32.mrf.mxu2  ;;  %v908_v54 = vld [vmem:[#allocation2 + $0x8] sm:$0xff] }
 0x3cd   : > { %901 = vst.msk [vmem:[#allocation2 + $0x10] sm:$0xff] %vm423_vm0, %v884_v24  ;;  %v915_v28 = vpack.c.bf16 %v908_v54, %v907_v27 }
 0x3cf   : > { %1156 = vmatmul.msk.bf16.vlgmr.msra.gmra.mxu3 %vm423_vm0, %v915_v28 }
 0x3d4   : > { %v886_v29 = vpop.f32.mrf.mxu2  ;;  %v909_v30 = vld [vmem:[#allocation2 + $0x10] sm:$0xff] }
 0x3d5   : > { %902 = vst.msk [vmem:[#allocation2 + $0x18] sm:$0xff] %vm423_vm0, %v886_v29 }
 0x3dc   : > { %v889_v25 = vpop.f32.mrf.mxu2  ;;  %v910_v31 = vld [vmem:[#allocation2 + $0x18] sm:$0xff] }
 0x3dd   : > { %903 = vst.msk [vmem:[#allocation2 + $0x20] sm:$0xff] %vm423_vm0, %v889_v25  ;;  %v916_v26 = vpack.c.bf16 %v910_v31, %v909_v30 }
 0x3df   : > { %1157 = vmatmul.msk.bf16.gmra.mxu3 %vm423_vm0, %v916_v26 }
 0x3e4   : > { %v891_v40 = vpop.f32.mrf.mxu2  ;;  %v911_v32 = vld [vmem:[#allocation2 + $0x20] sm:$0xff] }
 0x3e5   : > { %904 = vst.msk [vmem:[#allocation2 + $0x28] sm:$0xff] %vm423_vm0, %v891_v40 }
 0x3ec   : > { %v912_v35 = vld [vmem:[#allocation2 + $0x28] sm:$0xff] }
 0x3ed   : > { %v917_v33 = vpack.c.bf16 %v912_v35, %v911_v32 }
 0x3ef   : > { %1158 = vmatmul.msk.bf16.gmra.mxu3 %vm423_vm0, %v917_v33 }
 0x437   : > { %v894_v34 = vpop.f32.mrf.mxu2 }
 0x438   : > { %905 = vst.msk [vmem:[#allocation2 + $0x30] sm:$0xff] %vm423_vm0, %v894_v34 }
 0x43f   : > { %v896_v38 = vpop.f32.mrf.mxu2  ;;  %v913_v42 = vld [vmem:[#allocation2 + $0x30] sm:$0xff] }
 0x440   : > { %906 = vst.msk [vmem:[#allocation2 + $0x38] sm:$0xff] %vm423_vm0, %v896_v38 }
 0x447   : > { %v914_v43 = vld [vmem:[#allocation2 + $0x38] sm:$0xff] }
 0x448   : > { %v918_v41 = vpack.c.bf16 %v914_v43, %v913_v42 }
 0x44a   : > { %1159 = vmatmul.msk.bf16.gmra.mxu3 %vm423_vm0, %v918_v41 }
 0x452   : > { %v960_v45 = vpop.f32.mrf.mxu3 }
 0x453   : > { %v961_v46 = vadd.f32 %v1200_v44, %v960_v45 }
 0x455   : > { %v980_v47 = vadd.f32 %v961_v46, %v1361_v2 }
 0x457   : > { %988 = vst.msk [vmem:[%s410_s26] sm:$0xff] %vm423_vm0, %v980_v47 }
 0x45a   : > { %v962_v48 = vpop.f32.mrf.mxu3 }
 0x45b   : > { %v963_v49 = vadd.f32 %v1200_v44, %v962_v48 }
 0x45d   : > { %v981_v52 = vadd.f32 %v963_v49, %v1376_v8 }
 0x45f   : > { %989 = vst.msk [vmem:[%s410_s26 + $0x8] sm:$0xff] %vm423_vm0, %v981_v52 }
 0x462   : > { %v965_v39 = vpop.f32.mrf.mxu3 }
 0x463   : > { %v966_v51 = vadd.f32 %v1200_v44, %v965_v39 }
 0x465   : > { %v982_v53 = vadd.f32 %v966_v51, %v1358_v1 }
 0x467   : > { %990 = vst.msk [vmem:[%s410_s26 + $0x10] sm:$0xff] %vm423_vm0, %v982_v53 }
 0x46a   : > { %v967_v55 = vpop.f32.mrf.mxu3 }
 0x46b   : > { %v968_v56 = vadd.f32 %v1200_v44, %v967_v55 }
 0x46d   : > { %v983_v57 = vadd.f32 %v968_v56, %v1373_v7 }
 0x46f   : > { %991 = vst.msk [vmem:[%s410_s26 + $0x18] sm:$0xff] %vm423_vm0, %v983_v57 }
 0x472   : > { %v970_v2 = vpop.f32.mrf.mxu3 }
 0x473   : > { %v971_v58 = vadd.f32 %v1200_v44, %v970_v2 }
 0x475   : > { %v984_v59 = vadd.f32 %v971_v58, %v1355_v0 }
 0x477   : > { %992 = vst.msk [vmem:[%s410_s26 + $0x20] sm:$0xff] %vm423_vm0, %v984_v59 }
 0x47a   : > { %v972_v8 = vpop.f32.mrf.mxu3 }
 0x47b   : > { %v973_v60 = vadd.f32 %v1200_v44, %v972_v8 }
 0x47d   : > { %v985_v61 = vadd.f32 %v973_v60, %v1370_v6 }
 0x47f   : > { %993 = vst.msk [vmem:[%s410_s26 + $0x28] sm:$0xff] %vm423_vm0, %v985_v61 }
 0x4cd   : > { %v975_v1 = vpop.f32.mrf.mxu3 }
 0x4ce   : > { %v976_v62 = vadd.f32 %v1200_v44, %v975_v1 }
 0x4d0   : > { %v986_v63 = vadd.f32 %v976_v62, %v1385_v12 }
 0x4d2   : > { %994 = vst.msk [vmem:[%s410_s26 + $0x30] sm:$0xff] %vm423_vm0, %v986_v63 }
 0x4d5   : > { %v977_v7 = vpop.f32.mrf.mxu3 }
 0x4d6   : > { %v978_v20 = vadd.f32 %v1200_v44, %v977_v7 }
 0x4d8   : > { %v987_v3 = vadd.f32 %v978_v20, %v1406_v36 }
 0x4da   : > { %995 = vst.msk [vmem:[%s410_s26 + $0x38] sm:$0xff] %vm423_vm0, %v987_v3 }
 0x4db PF: > { %s19_s11 = sadd.s32 1, %s1273_s11   ;;  %s1616_s30 = smov %s1269_s10 }
 0x4dc   : > { %p16_p5 = scmp.ge.s32.totalorder %s19_s11, 4   ;;  %s1617_s10 = smov %s1619_s12 }
 0x4de   :  { %18 = sbr.rel (!%p16_p5) target bundleno = 2 (0x2), region = 92 }

// kernel: _lambda_.8
= control target key start
LH: loop header
LB: loop body
LE: loop exit
PB: predicated region body
PF: predicated region fallthrough
CT: control target
= control target key end

     0   :  { %s1289_s13 = smov 0   ;;  %s1291_s14 = smov 0   ;;  %s1550_s0 = inlined_call_operand.vmem [shape: bf16[2,4,16,32], index: 0, kind: input, shape index: {}]   ;;  %s1551_s1 = inlined_call_operand.vmem [shape: f32[1,32], index: 1, kind: input, shape index: {}]   ;;  %s1552_s2 = inlined_call_operand.vmem [shape: f32[1,32], index: 2, kind: input, shape index: {}]   ;;  %s1553_s3 = inlined_call_operand.vmem [shape: bf16[4,32,32], index: 3, kind: input, shape index: {}]   ;;  %s1554_s4 = inlined_call_operand.vmem [shape: f32[1,32], index: 4, kind: input, shape index: {}]   ;;  %s1555_s5 = inlined_call_operand.vmem [shape: f32[1,32], index: 5, kind: input, shape index: {}]   ;;  %s1556_s6 = inlined_call_operand.vmem [shape: f32[1,32], index: 6, kind: input, shape index: {}]   ;;  %s1557_s7 = inlined_call_operand.vmem [shape: bf16[32,64], index: 7, kind: input, shape index: {}]   ;;  %s1558_s8 = inlined_call_operand.vmem [shape: f32[1,64], index: 8, kind: input, shape index: {}]   ;;  %s1559_s9 = inlined_call_operand.vmem [shape: bf16[2,16,32], index: 9, kind: output, shape index: {0}]   ;;  %s1560_s10 = inlined_call_operand.vmem [shape: bf16[2,16,32], index: 10, kind: output, shape index: {1}]  }
   0x1   :  { %s1293_s15 = smov 0  }
   0x2 LB: > { %s33_s16 = sadd.s32 1, %s1226_s14  ;;  %p1050_p0 = scmp.ge.s32.totalorder %s1230_s15, 1  ;;  %s1230_s15 = sphi %s1293_s15, %s21_s15   ;;  %s1226_s14 = sphi %s1291_s14, %s1568_s14   ;;  %s1222_s13 = sphi %s1289_s13, %s1567_s13  }
   0x3   : > { %p35_p1 = scmp.ge.s32.totalorder %s33_s16, 2  ;;  %p338_p2 = scmp.lt.s32.totalorder %s1230_s15, 3 }
   0x5   : > { %s1570_s16 = smov (%p35_p1, %s33_s16), 0  ;;  %p339_p3 = pnand %p1050_p0, %p338_p2 }
   0x6   : > { %p394_p4 = scmp.lt.s32.totalorder (!%p339_p3), %s1222_s13, 1  ;;  %s1233_s25 = smov (!%p339_p3), 96  }
   0x7   : > { %342 = sbr.rel (%p339_p3) target bundleno = 978 (0x3d2), region = 56 }
   0xc   : > { %s1572_s13 = smov (!%p394_p4, %s1222_s13), 1  ;;  %vm430_vm0 = vcmask 261120   ;;  %v1232_v20 = vmov 32.0  }
   0xd   : > { %s1122_s17 = sshll.u32 %s1572_s13, 5  ;;  %1186 = vrcp.f32 %v1232_v20  ;;  %s1123_s21 = sshll.u32 %s1572_s13, 3 }
   0xe   : > { %s401_s20 = scalar_lea.vmem %s1550_s0, %s1122_s17  ;;  %s411_s24 = scalar_lea.vmem %s1559_s9, %s1123_s21 }
   0xf   : > { %v1153_v0 = vld [vmem:[%s401_s20 + $0x18] sm:$0xff]   ;;  %v1152_v1 = vld [vmem:[%s401_s20 + $0x10] sm:$0xff]   ;;  %v1136_v2 = vld [vmem:[%s401_s20] sm:$0xff]   ;;  %s421_s13 = scalar_lea.vmem %s1560_s10, %s1123_s21 }
  0x10   : > { %v1149_v3 = vunpack.c.l.bf16 %v1153_v0  ;;  %v1145_v4 = vunpack.c.l.bf16 %v1152_v1  ;;  %v1137_v5 = vunpack.c.l.bf16 %v1136_v2  ;;  %v1150_v9 = vunpack.c.h.bf16 %v1153_v0  ;;  %v1151_v15 = vld [vmem:[%s401_s20 + $0x8] sm:$0xff]  }
  0x11   : > { %v1146_v10 = vunpack.c.h.bf16 %v1152_v1  ;;  %v1138_v11 = vunpack.c.h.bf16 %v1136_v2  ;;  %v1141_v16 = vunpack.c.l.bf16 %v1151_v15  ;;  %v1142_v17 = vunpack.c.h.bf16 %v1151_v15 }
  0x12   : > { %v709_v6 = vsel %vm430_vm0, %v1149_v3, 0.0  ;;  %v619_v7 = vsel %vm430_vm0, %v1145_v4, 0.0  ;;  %v431_v8 = vsel %vm430_vm0, %v1137_v5, 0.0  ;;  %v712_v12 = vsel %vm430_vm0, %v1150_v9, 0.0 }
  0x13   : > { %710 = vadd.xlane.f32.xlu1 %v709_v6  ;;  %620 = vadd.xlane.f32.xlu0 %v619_v7  ;;  %v622_v13 = vsel %vm430_vm0, %v1146_v10, 0.0  ;;  %v434_v14 = vsel %vm430_vm0, %v1138_v11, 0.0  ;;  %v502_v18 = vsel %vm430_vm0, %v1141_v16, 0.0  ;;  %v505_v19 = vsel %vm430_vm0, %v1142_v17, 0.0  ;;  %v1187_v21 = vpop.eup %1186  ;;  %v1130_v7 = vld [vmem:[%s1553_s3 + $0x28] sm:$0xff] }
  0x14   : > { %432 = vadd.xlane.f32.xlu2 %v431_v8  ;;  %v438_v22 = vmul.f32 32.0, %v1187_v21  ;;  %vm442_vm1 = vweird.f32 %v1187_v21  ;;  %v1132_v8 = vld [vmem:[%s1553_s3 + $0x38] sm:$0xff]  ;;  %694 = vmatpush.bf16.msra.mxu2 %v1130_v7 }
  0x15   : > { %784 = vmatpush.bf16.msra.mxu3 %v1132_v8 }
  0x16   : > { %v439_v23 = vsub.f32 1.0, %v438_v22 }
  0x18   : > { %v440_v24 = vmul.f32 %v1187_v21, %v439_v23 }
  0x1a   : > { %v441_v25 = vadd.f32 %v1187_v21, %v440_v24 }
  0x1b   : > { %713 = vadd.xlane.f32.xlu1 %v712_v12  ;;  %623 = vadd.xlane.f32.xlu0 %v622_v13  ;;  %v1131_v12 = vld [vmem:[%s1553_s3 + $0x30] sm:$0xff] }
  0x1c   : > { %435 = vadd.xlane.f32.xlu2 %v434_v14  ;;  %v1321_v26 = vsel %vm442_vm1, %v1187_v21, %v441_v25  ;;  %785 = vmatpush.bf16.msra.mxu3 %v1131_v12 }
  0x23   : > { %503 = vadd.xlane.f32.xlu0 %v502_v18  ;;  %506 = vadd.xlane.f32.xlu1 %v505_v19  ;;  %v1126_v18 = vld [vmem:[%s1553_s3 + $0x8] sm:$0xff] }
  0x24   : > { %606 = vmatpush.bf16.msra.mxu1 %v1126_v18 }
  0x86   : > { %v711_v27 = vpop.xlane.xlu1 %710  ;;  %v621_v28 = vpop.xlane.xlu0 %620 }
  0x87   : > { %v715_v29 = vmul.f32 %v711_v27, %v1321_v26  ;;  %v625_v30 = vmul.f32 %v621_v28, %v1321_v26  ;;  %v433_v31 = vpop.xlane.xlu2 %432  ;;  %v1125_v28 = vld [vmem:[%s1553_s3] sm:$0xff] }
  0x88   : > { %v444_v40 = vmul.f32 %v1321_v26, %v433_v31  ;;  %607 = vmatpush.bf16.msra.mxu1 %v1125_v28  ;;  %v1128_v31 = vld [vmem:[%s1553_s3 + $0x18] sm:$0xff] }
  0x89   : > { %v1325_v32 = vsub.f32 %v1149_v3, %v715_v29  ;;  %v1327_v33 = vsub.f32 %v1145_v4, %v625_v30  ;;  %577 = vmatpush.bf16.msra.mxu0 %v1128_v31 }
  0x8a   : > { %v1345_v48 = vsub.f32 %v1137_v5, %v444_v40  ;;  %v1127_v40 = vld [vmem:[%s1553_s3 + $0x10] sm:$0xff] }
  0x8b   : > { %v719_v34 = vmul.f32 %v1325_v32, %v1325_v32  ;;  %v629_v35 = vmul.f32 %v1327_v33, %v1327_v33 }
  0x8c   : > { %v448_v59 = vmul.f32 %v1345_v48, %v1345_v48 }
  0x8d   : > { %v721_v36 = vsel %vm430_vm0, %v719_v34, 0.0  ;;  %v631_v37 = vsel %vm430_vm0, %v629_v35, 0.0  ;;  %578 = vmatpush.bf16.msra.mxu0 %v1127_v40 }
  0x8e   : > { %v714_v38 = vpop.xlane.xlu1 %713  ;;  %v624_v39 = vpop.xlane.xlu0 %623  ;;  %722 = vadd.xlane.f32.xlu1 %v721_v36  ;;  %632 = vadd.xlane.f32.xlu2 %v631_v37  ;;  %v450_v63 = vsel %vm430_vm0, %v448_v59, 0.0 }
  0x8f   : > { %v716_v41 = vmul.f32 %v714_v38, %v1321_v26  ;;  %v626_v42 = vmul.f32 %v624_v39, %v1321_v26  ;;  %v436_v43 = vpop.xlane.xlu2 %435 }
  0x90   : > { %v445_v44 = vmul.f32 %v1321_v26, %v436_v43 }
  0x91   : > { %v1339_v45 = vsub.f32 %v1150_v9, %v716_v41  ;;  %v1341_v46 = vsub.f32 %v1146_v10, %v626_v42 }
  0x92   : > { %v1343_v47 = vsub.f32 %v1138_v11, %v445_v44  ;;  %v1129_v11 = vld [vmem:[%s1553_s3 + $0x20] sm:$0xff] }
  0x93   : > { %v630_v49 = vmul.f32 %v1341_v46, %v1341_v46  ;;  %v720_v50 = vmul.f32 %v1339_v45, %v1339_v45  ;;  %695 = vmatpush.bf16.msra.mxu2 %v1129_v11 }
  0x94   : > { %v449_v51 = vmul.f32 %v1343_v47, %v1343_v47 }
  0x95   : > { %v634_v52 = vsel %vm430_vm0, %v630_v49, 0.0  ;;  %v724_v53 = vsel %vm430_vm0, %v720_v50, 0.0 }
  0x96   : > { %635 = vadd.xlane.f32.xlu0 %v634_v52  ;;  %v504_v54 = vpop.xlane.xlu0 %503  ;;  %725 = vadd.xlane.f32.xlu2 %v724_v53  ;;  %v453_v55 = vsel %vm430_vm0, %v449_v51, 0.0  ;;  %v507_v56 = vpop.xlane.xlu1 %506 }
  0x97   : > { %v508_v57 = vmul.f32 %v504_v54, %v1321_v26  ;;  %454 = vadd.xlane.f32.xlu1 %v453_v55  ;;  %v509_v58 = vmul.f32 %v507_v56, %v1321_v26 }
  0x99   : > { %v1360_v60 = vsub.f32 %v1141_v16, %v508_v57  ;;  %v1362_v61 = vsub.f32 %v1142_v17, %v509_v58 }
  0x9b   : > { %v512_v62 = vmul.f32 %v1360_v60, %v1360_v60  ;;  %v513_v1 = vmul.f32 %v1362_v61, %v1362_v61 }
  0x9d   : > { %v514_v0 = vsel %vm430_vm0, %v512_v62, 0.0  ;;  %v517_v2 = vsel %vm430_vm0, %v513_v1, 0.0 }
  0x9e   : > { %515 = vadd.xlane.f32.xlu2 %v514_v0  ;;  %451 = vadd.xlane.f32.xlu0 %v450_v63 }
  0xa6   : > { %518 = vadd.xlane.f32.xlu0 %v517_v2 }
 0x101   : > { %v723_v3 = vpop.xlane.xlu1 %722  ;;  %v633_v4 = vpop.xlane.xlu2 %632 }
 0x102   : > { %v727_v5 = vmul.f32 %v723_v3, %v1321_v26  ;;  %v637_v6 = vmul.f32 %v633_v4, %v1321_v26 }
 0x104   : > { %v1379_v9 = vadd.f32 1e-06, %v727_v5  ;;  %v639_v10 = vadd.f32 1e-06, %v637_v6 }
 0x106   : > { %1188 = vrsqrt.f32 %v1379_v9  ;;  %vm737_vm2 = vweird.f32 %v1379_v9  ;;  %vm647_vm5 = vweird.f32 %v639_v10 }
 0x107   : > { %1190 = vrsqrt.f32 %v639_v10 }
 0x109   : > { %v636_v13 = vpop.xlane.xlu0 %635  ;;  %v726_v14 = vpop.xlane.xlu2 %725 }
 0x10a   : > { %v638_v15 = vmul.f32 %v636_v13, %v1321_v26  ;;  %v455_v16 = vpop.xlane.xlu1 %454  ;;  %v728_v17 = vmul.f32 %v726_v14, %v1321_v26 }
 0x10b   : > { %v457_v19 = vmul.f32 %v455_v16, %v1321_v26 }
 0x10c   : > { %v1394_v20 = vpop.eup %1188  ;;  %v1396_v21 = vadd.f32 1e-06, %v638_v15  ;;  %v1398_v22 = vadd.f32 1e-06, %v728_v17 }
 0x10d   : > { %v1191_v23 = vpop.eup %1190  ;;  %v732_v24 = vmul.f32 %v1394_v20, %v1379_v9  ;;  %v1402_v25 = vadd.f32 1e-06, %v457_v19  ;;  %vm738_vm4 = vweird.f32 %v1394_v20  ;;  %v1460_v9 = vld [vmem:[%s1551_s1] ss:$0 sm:$0xff] }
 0x10e   : > { %v642_v27 = vmul.f32 %v1191_v23, %v639_v10  ;;  %1192 = vrsqrt.f32 %v1396_v21  ;;  %vm648_vm3 = vweird.f32 %v1191_v23  ;;  %vm657_vm7 = vweird.f32 %v1396_v21  ;;  %vm1445_vm8 = vmor %vm737_vm2, %vm738_vm4 }
 0x10f   : > { %v733_v29 = vmul.f32 %v1394_v20, %v732_v24  ;;  %1194 = vrsqrt.f32 %v1402_v25  ;;  %vm1432_vm6 = vmor %vm647_vm5, %vm648_vm3  ;;  %vm476_vm9 = vweird.f32 %v1402_v25  ;;  %vm747_vm12 = vweird.f32 %v1398_v22 }
 0x110   : > { %v643_v30 = vmul.f32 %v1191_v23, %v642_v27  ;;  %1196 = vrsqrt.f32 %v1398_v22 }
 0x111   : > { %v734_v34 = vmul.f32 0.5, %v733_v29  ;;  %v452_v35 = vpop.xlane.xlu0 %451  ;;  %v516_v36 = vpop.xlane.xlu2 %515 }
 0x112   : > { %v644_v37 = vmul.f32 0.5, %v643_v30  ;;  %v456_v38 = vmul.f32 %v452_v35, %v1321_v26  ;;  %v520_v39 = vmul.f32 %v516_v36, %v1321_v26 }
 0x113   : > { %v735_v41 = vsub.f32 1.5, %v734_v34 }
 0x114   : > { %v1193_v42 = vpop.eup %1192  ;;  %v645_v43 = vsub.f32 1.5, %v644_v37  ;;  %v1420_v44 = vadd.f32 1e-06, %v456_v38  ;;  %v1426_v51 = vadd.f32 1e-06, %v520_v39 }
 0x115   : > { %v1422_v49 = vpop.eup %1194  ;;  %v652_v50 = vmul.f32 %v1193_v42, %v1396_v21  ;;  %v736_v53 = vmul.f32 %v1394_v20, %v735_v41  ;;  %vm658_vm10 = vweird.f32 %v1193_v42  ;;  %v1181_v21 = vld [vmem:[%s1552_s2] ss:$0 sm:$0xff] }
 0x116   : > { %v1197_v52 = vpop.eup %1196  ;;  %v646_v54 = vmul.f32 %v1191_v23, %v645_v43  ;;  %v471_v55 = vmul.f32 %v1422_v49, %v1402_v25  ;;  %1198 = vrsqrt.f32 %v1420_v44  ;;  %vm477_vm11 = vweird.f32 %v1422_v49  ;;  %vm659_vm14 = vmor %vm657_vm7, %vm658_vm10 }
 0x117   : > { %v653_v57 = vmul.f32 %v1193_v42, %v652_v50  ;;  %v742_v58 = vmul.f32 %v1197_v52, %v1398_v22  ;;  %1200 = vrsqrt.f32 %v1426_v51  ;;  %v740_v3 = vsel %vm1445_vm8, %v1394_v20, %v736_v53  ;;  %vm1471_vm15 = vmor %vm476_vm9, %vm477_vm11 }
 0x118   : > { %v650_v59 = vsel %vm1432_vm6, %v1191_v23, %v646_v54  ;;  %v472_v62 = vmul.f32 %v1422_v49, %v471_v55  ;;  %vm748_vm13 = vweird.f32 %v1197_v52  ;;  %v751_v13 = vmul.f32 %v740_v3, %v1325_v32 }
 0x119   : > { %v654_v0 = vmul.f32 0.5, %v653_v57  ;;  %v743_v1 = vmul.f32 %v1197_v52, %v742_v58  ;;  %v519_v2 = vpop.xlane.xlu0 %518  ;;  %v661_v6 = vmul.f32 %v650_v59, %v1327_v33  ;;  %vm749_vm1 = vmor %vm747_vm12, %vm748_vm13  ;;  %vm466_vm2 = vweird.f32 %v1420_v44 }
 0x11a   : > { %v473_v4 = vmul.f32 0.5, %v472_v62  ;;  %v521_v5 = vmul.f32 %v519_v2, %v1321_v26  ;;  %v753_v30 = vmul.f32 %v1460_v9, %v751_v13  ;;  %vm530_vm4 = vweird.f32 %v1426_v51 }
 0x11b   : > { %v655_v7 = vsub.f32 1.5, %v654_v0  ;;  %v744_v8 = vmul.f32 0.5, %v743_v1  ;;  %v663_v23 = vmul.f32 %v1460_v9, %v661_v6 }
 0x11c   : > { %v1199_v10 = vpop.eup %1198  ;;  %v474_v11 = vsub.f32 1.5, %v473_v4  ;;  %v523_v12 = vadd.f32 1e-06, %v521_v5 }
 0x11d   : > { %v656_v14 = vmul.f32 %v1193_v42, %v655_v7  ;;  %v745_v33 = vsub.f32 1.5, %v744_v8  ;;  %v461_v15 = vmul.f32 %v1199_v10, %v1420_v44  ;;  %v1201_v18 = vpop.eup %1200  ;;  %vm467_vm3 = vweird.f32 %v1199_v10 }
 0x11e   : > { %v475_v16 = vmul.f32 %v1422_v49, %v474_v11  ;;  %1202 = vrsqrt.f32 %v523_v12  ;;  %v525_v25 = vmul.f32 %v1201_v18, %v1426_v51  ;;  %v665_v22 = vadd.f32 %v1181_v21, %v663_v23  ;;  %vm468_vm5 = vmor %vm466_vm2, %vm467_vm3 }
 0x11f   : > { %v660_v19 = vsel %vm659_vm14, %v1193_v42, %v656_v14  ;;  %v746_v32 = vmul.f32 %v1197_v52, %v745_v33  ;;  %v462_v20 = vmul.f32 %v1199_v10, %v461_v15  ;;  %vm531_vm6 = vweird.f32 %v1201_v18 }
 0x120   : > { %v662_v24 = vmul.f32 %v660_v19, %v1341_v46  ;;  %v479_v27 = vsel %vm1471_vm15, %v1422_v49, %v475_v16  ;;  %v526_v34 = vmul.f32 %v1201_v18, %v525_v25  ;;  %vm532_vm7 = vmor %vm530_vm4, %vm531_vm6  ;;  %vm540_vm9 = vweird.f32 %v523_v12 }
 0x121   : > { %v750_v28 = vsel %vm749_vm1, %v1197_v52, %v746_v32  ;;  %v463_v29 = vmul.f32 0.5, %v462_v20  ;;  %v481_v37 = vmul.f32 %v479_v27, %v1343_v47  ;;  %vm896_vm2 = vcmask 257024  }
 0x122   : > { %v752_v31 = vmul.f32 %v750_v28, %v1339_v45  ;;  %v664_v35 = vmul.f32 %v1460_v9, %v662_v24  ;;  %v527_v38 = vmul.f32 0.5, %v526_v34  ;;  %v755_v45 = vadd.f32 %v1181_v21, %v753_v30 }
 0x123   : > { %v464_v46 = vsub.f32 1.5, %v463_v29  ;;  %v486_v55 = vmul.f32 %v1460_v9, %v481_v37 }
 0x124   : > { %v1203_v36 = vpop.eup %1202  ;;  %v666_v39 = vadd.f32 %v1181_v21, %v664_v35  ;;  %v754_v40 = vmul.f32 %v1460_v9, %v752_v31  ;;  %v528_v43 = vsub.f32 1.5, %v527_v38  ;;  %v1133_v38 = vld [vmem:[%s1557_s7] sm:$0xff] }
 0x125   : > { %v465_v41 = vmul.f32 %v1199_v10, %v464_v46  ;;  %v535_v42 = vmul.f32 %v1203_v36, %v523_v12  ;;  %vm541_vm8 = vweird.f32 %v1203_v36  ;;  %v491_v63 = vadd.f32 %v1181_v21, %v486_v55 }
 0x126   : > { %v667_v49 = vpack.c.bf16 %v666_v39, %v665_v22  ;;  %v756_v50 = vadd.f32 %v1181_v21, %v754_v40  ;;  %v529_v54 = vmul.f32 %v1201_v18, %v528_v43  ;;  %vm542_vm10 = vmor %vm540_vm9, %vm541_vm8  ;;  %v1134_v22 = vld [vmem:[%s1557_s7 + $0x8] sm:$0xff] }
 0x127   : > { %v469_v44 = vsel %vm468_vm5, %v1199_v10, %v465_v41  ;;  %v536_v52 = vmul.f32 %v1203_v36, %v535_v42  ;;  %886 = vmatpush.bf16.msrb.mxu0 %v1134_v22 }
 0x128   : > { %v480_v53 = vmul.f32 %v469_v44, %v1345_v48  ;;  %1095 = vmatmul.msk.bf16.vlgmr.msra.gmra.mxu2 %vm430_vm0, %v667_v49  ;;  %v757_v47 = vpack.c.bf16 %v756_v50, %v755_v45  ;;  %v533_v57 = vsel %vm532_vm7, %v1201_v18, %v529_v54 }
 0x129   : > { %v537_v56 = vmul.f32 0.5, %v536_v52  ;;  %v544_v62 = vmul.f32 %v533_v57, %v1360_v60 }
 0x12a   : > { %1110 = vmatmul.msk.bf16.vlgmr.msra.gmra.mxu3 %vm430_vm0, %v757_v47  ;;  %v485_v58 = vmul.f32 %v1460_v9, %v480_v53 }
 0x12b   : > { %v538_v59 = vsub.f32 1.5, %v537_v56  ;;  %v546_v3 = vmul.f32 %v1460_v9, %v544_v62  ;;  %887 = vmatpush.bf16.msrb.mxu0 %v1133_v38 }
 0x12c   : > { %v490_v48 = vadd.f32 %v1181_v21, %v485_v58  ;;  %v1183_v58 = vld [vmem:[%s1555_s5] ss:$0 sm:$0xff] }
 0x12d   : > { %v539_v0 = vmul.f32 %v1203_v36, %v538_v59  ;;  %v548_v5 = vadd.f32 %v1181_v21, %v546_v3 }
 0x12e   : > { %v492_v1 = vpack.c.bf16 %v491_v63, %v490_v48 }
 0x12f   : > { %v543_v2 = vsel %vm542_vm10, %v1203_v36, %v539_v0  ;;  %v1184_v0 = vld [vmem:[%s1556_s6] ss:$0 sm:$0xff] }
 0x130   : > { %v545_v51 = vmul.f32 %v543_v2, %v1362_v61  ;;  %1080 = vmatmul.msk.bf16.vlgmr.msra.gmra.mxu1 %vm430_vm0, %v492_v1  ;;  %v1182_v61 = vld [vmem:[%s1554_s4] ss:$0 sm:$0xff] }
 0x132   : > { %v547_v4 = vmul.f32 %v1460_v9, %v545_v51 }
 0x134   : > { %v549_v6 = vadd.f32 %v1181_v21, %v547_v4  ;;  %v1185_v4 = vld [vmem:[%s1558_s8] ss:$0 sm:$0xff] }
 0x136   : > { %v550_v7 = vpack.c.bf16 %v549_v6, %v548_v5 }
 0x138   : > { %1071 = vmatmul.msk.bf16.vlgmr.msra.gmra.mxu0 %vm430_vm0, %v550_v7 }
 0x1ab   : > { %v697_v8 = vpop.f32.mrf.mxu2 }
 0x1ad   : > { %v609_v60 = vpop.f32.mrf.mxu1  ;;  %v787_v12 = vpop.f32.mrf.mxu3 }
 0x1b3   : > { %v699_v18 = vpop.f32.mrf.mxu2 }
 0x1b5   : > { %v580_v10 = vpop.f32.mrf.mxu0  ;;  %v611_v15 = vpop.f32.mrf.mxu1 }
 0x1b6   : > { %v610_v11 = vadd.f32 %v609_v60, %v580_v10  ;;  %v789_v32 = vpop.f32.mrf.mxu3 }
 0x1b8   : > { %v702_v13 = vadd.f32 %v697_v8, %v610_v11 }
 0x1ba   : > { %v792_v14 = vadd.f32 %v787_v12, %v702_v13 }
 0x1bc   : > { %v798_v33 = vadd.f32 %v1182_v61, %v792_v14 }
 0x1bd   : > { %v582_v16 = vpop.f32.mrf.mxu0 }
 0x1be   : > { %v612_v9 = vadd.f32 %v611_v15, %v582_v16  ;;  %v802_v17 = vsel %vm430_vm0, %v798_v33, 0.0 }
 0x1bf   : > { %803 = vadd.xlane.f32.xlu1 %v802_v17 }
 0x1c0   : > { %v703_v19 = vadd.f32 %v699_v18, %v612_v9 }
 0x1c2   : > { %v793_v20 = vadd.f32 %v789_v32, %v703_v19 }
 0x1c4   : > { %v799_v21 = vadd.f32 %v1182_v61, %v793_v20 }
 0x1c6   : > { %v805_v23 = vsel %vm430_vm0, %v799_v21, 0.0 }
 0x1c7   : > { %806 = vadd.xlane.f32.xlu2 %v805_v23 }
 0x232   : > { %v804_v24 = vpop.xlane.xlu1 %803 }
 0x233   : > { %v808_v25 = vmul.f32 %v804_v24, %v1321_v26 }
 0x235   : > { %v810_v27 = vsub.f32 %v798_v33, %v808_v25 }
 0x237   : > { %v812_v28 = vmul.f32 %v810_v27, %v810_v27 }
 0x239   : > { %v814_v29 = vsel %vm430_vm0, %v812_v28, 0.0 }
 0x23a   : > { %815 = vadd.xlane.f32.xlu0 %v814_v29  ;;  %v807_v30 = vpop.xlane.xlu2 %806 }
 0x23b   : > { %v809_v31 = vmul.f32 %v807_v30, %v1321_v26 }
 0x23d   : > { %v811_v34 = vsub.f32 %v799_v21, %v809_v31 }
 0x23f   : > { %v813_v35 = vmul.f32 %v811_v34, %v811_v34 }
 0x241   : > { %v817_v46 = vsel %vm430_vm0, %v813_v35, 0.0 }
 0x242   : > { %818 = vadd.xlane.f32.xlu1 %v817_v46 }
 0x2ad   : > { %v816_v36 = vpop.xlane.xlu0 %815 }
 0x2ae   : > { %v820_v37 = vmul.f32 %v816_v36, %v1321_v26 }
 0x2b0   : > { %v822_v39 = vadd.f32 1e-05, %v820_v37 }
 0x2b2   : > { %1204 = vrsqrt.f32 %v822_v39  ;;  %vm830_vm12 = vweird.f32 %v822_v39 }
 0x2b5   : > { %v819_v40 = vpop.xlane.xlu1 %818 }
 0x2b6   : > { %v821_v41 = vmul.f32 %v819_v40, %v1321_v26 }
 0x2b8   : > { %v1205_v42 = vpop.eup %1204  ;;  %v823_v45 = vadd.f32 1e-05, %v821_v41 }
 0x2b9   : > { %v825_v43 = vmul.f32 %v1205_v42, %v822_v39  ;;  %vm831_vm11 = vweird.f32 %v1205_v42 }
 0x2ba   : > { %1206 = vrsqrt.f32 %v823_v45  ;;  %vm832_vm13 = vmor %vm830_vm12, %vm831_vm11  ;;  %vm840_vm15 = vweird.f32 %v823_v45 }
 0x2bb   : > { %v826_v49 = vmul.f32 %v1205_v42, %v825_v43 }
 0x2bd   : > { %v827_v50 = vmul.f32 0.5, %v826_v49 }
 0x2bf   : > { %v828_v44 = vsub.f32 1.5, %v827_v50 }
 0x2c0   : > { %v1207_v52 = vpop.eup %1206 }
 0x2c1   : > { %v829_v53 = vmul.f32 %v1205_v42, %v828_v44  ;;  %v835_v54 = vmul.f32 %v1207_v52, %v823_v45  ;;  %vm841_vm14 = vweird.f32 %v1207_v52 }
 0x2c2   : > { %vm842_vm1 = vmor %vm840_vm15, %vm841_vm14 }
 0x2c3   : > { %v836_v47 = vmul.f32 %v1207_v52, %v835_v54  ;;  %v833_v55 = vsel %vm832_vm13, %v1205_v42, %v829_v53 }
 0x2c4   : > { %v844_v26 = vmul.f32 %v833_v55, %v810_v27 }
 0x2c5   : > { %v837_v56 = vmul.f32 0.5, %v836_v47 }
 0x2c6   : > { %v849_v63 = vmul.f32 %v1183_v58, %v844_v26 }
 0x2c7   : > { %v838_v57 = vsub.f32 1.5, %v837_v56 }
 0x2c8   : > { %v854_v2 = vadd.f32 %v1184_v0, %v849_v63 }
 0x2c9   : > { %v839_v59 = vmul.f32 %v1207_v52, %v838_v57 }
 0x2cb   : > { %v843_v62 = vsel %vm842_vm1, %v1207_v52, %v839_v59 }
 0x2cc   : > { %v845_v48 = vmul.f32 %v843_v62, %v811_v34 }
 0x2ce   : > { %v850_v1 = vmul.f32 %v1183_v58, %v845_v48 }
 0x2d0   : > { %v855_v51 = vadd.f32 %v1184_v0, %v850_v1 }
 0x2d2   : > { %v856_v3 = vpack.c.bf16 %v855_v51, %v854_v2 }
 0x2d4   : > { %1119 = vmatmul.msk.bf16.vlgmr.msrb.gmra.mxu0 %vm430_vm0, %v856_v3 }
 0x351   : > { %v889_v5 = vpop.f32.mrf.mxu0 }
 0x352   : > { %v890_v6 = vadd.f32 %v1185_v4, %v889_v5 }
 0x354   : > { %v894_v7 = vpack.c.bf16 %v890_v6, %v890_v6 }
 0x356   : > { %901 = vrot.lane.b32.xlu2 %v894_v7, %s1233_s25  ;;  %897 = vst.msk [vmem:[%s411_s24] sm:$0xf] %vm896_vm2, %v894_v7 }
 0x359   : > { %v891_v60 = vpop.f32.mrf.mxu0 }
 0x35a   : > { %v892_v8 = vadd.f32 %v1185_v4, %v891_v60 }
 0x35c   : > { %v895_v10 = vpack.c.bf16 %v892_v8, %v892_v8 }
 0x35e   : > { %903 = vrot.lane.b32.xlu0 %v895_v10, %s1233_s25  ;;  %898 = vst.msk [vmem:[%s411_s24 + $0x4] sm:$0xf] %vm896_vm2, %v895_v10 }
 0x3b0   : > { %v902_v11 = vpop.permute.xlu2 %901 }
 0x3b1   : > { %907 = vst.msk [vmem:[%s421_s13] sm:$0xf] %vm896_vm2, %v902_v11 }
 0x3d0   : > { %v904_v12 = vpop.permute.xlu0 %903 }
 0x3d1   : > { %908 = vst.msk [vmem:[%s421_s13 + $0x4] sm:$0xf] %vm896_vm2, %v904_v12 }
 0x3d2 PF: > { %s21_s15 = sadd.s32 1, %s1230_s15   ;;  %s1567_s13 = smov %s1226_s14 }
 0x3d3   : > { %p18_p5 = scmp.ge.s32.totalorder %s21_s15, 4   ;;  %s1568_s14 = smov %s1570_s16 }
 0x3d5   :  { %20 = sbr.rel (!%p18_p5) target bundleno = 2 (0x2), region = 104 }

// kernel: _lambda_.10
= control target key start
LH: loop header
LB: loop body
LE: loop exit
PB: predicated region body
PF: predicated region fallthrough
CT: control target
= control target key end

     0   :  { %vm45_vm0 = vcmask 261120   ;;  %v1004_v14 = vmov 32.0   ;;  %s1706_s0 = inlined_call_operand.vmem [shape: f32[128,32], index: 0, kind: input, shape index: {}, may-alias: {0,7}]   ;;  %s1707_s1 = inlined_call_operand.vmem [shape: f32[1,32], index: 1, kind: input, shape index: {}]   ;;  %s1708_s2 = inlined_call_operand.vmem [shape: f32[1,32], index: 2, kind: input, shape index: {}]   ;;  %s1709_s3 = inlined_call_operand.vmem [shape: bf16[32,128], index: 3, kind: input, shape index: {}]   ;;  %s1710_s4 = inlined_call_operand.vmem [shape: f32[1,128], index: 4, kind: input, shape index: {}]   ;;  %s1711_s5 = inlined_call_operand.vmem [shape: bf16[128,32], index: 5, kind: input, shape index: {}]   ;;  %s1712_s6 = inlined_call_operand.vmem [shape: f32[1,32], index: 6, kind: input, shape index: {}]   ;;  %s1713_s7 = inlined_call_operand.vmem [shape: f32[128,32], index: 7, kind: output, shape index: {}, may-alias: {0,7}]  }
   0x1   :  { %v29_v0 = vld [vmem:[%s1706_s0 + $0x10] sm:$0xff]  ;;  %v27_v1 = vld [vmem:[%s1706_s0] sm:$0xff]  ;;  %v30_v6 = vld [vmem:[%s1706_s0 + $0x18] sm:$0xff]  ;;  %922 = vrcp.f32 %v1004_v14 }
   0x2   :  { %v52_v2 = vsel %vm45_vm0, %v29_v0, 0.0  ;;  %v46_v3 = vsel %vm45_vm0, %v27_v1, 0.0  ;;  %v1056_v4 = vld [vmem:[%s1706_s0 + $0x20] sm:$0xff]  ;;  %v28_v7 = vld [vmem:[%s1706_s0 + $0x8] sm:$0xff]  ;;  %v55_v9 = vsel %vm45_vm0, %v30_v6, 0.0  ;;  %v33_v12 = vld [vmem:[%s1706_s0 + $0x30] sm:$0xff] }
   0x3   :  { %53 = vadd.xlane.f32.xlu1 %v52_v2  ;;  %47 = vadd.xlane.f32.xlu0 %v46_v3  ;;  %v58_v5 = vsel %vm45_vm0, %v1056_v4, 0.0  ;;  %v32_v8 = vld [vmem:[%s1706_s0 + $0x28] sm:$0xff]  ;;  %v49_v10 = vsel %vm45_vm0, %v28_v7, 0.0  ;;  %v64_v13 = vsel %vm45_vm0, %v33_v12, 0.0  ;;  %v1090_v33 = vld [vmem:[%s1706_s0 + $0x38] sm:$0xff]  ;;  %v1110_v44 = vld [vmem:[%s1706_s0 + $0x50] sm:$0xff] }
   0x4   :  { %59 = vadd.xlane.f32.xlu2 %v58_v5  ;;  %v61_v11 = vsel %vm45_vm0, %v32_v8, 0.0  ;;  %v67_v38 = vsel %vm45_vm0, %v1090_v33, 0.0  ;;  %v1115_v45 = vld [vmem:[%s1706_s0 + $0x40] sm:$0xff]  ;;  %v76_v48 = vsel %vm45_vm0, %v1110_v44, 0.0  ;;  %v1133_v55 = vld [vmem:[%s1706_s0 + $0x58] sm:$0xff]  ;;  %v1138_v56 = vld [vmem:[%s1706_s0 + $0x48] sm:$0xff] }
   0x5   :  { %v70_v49 = vsel %vm45_vm0, %v1115_v45, 0.0  ;;  %v79_v59 = vsel %vm45_vm0, %v1133_v55, 0.0  ;;  %v73_v61 = vsel %vm45_vm0, %v1138_v56, 0.0  ;;  %v1155_v63 = vld [vmem:[%s1706_s0 + $0x60] sm:$0xff]  ;;  %v1171_v5 = vld [vmem:[%s1706_s0 + $0x68] sm:$0xff] }
   0x6   :  { %v82_v2 = vsel %vm45_vm0, %v1155_v63, 0.0  ;;  %v897_v14 = vld [vmem:[%s1709_s3] sm:$0xff] }
   0x7   :  { %v923_v15 = vpop.eup %922 }
   0x8   :  { %v95_v16 = vmul.f32 32.0, %v923_v15  ;;  %vm99_vm1 = vweird.f32 %v923_v15 }
   0xa   :  { %v96_v17 = vsub.f32 1.0, %v95_v16 }
   0xb   :  { %56 = vadd.xlane.f32.xlu1 %v55_v9  ;;  %50 = vadd.xlane.f32.xlu0 %v49_v10  ;;  %v898_v10 = vld [vmem:[%s1709_s3 + $0x8] sm:$0xff] }
   0xc   :  { %62 = vadd.xlane.f32.xlu2 %v61_v11  ;;  %v97_v18 = vmul.f32 %v923_v15, %v96_v17  ;;  %501 = vmatpush.bf16.msra.mxu0 %v898_v10 }
   0xd   :  { %907 = vmatpush.bf16.msra.mxu3 %v898_v10 }
   0xe   :  { %v98_v19 = vadd.f32 %v923_v15, %v97_v18 }
  0x10   :  { %v1076_v20 = vsel %vm99_vm1, %v923_v15, %v98_v19  ;;  %502 = vmatpush.bf16.msra.mxu0 %v897_v14 }
  0x11   :  { %908 = vmatpush.bf16.msra.mxu3 %v897_v14 }
  0x14   :  { %65 = vadd.xlane.f32.xlu2 %v64_v13 }
  0x76   :  { %v54_v21 = vpop.xlane.xlu1 %53  ;;  %v48_v22 = vpop.xlane.xlu0 %47 }
  0x77   :  { %v101_v23 = vmul.f32 %v1076_v20, %v48_v22  ;;  %v60_v24 = vpop.xlane.xlu2 %59  ;;  %v103_v32 = vmul.f32 %v1076_v20, %v54_v21 }
  0x78   :  { %v105_v54 = vmul.f32 %v1076_v20, %v60_v24 }
  0x79   :  { %v1079_v25 = vsub.f32 %v27_v1, %v101_v23  ;;  %v1102_v40 = vsub.f32 %v29_v0, %v103_v32 }
  0x7a   :  { %v1146_v60 = vsub.f32 %v1056_v4, %v105_v54  ;;  %v1166_v4 = vld [vmem:[%s1706_s0 + $0x78] sm:$0xff] }
  0x7b   :  { %v133_v26 = vmul.f32 %v1079_v25, %v1079_v25  ;;  %v135_v46 = vmul.f32 %v1102_v40, %v1102_v40 }
  0x7c   :  { %v137_v0 = vmul.f32 %v1146_v60, %v1146_v60 }
  0x7d   :  { %v149_v27 = vsel %vm45_vm0, %v133_v26, 0.0  ;;  %v155_v50 = vsel %vm45_vm0, %v135_v46, 0.0 }
  0x7e   :  { %v57_v28 = vpop.xlane.xlu1 %56  ;;  %150 = vadd.xlane.f32.xlu0 %v149_v27  ;;  %v51_v29 = vpop.xlane.xlu0 %50  ;;  %v161_v3 = vsel %vm45_vm0, %v137_v0, 0.0 }
  0x7f   :  { %v104_v30 = vmul.f32 %v1076_v20, %v57_v28  ;;  %v102_v31 = vmul.f32 %v1076_v20, %v51_v29  ;;  %v63_v36 = vpop.xlane.xlu2 %62 }
  0x80   :  { %v106_v43 = vmul.f32 %v1076_v20, %v63_v36 }
  0x81   :  { %v1092_v34 = vsub.f32 %v30_v6, %v104_v30  ;;  %v1094_v35 = vsub.f32 %v28_v7, %v102_v31  ;;  %v91_v6 = vsel %vm45_vm0, %v1166_v4, 0.0  ;;  %v85_v7 = vsel %vm45_vm0, %v1171_v5, 0.0 }
  0x82   :  { %v1119_v47 = vsub.f32 %v32_v8, %v106_v43  ;;  %v1180_v8 = vld [vmem:[%s1706_s0 + $0x70] sm:$0xff] }
  0x83   :  { %v136_v37 = vmul.f32 %v1092_v34, %v1092_v34  ;;  %v134_v39 = vmul.f32 %v1094_v35, %v1094_v35  ;;  %v88_v9 = vsel %vm45_vm0, %v1180_v8, 0.0 }
  0x84   :  { %v138_v53 = vmul.f32 %v1119_v47, %v1119_v47 }
  0x85   :  { %v158_v41 = vsel %vm45_vm0, %v136_v37, 0.0  ;;  %v152_v42 = vsel %vm45_vm0, %v134_v39, 0.0 }
  0x86   :  { %159 = vadd.xlane.f32.xlu2 %v158_v41  ;;  %68 = vadd.xlane.f32.xlu0 %v67_v38  ;;  %v164_v58 = vsel %vm45_vm0, %v138_v53, 0.0 }
  0x87   :  { %153 = vadd.xlane.f32.xlu1 %v152_v42  ;;  %v66_v51 = vpop.xlane.xlu2 %65 }
  0x88   :  { %v107_v52 = vmul.f32 %v1076_v20, %v66_v51 }
  0x8a   :  { %v1140_v57 = vsub.f32 %v33_v12, %v107_v52 }
  0x8c   :  { %v139_v62 = vmul.f32 %v1140_v57, %v1140_v57 }
  0x8e   :  { %77 = vadd.xlane.f32.xlu2 %v76_v48  ;;  %71 = vadd.xlane.f32.xlu0 %v70_v49  ;;  %v167_v1 = vsel %vm45_vm0, %v139_v62, 0.0 }
  0x8f   :  { %156 = vadd.xlane.f32.xlu1 %v155_v50 }
  0x96   :  { %165 = vadd.xlane.f32.xlu2 %v164_v58  ;;  %80 = vadd.xlane.f32.xlu0 %v79_v59 }
  0x97   :  { %74 = vadd.xlane.f32.xlu1 %v73_v61 }
  0x9e   :  { %168 = vadd.xlane.f32.xlu2 %v167_v1  ;;  %83 = vadd.xlane.f32.xlu0 %v82_v2 }
  0x9f   :  { %162 = vadd.xlane.f32.xlu1 %v161_v3 }
  0xa6   :  { %92 = vadd.xlane.f32.xlu2 %v91_v6 }
  0xa7   :  { %86 = vadd.xlane.f32.xlu1 %v85_v7 }
  0xaf   :  { %89 = vadd.xlane.f32.xlu1 %v88_v9 }
  0xf1   :  { %v151_v11 = vpop.xlane.xlu0 %150 }
  0xf2   :  { %v197_v12 = vmul.f32 %v151_v11, %v1076_v20 }
  0xf4   :  { %v213_v13 = vadd.f32 1e-06, %v197_v12 }
  0xf6   :  { %924 = vrsqrt.f32 %v213_v13  ;;  %vm235_vm3 = vweird.f32 %v213_v13 }
  0xf9   :  { %v160_v15 = vpop.xlane.xlu2 %159  ;;  %v69_v16 = vpop.xlane.xlu0 %68 }
  0xfa   :  { %v200_v17 = vmul.f32 %v160_v15, %v1076_v20  ;;  %v154_v18 = vpop.xlane.xlu1 %153  ;;  %v108_v19 = vmul.f32 %v1076_v20, %v69_v16  ;;  %v1247_v16 = vld [vmem:[%s1707_s1] ss:$0 sm:$0xff] }
  0xfb   :  { %v198_v21 = vmul.f32 %v154_v18, %v1076_v20 }
  0xfc   :  { %v925_v22 = vpop.eup %924  ;;  %v1194_v23 = vadd.f32 1e-06, %v200_v17  ;;  %v1197_v24 = vsub.f32 %v1090_v33, %v108_v19 }
  0xfd   :  { %v230_v26 = vmul.f32 %v925_v22, %v213_v13  ;;  %v214_v27 = vadd.f32 1e-06, %v198_v21  ;;  %vm236_vm2 = vweird.f32 %v925_v22 }
  0xfe   :  { %926 = vrsqrt.f32 %v1194_v23  ;;  %v140_v28 = vmul.f32 %v1197_v24, %v1197_v24  ;;  %vm1223_vm4 = vmor %vm235_vm3, %vm236_vm2  ;;  %vm265_vm8 = vweird.f32 %v1194_v23 }
  0xff   :  { %v231_v29 = vmul.f32 %v925_v22, %v230_v26  ;;  %928 = vrsqrt.f32 %v214_v27  ;;  %vm245_vm6 = vweird.f32 %v214_v27 }
 0x100   :  { %v170_v30 = vsel %vm45_vm0, %v140_v28, 0.0 }
 0x101   :  { %v232_v31 = vmul.f32 0.5, %v231_v29  ;;  %v78_v32 = vpop.xlane.xlu2 %77  ;;  %171 = vadd.xlane.f32.xlu0 %v170_v30  ;;  %v72_v36 = vpop.xlane.xlu0 %71 }
 0x102   :  { %v111_v37 = vmul.f32 %v1076_v20, %v78_v32  ;;  %v157_v38 = vpop.xlane.xlu1 %156  ;;  %v109_v33 = vmul.f32 %v1076_v20, %v72_v36 }
 0x103   :  { %v233_v39 = vsub.f32 1.5, %v232_v31  ;;  %v199_v41 = vmul.f32 %v157_v38, %v1076_v20  ;;  %v1264_v31 = vld [vmem:[%s1708_s2] ss:$0 sm:$0xff] }
 0x104   :  { %v1206_v42 = vpop.eup %926  ;;  %v1209_v43 = vsub.f32 %v1110_v44, %v111_v37  ;;  %v1212_v46 = vsub.f32 %v1115_v45, %v109_v33 }
 0x105   :  { %v929_v48 = vpop.eup %928  ;;  %v234_v49 = vmul.f32 %v925_v22, %v233_v39  ;;  %v1214_v50 = vadd.f32 1e-06, %v199_v41  ;;  %v260_v51 = vmul.f32 %v1206_v42, %v1194_v23  ;;  %vm266_vm9 = vweird.f32 %v1206_v42 }
 0x106   :  { %v240_v52 = vmul.f32 %v929_v48, %v214_v27  ;;  %v143_v53 = vmul.f32 %v1209_v43, %v1209_v43  ;;  %v141_v54 = vmul.f32 %v1212_v46, %v1212_v46  ;;  %vm246_vm5 = vweird.f32 %v929_v48  ;;  %vm1280_vm12 = vmor %vm265_vm8, %vm266_vm9 }
 0x107   :  { %930 = vrsqrt.f32 %v1214_v50  ;;  %v238_v61 = vsel %vm1223_vm4, %v925_v22, %v234_v49  ;;  %v261_v1 = vmul.f32 %v1206_v42, %v260_v51  ;;  %vm247_vm7 = vmor %vm245_vm6, %vm246_vm5  ;;  %vm255_vm11 = vweird.f32 %v1214_v50 }
 0x108   :  { %v241_v45 = vmul.f32 %v929_v48, %v240_v52  ;;  %v179_v58 = vsel %vm45_vm0, %v143_v53, 0.0  ;;  %v173_v59 = vsel %vm45_vm0, %v141_v54, 0.0  ;;  %v389_v14 = vmul.f32 %v238_v61, %v1079_v25 }
 0x109   :  { %180 = vadd.xlane.f32.xlu2 %v179_v58  ;;  %v166_v62 = vpop.xlane.xlu2 %165  ;;  %174 = vadd.xlane.f32.xlu0 %v173_v59  ;;  %v81_v0 = vpop.xlane.xlu0 %80  ;;  %v262_v17 = vmul.f32 0.5, %v261_v1 }
 0x10a   :  { %v242_v2 = vmul.f32 0.5, %v241_v45  ;;  %v202_v3 = vmul.f32 %v166_v62, %v1076_v20  ;;  %v75_v6 = vpop.xlane.xlu1 %74  ;;  %v112_v7 = vmul.f32 %v1076_v20, %v81_v0  ;;  %v408_v30 = vmul.f32 %v1247_v16, %v389_v14 }
 0x10b   :  { %v110_v9 = vmul.f32 %v1076_v20, %v75_v6  ;;  %v263_v32 = vsub.f32 1.5, %v262_v17 }
 0x10c   :  { %v243_v10 = vsub.f32 1.5, %v242_v2  ;;  %v1235_v11 = vadd.f32 1e-06, %v202_v3  ;;  %v1238_v12 = vsub.f32 %v1133_v55, %v112_v7  ;;  %v427_v51 = vadd.f32 %v1264_v31, %v408_v30 }
 0x10d   :  { %v931_v13 = vpop.eup %930  ;;  %v1242_v15 = vsub.f32 %v1138_v56, %v110_v9  ;;  %v264_v52 = vmul.f32 %v1206_v42, %v263_v32 }
 0x10e   :  { %v244_v18 = vmul.f32 %v929_v48, %v243_v10  ;;  %v250_v19 = vmul.f32 %v931_v13, %v1214_v50  ;;  %932 = vrsqrt.f32 %v1235_v11  ;;  %v144_v25 = vmul.f32 %v1238_v12, %v1238_v12 }
 0x10f   :  { %v142_v55 = vmul.f32 %v1242_v15, %v1242_v15  ;;  %vm256_vm10 = vweird.f32 %v931_v13  ;;  %v268_v61 = vsel %vm1280_vm12, %v1206_v42, %v264_v52  ;;  %vm285_vm14 = vweird.f32 %v1235_v11 }
 0x110   :  { %v248_v56 = vsel %vm247_vm7, %v929_v48, %v244_v18  ;;  %v251_v21 = vmul.f32 %v931_v13, %v250_v19  ;;  %v182_v28 = vsel %vm45_vm0, %v144_v25, 0.0  ;;  %vm257_vm13 = vmor %vm255_vm11, %vm256_vm10  ;;  %v392_v9 = vmul.f32 %v268_v61, %v1092_v34  ;;  %v905_v61 = vld [vmem:[%s1711_s5 + $0x30] sm:$0xff] }
 0x111   :  { %v390_v22 = vmul.f32 %v248_v56, %v1094_v35  ;;  %v1256_v26 = vpop.xlane.xlu2 %168  ;;  %v176_v27 = vsel %vm45_vm0, %v142_v55, 0.0  ;;  %v84_v29 = vpop.xlane.xlu0 %83  ;;  %183 = vadd.xlane.f32.xlu0 %v182_v28 }
 0x112   :  { %v252_v36 = vmul.f32 0.5, %v251_v21  ;;  %177 = vadd.xlane.f32.xlu1 %v176_v27  ;;  %v163_v37 = vpop.xlane.xlu1 %162  ;;  %v113_v35 = vmul.f32 %v1076_v20, %v84_v29  ;;  %v411_v34 = vmul.f32 %v1247_v16, %v392_v9  ;;  %v203_v52 = vmul.f32 %v1256_v26, %v1076_v20 }
 0x113   :  { %v201_v38 = vmul.f32 %v163_v37, %v1076_v20  ;;  %v409_v33 = vmul.f32 %v1247_v16, %v390_v22 }
 0x114   :  { %v1271_v39 = vpop.eup %932  ;;  %v253_v41 = vsub.f32 1.5, %v252_v36  ;;  %v1274_v48 = vsub.f32 %v1155_v63, %v113_v35  ;;  %v430_v28 = vadd.f32 %v1264_v31, %v411_v34 }
 0x115   :  { %v217_v49 = vadd.f32 1e-06, %v201_v38  ;;  %v428_v23 = vadd.f32 %v1264_v31, %v409_v33  ;;  %v280_v44 = vmul.f32 %v1271_v39, %v1235_v11  ;;  %vm286_vm15 = vweird.f32 %v1271_v39 }
 0x116   :  { %v254_v54 = vmul.f32 %v931_v13, %v253_v41  ;;  %v145_v63 = vmul.f32 %v1274_v48, %v1274_v48  ;;  %vm287_vm3 = vmor %vm285_vm14, %vm286_vm15 }
 0x117   :  { %934 = vrsqrt.f32 %v217_v49  ;;  %v443_v50 = vpack.c.bf16 %v428_v23, %v427_v51  ;;  %v281_v62 = vmul.f32 %v1271_v39, %v280_v44  ;;  %vm275_vm1 = vweird.f32 %v217_v49 }
 0x118   :  { %v258_v45 = vsel %vm257_vm13, %v931_v13, %v254_v54  ;;  %v185_v58 = vsel %vm45_vm0, %v145_v63, 0.0 }
 0x119   :  { %857 = vmatmul.msk.bf16.vlgmr.msra.gmra.mxu0 %vm45_vm0, %v443_v50  ;;  %v93_v59 = vpop.xlane.xlu2 %92  ;;  %v391_v2 = vmul.f32 %v258_v45, %v1102_v40  ;;  %v282_v42 = vmul.f32 0.5, %v281_v62  ;;  %v906_v45 = vld [vmem:[%s1711_s5 + $0x38] sm:$0xff] }
 0x11a   :  { %v116_v0 = vmul.f32 %v1076_v20, %v93_v59  ;;  %v87_v1 = vpop.xlane.xlu1 %86  ;;  %186 = vadd.xlane.f32.xlu1 %v185_v58  ;;  %764 = vmatpush.bf16.msra.mxu1 %v906_v45 }
 0x11b   :  { %v114_v3 = vmul.f32 %v1076_v20, %v87_v1  ;;  %v410_v40 = vmul.f32 %v1247_v16, %v391_v2  ;;  %v283_v55 = vsub.f32 1.5, %v282_v42  ;;  %909 = vmatpush.bf16.msra.mxu2 %v906_v45  ;;  %v904_v42 = vld [vmem:[%s1711_s5 + $0x28] sm:$0xff] }
 0x11c   :  { %v1298_v6 = vsub.f32 %v1166_v4, %v116_v0 }
 0x11d   :  { %v935_v7 = vpop.eup %934  ;;  %v1302_v10 = vsub.f32 %v1171_v5, %v114_v3  ;;  %v429_v21 = vadd.f32 %v1264_v31, %v410_v40  ;;  %v284_v29 = vmul.f32 %v1271_v39, %v283_v55 }
 0x11e   :  { %v270_v13 = vmul.f32 %v935_v7, %v217_v49  ;;  %v148_v14 = vmul.f32 %v1298_v6, %v1298_v6  ;;  %vm276_vm2 = vweird.f32 %v935_v7  ;;  %765 = vmatpush.bf16.msra.mxu1 %v905_v61 }
 0x11f   :  { %v146_v17 = vmul.f32 %v1302_v10, %v1302_v10  ;;  %vm277_vm4 = vmor %vm275_vm1, %vm276_vm2  ;;  %v444_v11 = vpack.c.bf16 %v430_v28, %v429_v21  ;;  %v288_v35 = vsel %vm287_vm3, %v1271_v39, %v284_v29  ;;  %v219_v39 = vadd.f32 1e-06, %v203_v52  ;;  %910 = vmatpush.bf16.msra.mxu2 %v905_v61  ;;  %v1411_v61 = vld [vmem:[%s1710_s4] ss:$0 sm:$0xff] }
 0x120   :  { %v271_v18 = vmul.f32 %v935_v7, %v270_v13  ;;  %v194_v4 = vsel %vm45_vm0, %v148_v14, 0.0  ;;  %v394_v38 = vmul.f32 %v288_v35, %v1119_v47 }
 0x121   :  { %v188_v19 = vsel %vm45_vm0, %v146_v17, 0.0  ;;  %936 = vrsqrt.f32 %v219_v39  ;;  %vm295_vm5 = vweird.f32 %v219_v39 }
 0x122   :  { %v272_v5 = vmul.f32 0.5, %v271_v18  ;;  %189 = vadd.xlane.f32.xlu2 %v188_v19  ;;  %v90_v25 = vpop.xlane.xlu1 %89  ;;  %195 = vadd.xlane.f32.xlu1 %v194_v4  ;;  %v413_v41 = vmul.f32 %v1247_v16, %v394_v38 }
 0x123   :  { %v115_v56 = vmul.f32 %v1076_v20, %v90_v25  ;;  %766 = vmatpush.bf16.msra.mxu1 %v904_v42  ;;  %911 = vmatpush.bf16.msra.mxu2 %v904_v42 }
 0x124   :  { %v273_v22 = vsub.f32 1.5, %v272_v5  ;;  %v432_v51 = vadd.f32 %v1264_v31, %v413_v41  ;;  %v903_v5 = vld [vmem:[%s1711_s5 + $0x20] sm:$0xff] }
 0x125   :  { %v1317_v27 = vsub.f32 %v1180_v8, %v115_v56 }
 0x126   :  { %v274_v30 = vmul.f32 %v935_v7, %v273_v22 }
 0x127   :  { %v147_v32 = vmul.f32 %v1317_v27, %v1317_v27  ;;  %v937_v53 = vpop.eup %936  ;;  %767 = vmatpush.bf16.msra.mxu1 %v903_v5  ;;  %912 = vmatpush.bf16.msra.mxu2 %v903_v5 }
 0x128   :  { %v278_v36 = vsel %vm277_vm4, %v935_v7, %v274_v30  ;;  %vm296_vm6 = vweird.f32 %v937_v53 }
 0x129   :  { %858 = vmatmul.msk.bf16.gmra.mxu0 %vm45_vm0, %v444_v11  ;;  %v191_v37 = vsel %vm45_vm0, %v147_v32, 0.0  ;;  %v393_v8 = vmul.f32 %v278_v36, %v1146_v60  ;;  %v290_v60 = vmul.f32 %v937_v53, %v219_v39  ;;  %vm1351_vm7 = vmor %vm295_vm5, %vm296_vm6  ;;  %v902_v36 = vld [vmem:[%s1711_s5 + $0x18] sm:$0xff] }
 0x12a   :  { %192 = vadd.xlane.f32.xlu0 %v191_v37 }
 0x12b   :  { %v412_v33 = vmul.f32 %v1247_v16, %v393_v8  ;;  %v291_v54 = vmul.f32 %v937_v53, %v290_v60  ;;  %768 = vmatpush.bf16.msra.mxu1 %v902_v36  ;;  %913 = vmatpush.bf16.msra.mxu2 %v902_v36 }
 0x12d   :  { %v431_v49 = vadd.f32 %v1264_v31, %v412_v33  ;;  %v292_v50 = vmul.f32 0.5, %v291_v54 }
 0x12f   :  { %v445_v23 = vpack.c.bf16 %v432_v51, %v431_v49  ;;  %v293_v58 = vsub.f32 1.5, %v292_v50 }
 0x131   :  { %v294_v7 = vmul.f32 %v937_v53, %v293_v58  ;;  %v900_v58 = vld [vmem:[%s1711_s5 + $0x8] sm:$0xff] }
 0x133   :  { %v298_v17 = vsel %vm1351_vm7, %v937_v53, %v294_v7 }
 0x134   :  { %v395_v56 = vmul.f32 %v298_v17, %v1140_v57 }
 0x136   :  { %v414_v8 = vmul.f32 %v1247_v16, %v395_v56 }
 0x138   :  { %v433_v39 = vadd.f32 %v1264_v31, %v414_v8 }
 0x139   :  { %859 = vmatmul.msk.bf16.gmra.mxu0 %vm45_vm0, %v445_v23  ;;  %v901_v23 = vld [vmem:[%s1711_s5 + $0x10] sm:$0xff] }
 0x13a   :  { %769 = vmatpush.bf16.msra.mxu1 %v901_v23  ;;  %914 = vmatpush.bf16.msra.mxu2 %v901_v23 }
 0x13e   :  { %770 = vmatpush.bf16.msra.mxu1 %v900_v58  ;;  %915 = vmatpush.bf16.msra.mxu2 %v900_v58 }
 0x174   :  { %v172_v47 = vpop.xlane.xlu0 %171 }
 0x175   :  { %v204_v44 = vmul.f32 %v172_v47, %v1076_v20 }
 0x177   :  { %v220_v63 = vadd.f32 1e-06, %v204_v44 }
 0x179   :  { %938 = vrsqrt.f32 %v220_v63  ;;  %vm305_vm9 = vweird.f32 %v220_v63 }
 0x17c   :  { %v181_v59 = vpop.xlane.xlu2 %180  ;;  %v175_v26 = vpop.xlane.xlu0 %174 }
 0x17d   :  { %v207_v62 = vmul.f32 %v181_v59, %v1076_v20  ;;  %v205_v0 = vmul.f32 %v175_v26, %v1076_v20 }
 0x17f   :  { %v939_v1 = vpop.eup %938  ;;  %v1344_v2 = vadd.f32 1e-06, %v207_v62  ;;  %v1346_v3 = vadd.f32 1e-06, %v205_v0 }
 0x180   :  { %v300_v9 = vmul.f32 %v939_v1, %v220_v63  ;;  %vm306_vm8 = vweird.f32 %v939_v1 }
 0x181   :  { %940 = vrsqrt.f32 %v1344_v2  ;;  %vm307_vm10 = vmor %vm305_vm9, %vm306_vm8  ;;  %vm335_vm11 = vweird.f32 %v1344_v2  ;;  %vm315_vm13 = vweird.f32 %v1346_v3 }
 0x182   :  { %v301_v14 = vmul.f32 %v939_v1, %v300_v9  ;;  %942 = vrsqrt.f32 %v1346_v3 }
 0x184   :  { %v302_v40 = vmul.f32 0.5, %v301_v14  ;;  %v184_v4 = vpop.xlane.xlu0 %183 }
 0x185   :  { %v178_v18 = vpop.xlane.xlu1 %177  ;;  %v208_v55 = vmul.f32 %v184_v4, %v1076_v20 }
 0x186   :  { %v303_v19 = vsub.f32 1.5, %v302_v40  ;;  %v206_v34 = vmul.f32 %v178_v18, %v1076_v20  ;;  %v899_v40 = vld [vmem:[%s1711_s5] sm:$0xff] }
 0x187   :  { %v1364_v25 = vpop.eup %940  ;;  %v1375_v11 = vadd.f32 1e-06, %v208_v55  ;;  %771 = vmatpush.bf16.msra.mxu1 %v899_v40  ;;  %916 = vmatpush.bf16.msra.mxu2 %v899_v40 }
 0x188   :  { %v1367_v21 = vpop.eup %942  ;;  %v304_v22 = vmul.f32 %v939_v1, %v303_v19  ;;  %v330_v28 = vmul.f32 %v1364_v25, %v1344_v2  ;;  %v1371_v29 = vadd.f32 1e-06, %v206_v34  ;;  %vm336_vm12 = vweird.f32 %v1364_v25 }
 0x189   :  { %v310_v30 = vmul.f32 %v1367_v21, %v1346_v3  ;;  %vm316_vm14 = vweird.f32 %v1367_v21  ;;  %vm1415_vm15 = vmor %vm335_vm11, %vm336_vm12  ;;  %vm345_vm3 = vweird.f32 %v1375_v11 }
 0x18a   :  { %v308_v32 = vsel %vm307_vm10, %v939_v1, %v304_v22  ;;  %v331_v57 = vmul.f32 %v1364_v25, %v330_v28  ;;  %944 = vrsqrt.f32 %v1371_v29  ;;  %vm1421_vm1 = vmor %vm315_vm13, %vm316_vm14  ;;  %vm325_vm2 = vweird.f32 %v1371_v29 }
 0x18b   :  { %v396_v37 = vmul.f32 %v308_v32, %v1197_v24  ;;  %v311_v35 = vmul.f32 %v1367_v21, %v310_v30  ;;  %946 = vrsqrt.f32 %v1375_v11 }
 0x18c   :  { %v332_v38 = vmul.f32 0.5, %v331_v57 }
 0x18d   :  { %v312_v33 = vmul.f32 0.5, %v311_v35  ;;  %v187_v41 = vpop.xlane.xlu1 %186  ;;  %v415_v49 = vmul.f32 %v1247_v16, %v396_v37 }
 0x18e   :  { %v209_v51 = vmul.f32 %v187_v41, %v1076_v20  ;;  %v333_v24 = vsub.f32 1.5, %v332_v38 }
 0x18f   :  { %v313_v52 = vsub.f32 1.5, %v312_v33  ;;  %v434_v53 = vadd.f32 %v1264_v31, %v415_v49 }
 0x190   :  { %v945_v60 = vpop.eup %944  ;;  %v1394_v54 = vadd.f32 1e-06, %v209_v51  ;;  %v334_v59 = vmul.f32 %v1364_v25, %v333_v24 }
 0x191   :  { %v947_v47 = vpop.eup %946  ;;  %v320_v44 = vmul.f32 %v945_v60, %v1371_v29  ;;  %v446_v63 = vpack.c.bf16 %v434_v53, %v433_v39  ;;  %v314_v50 = vmul.f32 %v1367_v21, %v313_v52  ;;  %vm326_vm4 = vweird.f32 %v945_v60 }
 0x192   :  { %v340_v45 = vmul.f32 %v947_v47, %v1375_v11  ;;  %948 = vrsqrt.f32 %v1394_v54  ;;  %v338_v18 = vsel %vm1415_vm15, %v1364_v25, %v334_v59  ;;  %vm346_vm5 = vweird.f32 %v947_v47  ;;  %vm327_vm6 = vmor %vm325_vm2, %vm326_vm4 }
 0x193   :  { %v321_v26 = vmul.f32 %v945_v60, %v320_v44  ;;  %860 = vmatmul.msk.bf16.gmra.mxu0 %vm45_vm0, %v446_v63  ;;  %v318_v42 = vsel %vm1421_vm1, %v1367_v21, %v314_v50  ;;  %v399_v32 = vmul.f32 %v338_v18, %v1209_v43  ;;  %vm347_vm7 = vmor %vm345_vm3, %vm346_vm5  ;;  %vm355_vm8 = vweird.f32 %v1394_v54 }
 0x194   :  { %v341_v0 = vmul.f32 %v947_v47, %v340_v45  ;;  %v397_v21 = vmul.f32 %v318_v42, %v1212_v46 }
 0x195   :  { %v322_v7 = vmul.f32 0.5, %v321_v26  ;;  %v190_v9 = vpop.xlane.xlu2 %189  ;;  %v196_v2 = vpop.xlane.xlu1 %195 }
 0x196   :  { %v342_v13 = vmul.f32 0.5, %v341_v0  ;;  %v210_v14 = vmul.f32 %v190_v9, %v1076_v20  ;;  %v212_v3 = vmul.f32 %v196_v2, %v1076_v20  ;;  %v504_v17 = vpop.f32.mrf.mxu0  ;;  %v416_v33 = vmul.f32 %v1247_v16, %v397_v21 }
 0x197   :  { %v323_v4 = vsub.f32 1.5, %v322_v7  ;;  %v1439_v19 = vadd.f32 %v1411_v61, %v504_v17 }
 0x198   :  { %v1441_v34 = vpop.eup %948  ;;  %v343_v55 = vsub.f32 1.5, %v342_v13  ;;  %v1443_v5 = vadd.f32 1e-06, %v210_v14  ;;  %v1445_v56 = vadd.f32 1e-06, %v212_v3 }
 0x199   :  { %v324_v22 = vmul.f32 %v945_v60, %v323_v4  ;;  %v350_v25 = vmul.f32 %v1441_v34, %v1394_v54  ;;  %v560_v28 = vmul.f32 0.044715, %v1439_v19  ;;  %vm356_vm9 = vweird.f32 %v1441_v34 }
 0x19a   :  { %v344_v30 = vmul.f32 %v947_v47, %v343_v55  ;;  %950 = vrsqrt.f32 %v1443_v5  ;;  %vm1484_vm10 = vmor %vm355_vm8, %vm356_vm9  ;;  %vm365_vm11 = vweird.f32 %v1443_v5  ;;  %vm385_vm1 = vweird.f32 %v1445_v56 }
 0x19b   :  { %v328_v57 = vsel %vm327_vm6, %v945_v60, %v324_v22  ;;  %v351_v46 = vmul.f32 %v1441_v34, %v350_v25  ;;  %952 = vrsqrt.f32 %v1445_v56  ;;  %v576_v35 = vmul.f32 %v560_v28, %v1439_v19 }
 0x19c   :  { %v398_v36 = vmul.f32 %v328_v57, %v1242_v15  ;;  %v348_v37 = vsel %vm347_vm7, %v947_v47, %v344_v30  ;;  %v418_v15 = vmul.f32 %v1247_v16, %v399_v32  ;;  %v435_v47 = vadd.f32 %v1264_v31, %v416_v33 }
 0x19d   :  { %v400_v29 = vmul.f32 %v348_v37, %v1238_v12  ;;  %v352_v8 = vmul.f32 0.5, %v351_v46  ;;  %v193_v38 = vpop.xlane.xlu0 %192  ;;  %v592_v49 = vmul.f32 %v576_v35, %v1439_v19 }
 0x19e   :  { %v211_v43 = vmul.f32 %v193_v38, %v1076_v20  ;;  %v506_v41 = vpop.f32.mrf.mxu0  ;;  %v417_v11 = vmul.f32 %v1247_v16, %v398_v36  ;;  %v437_v58 = vadd.f32 %v1264_v31, %v418_v15 }
 0x19f   :  { %v353_v51 = vsub.f32 1.5, %v352_v8  ;;  %v1467_v23 = vadd.f32 %v1411_v61, %v506_v41  ;;  %v419_v24 = vmul.f32 %v1247_v16, %v400_v29  ;;  %v608_v44 = vadd.f32 %v592_v49, %v1439_v19 }
 0x1a0   :  { %v951_v12 = vpop.eup %950  ;;  %v1473_v52 = vadd.f32 1e-06, %v211_v43  ;;  %v436_v20 = vadd.f32 %v1264_v31, %v417_v11 }
 0x1a1   :  { %v1476_v39 = vpop.eup %952  ;;  %v360_v53 = vmul.f32 %v951_v12, %v1443_v5  ;;  %v561_v60 = vmul.f32 0.044715, %v1467_v23  ;;  %v354_v63 = vmul.f32 %v1441_v34, %v353_v51  ;;  %v438_v59 = vadd.f32 %v1264_v31, %v419_v24 }
 0x1a2   :  { %954 = vrsqrt.f32 %v1473_v52  ;;  %v447_v45 = vpack.c.bf16 %v436_v20, %v435_v47  ;;  %v380_v26 = vmul.f32 %v1476_v39, %v1445_v56  ;;  %v624_v7 = vmul.f32 0.7978846, %v608_v44 }
 0x1a3   :  { %v361_v50 = vmul.f32 %v951_v12, %v360_v53  ;;  %v577_v62 = vmul.f32 %v561_v60, %v1467_v23  ;;  %v448_v1 = vpack.c.bf16 %v438_v59, %v437_v58  ;;  %v358_v9 = vsel %vm1484_vm10, %v1441_v34, %v354_v63 }
 0x1a4   :  { %861 = vmatmul.msk.bf16.gmra.mxu0 %vm45_vm0, %v447_v45  ;;  %vm366_vm12 = vweird.f32 %v951_v12  ;;  %v381_v17 = vmul.f32 %v1476_v39, %v380_v26  ;;  %956 = vtanh.f32 %v624_v7  ;;  %v401_v18 = vmul.f32 %v358_v9, %v1274_v48 }
 0x1a5   :  { %v362_v0 = vmul.f32 0.5, %v361_v50  ;;  %v593_v42 = vmul.f32 %v577_v62, %v1467_v23  ;;  %862 = vmatmul.msk.bf16.vlgmr.msra.gmra.mxu3 %vm45_vm0, %v448_v1  ;;  %vm367_vm13 = vmor %vm365_vm11, %vm366_vm12  ;;  %vm375_vm14 = vweird.f32 %v1473_v52  ;;  %vm386_vm2 = vweird.f32 %v1476_v39 }
 0x1a6   :  { %v509_v2 = vpop.f32.mrf.mxu0  ;;  %v382_v30 = vmul.f32 0.5, %v381_v17  ;;  %v420_v57 = vmul.f32 %v1247_v16, %v401_v18  ;;  %v544_v51 = vmul.f32 0.5, %v1439_v19  ;;  %v545_v15 = vmul.f32 0.5, %v1467_v23  ;;  %vm1529_vm4 = vmor %vm385_vm1, %vm386_vm2 }
 0x1a7   :  { %v363_v13 = vsub.f32 1.5, %v362_v0  ;;  %v1501_v14 = vadd.f32 %v1411_v61, %v509_v2  ;;  %v609_v40 = vadd.f32 %v593_v42, %v1467_v23 }
 0x1a8   :  { %v955_v3 = vpop.eup %954  ;;  %v383_v38 = vsub.f32 1.5, %v382_v30  ;;  %v439_v43 = vadd.f32 %v1264_v31, %v420_v57 }
 0x1a9   :  { %v364_v4 = vmul.f32 %v951_v12, %v363_v13  ;;  %v370_v34 = vmul.f32 %v955_v3, %v1473_v52  ;;  %v562_v55 = vmul.f32 0.044715, %v1501_v14  ;;  %v625_v5 = vmul.f32 0.7978846, %v609_v40 }
 0x1aa   :  { %v957_v46 = vpop.eup %956  ;;  %vm376_vm15 = vweird.f32 %v955_v3  ;;  %v384_v60 = vmul.f32 %v1476_v39, %v383_v38 }
 0x1ab   :  { %v368_v21 = vsel %vm367_vm13, %v951_v12, %v364_v4  ;;  %v371_v22 = vmul.f32 %v955_v3, %v370_v34  ;;  %v578_v25 = vmul.f32 %v562_v55, %v1501_v14  ;;  %958 = vtanh.f32 %v625_v5  ;;  %vm1522_vm3 = vmor %vm375_vm14, %vm376_vm15 }
 0x1ac   :  { %v402_v28 = vmul.f32 %v368_v21, %v1302_v10  ;;  %v656_v41 = vadd.f32 1.0, %v957_v46  ;;  %v388_v56 = vsel %vm1529_vm4, %v1476_v39, %v384_v60  ;;  %v546_v4 = vmul.f32 0.5, %v1501_v14 }
 0x1ad   :  { %v372_v32 = vmul.f32 0.5, %v371_v22  ;;  %v594_v48 = vmul.f32 %v578_v25, %v1501_v14  ;;  %v404_v0 = vmul.f32 %v388_v56, %v1298_v6 }
 0x1ae   :  { %v511_v36 = vpop.f32.mrf.mxu0  ;;  %v421_v37 = vmul.f32 %v1247_v16, %v402_v28  ;;  %v672_v44 = vmul.f32 %v656_v41, %v544_v51 }
 0x1af   :  { %v373_v35 = vsub.f32 1.5, %v372_v32  ;;  %v512_v29 = vadd.f32 %v1411_v61, %v511_v36  ;;  %v610_v8 = vadd.f32 %v594_v48, %v1501_v14 }
 0x1b0   :  { %v440_v10 = vadd.f32 %v1264_v31, %v421_v37 }
 0x1b1   :  { %v563_v33 = vmul.f32 0.044715, %v512_v29  ;;  %v959_v11 = vpop.eup %958  ;;  %v374_v49 = vmul.f32 %v955_v3, %v373_v35  ;;  %v626_v53 = vmul.f32 0.7978846, %v610_v8  ;;  %v547_v6 = vmul.f32 0.5, %v512_v29 }
 0x1b2   :  { %v449_v12 = vpack.c.bf16 %v440_v10, %v439_v43  ;;  %v657_v52 = vadd.f32 1.0, %v959_v11 }
 0x1b3   :  { %v579_v20 = vmul.f32 %v563_v33, %v512_v29  ;;  %v378_v23 = vsel %vm1522_vm3, %v955_v3, %v374_v49  ;;  %960 = vtanh.f32 %v626_v53  ;;  %v423_v3 = vmul.f32 %v1247_v16, %v404_v0 }
 0x1b4   :  { %v673_v19 = vmul.f32 %v657_v52, %v545_v15  ;;  %v403_v59 = vmul.f32 %v378_v23, %v1317_v27 }
 0x1b5   :  { %v595_v63 = vmul.f32 %v579_v20, %v512_v29  ;;  %863 = vmatmul.msk.bf16.gmra.mxu3 %vm45_vm0, %v449_v12  ;;  %v442_v55 = vadd.f32 %v1264_v31, %v423_v3 }
 0x1b6   :  { %v514_v54 = vpop.f32.mrf.mxu0  ;;  %v688_v45 = vpack.c.bf16 %v673_v19, %v672_v44  ;;  %v422_v9 = vmul.f32 %v1247_v16, %v403_v59 }
 0x1b7   :  { %v515_v50 = vadd.f32 %v1411_v61, %v514_v54  ;;  %v611_v58 = vadd.f32 %v595_v63, %v512_v29 }
 0x1b8   :  { %772 = vmatmul.bf16.vlgmr.msra.gmra.mxu1 %v688_v45  ;;  %v441_v18 = vadd.f32 %v1264_v31, %v422_v9 }
 0x1b9   :  { %v564_v26 = vmul.f32 0.044715, %v515_v50  ;;  %v627_v62 = vmul.f32 0.7978846, %v611_v58  ;;  %v961_v7 = vpop.eup %960  ;;  %v548_v36 = vmul.f32 0.5, %v515_v50 }
 0x1ba   :  { %v658_v39 = vadd.f32 1.0, %v961_v7  ;;  %v450_v28 = vpack.c.bf16 %v442_v55, %v441_v18  ;;  %v1561_v18 = vld [vmem:[%s1712_s6] ss:$0 sm:$0xff] }
 0x1bb   :  { %962 = vtanh.f32 %v627_v62  ;;  %v580_v1 = vmul.f32 %v564_v26, %v515_v50 }
 0x1bc   :  { %v674_v22 = vmul.f32 %v658_v39, %v546_v4 }
 0x1bd   :  { %v596_v2 = vmul.f32 %v580_v1, %v515_v50 }
 0x1be   :  { %v516_v42 = vpop.f32.mrf.mxu0 }
 0x1bf   :  { %v517_v13 = vadd.f32 %v1411_v61, %v516_v42  ;;  %v612_v17 = vadd.f32 %v596_v2, %v515_v50 }
 0x1c1   :  { %v963_v40 = vpop.eup %962  ;;  %v565_v27 = vmul.f32 0.044715, %v517_v13  ;;  %v628_v21 = vmul.f32 0.7978846, %v612_v17  ;;  %v549_v37 = vmul.f32 0.5, %v517_v13 }
 0x1c2   :  { %v659_v34 = vadd.f32 1.0, %v963_v40 }
 0x1c3   :  { %v581_v5 = vmul.f32 %v565_v27, %v517_v13  ;;  %964 = vtanh.f32 %v628_v21 }
 0x1c4   :  { %v675_v25 = vmul.f32 %v659_v34, %v547_v6 }
 0x1c5   :  { %v597_v30 = vmul.f32 %v581_v5, %v517_v13  ;;  %864 = vmatmul.msk.bf16.gmra.mxu3 %vm45_vm0, %v450_v28 }
 0x1c6   :  { %v689_v32 = vpack.c.bf16 %v675_v25, %v674_v22 }
 0x1c7   :  { %v613_v16 = vadd.f32 %v597_v30, %v517_v13  ;;  %v988_v30 = vld [vmem:[%s1706_s0] sm:$0xff] }
 0x1c8   :  { %777 = vmatmul.bf16.gmra.mxu1 %v689_v32 }
 0x1c9   :  { %v629_v57 = vmul.f32 0.7978846, %v613_v16  ;;  %v965_v48 = vpop.eup %964 }
 0x1ca   :  { %v660_v14 = vadd.f32 1.0, %v965_v48 }
 0x1cb   :  { %966 = vtanh.f32 %v629_v57 }
 0x1cc   :  { %v676_v35 = vmul.f32 %v660_v14, %v548_v36 }
 0x1d1   :  { %v967_v46 = vpop.eup %966 }
 0x1d2   :  { %v661_v31 = vadd.f32 1.0, %v967_v46 }
 0x1d4   :  { %v677_v29 = vmul.f32 %v661_v31, %v549_v37 }
 0x1d6   :  { %v690_v8 = vpack.c.bf16 %v677_v29, %v676_v35 }
 0x1d8   :  { %782 = vmatmul.bf16.gmra.mxu1 %v690_v8 }
 0x210   :  { %v519_v38 = vpop.f32.mrf.mxu0 }
 0x211   :  { %v520_v10 = vadd.f32 %v1411_v61, %v519_v38 }
 0x213   :  { %v566_v33 = vmul.f32 0.044715, %v520_v10  ;;  %v550_v62 = vmul.f32 0.5, %v520_v10 }
 0x215   :  { %v582_v43 = vmul.f32 %v566_v33, %v520_v10 }
 0x217   :  { %v598_v41 = vmul.f32 %v582_v43, %v520_v10 }
 0x218   :  { %v521_v11 = vpop.f32.mrf.mxu0 }
 0x219   :  { %v522_v49 = vadd.f32 %v1411_v61, %v521_v11  ;;  %v614_v51 = vadd.f32 %v598_v41, %v520_v10 }
 0x21b   :  { %v567_v15 = vmul.f32 0.044715, %v522_v49  ;;  %v630_v12 = vmul.f32 0.7978846, %v614_v51  ;;  %v551_v0 = vmul.f32 0.5, %v522_v49 }
 0x21d   :  { %v583_v24 = vmul.f32 %v567_v15, %v522_v49  ;;  %968 = vtanh.f32 %v630_v12 }
 0x21f   :  { %v599_v52 = vmul.f32 %v583_v24, %v522_v49 }
 0x221   :  { %v615_v20 = vadd.f32 %v599_v52, %v522_v49  ;;  %v524_v53 = vpop.f32.mrf.mxu0 }
 0x222   :  { %v525_v60 = vadd.f32 %v1411_v61, %v524_v53 }
 0x223   :  { %v631_v47 = vmul.f32 0.7978846, %v615_v20  ;;  %v969_v19 = vpop.eup %968 }
 0x224   :  { %v568_v44 = vmul.f32 0.044715, %v525_v60  ;;  %v662_v45 = vadd.f32 1.0, %v969_v19  ;;  %v552_v29 = vmul.f32 0.5, %v525_v60 }
 0x225   :  { %970 = vtanh.f32 %v631_v47 }
 0x226   :  { %v584_v63 = vmul.f32 %v568_v44, %v525_v60  ;;  %v678_v9 = vmul.f32 %v662_v45, %v550_v62 }
 0x228   :  { %v600_v23 = vmul.f32 %v584_v63, %v525_v60  ;;  %v529_v54 = vpop.f32.mrf.mxu3 }
 0x229   :  { %v526_v50 = vpop.f32.mrf.mxu0  ;;  %v1553_v56 = vadd.f32 %v1411_v61, %v529_v54 }
 0x22a   :  { %v527_v59 = vadd.f32 %v1411_v61, %v526_v50  ;;  %v616_v26 = vadd.f32 %v600_v23, %v525_v60 }
 0x22b   :  { %v971_v58 = vpop.eup %970  ;;  %v570_v42 = vmul.f32 0.044715, %v1553_v56 }
 0x22c   :  { %v663_v1 = vadd.f32 1.0, %v971_v58  ;;  %v569_v7 = vmul.f32 0.044715, %v527_v59  ;;  %v632_v3 = vmul.f32 0.7978846, %v616_v26  ;;  %v553_v8 = vmul.f32 0.5, %v527_v59 }
 0x22d   :  { %v586_v6 = vmul.f32 %v570_v42, %v1553_v56 }
 0x22e   :  { %v679_v2 = vmul.f32 %v663_v1, %v551_v0  ;;  %v585_v13 = vmul.f32 %v569_v7, %v527_v59  ;;  %972 = vtanh.f32 %v632_v3 }
 0x22f   :  { %v602_v25 = vmul.f32 %v586_v6, %v1553_v56 }
 0x230   :  { %v691_v17 = vpack.c.bf16 %v679_v2, %v678_v9  ;;  %v601_v39 = vmul.f32 %v585_v13, %v527_v59  ;;  %v531_v40 = vpop.f32.mrf.mxu3  ;;  %v554_v2 = vmul.f32 0.5, %v1553_v56 }
 0x231   :  { %v532_v27 = vadd.f32 %v1411_v61, %v531_v40  ;;  %v618_v14 = vadd.f32 %v602_v25, %v1553_v56 }
 0x232   :  { %787 = vmatmul.bf16.gmra.mxu1 %v691_v17  ;;  %v617_v4 = vadd.f32 %v601_v39, %v527_v59 }
 0x233   :  { %v571_v34 = vmul.f32 0.044715, %v532_v27  ;;  %v634_v43 = vmul.f32 0.7978846, %v618_v14  ;;  %v555_v0 = vmul.f32 0.5, %v532_v27 }
 0x234   :  { %v633_v55 = vmul.f32 0.7978846, %v617_v4  ;;  %v973_v28 = vpop.eup %972 }
 0x235   :  { %v773_v5 = vpop.f32.mrf.mxu1  ;;  %v587_v22 = vmul.f32 %v571_v34, %v532_v27  ;;  %v664_v36 = vadd.f32 1.0, %v973_v28 }
 0x236   :  { %v774_v21 = vadd.f32 %v1561_v18, %v773_v5  ;;  %974 = vtanh.f32 %v633_v55 }
 0x237   :  { %v603_v16 = vmul.f32 %v587_v22, %v532_v27  ;;  %v680_v41 = vmul.f32 %v664_v36, %v552_v29 }
 0x238   :  { %v813_v32 = vadd.f32 %v988_v30, %v774_v21  ;;  %v534_v57 = vpop.f32.mrf.mxu3 }
 0x239   :  { %v1574_v48 = vadd.f32 %v1411_v61, %v534_v57  ;;  %v619_v46 = vadd.f32 %v603_v16, %v532_v27 }
 0x23a   :  { %829 = vst.msk [vmem:[%s1713_s7] sm:$0xff] %vm45_vm0, %v813_v32 }
 0x23b   :  { %v635_v31 = vmul.f32 0.7978846, %v619_v46  ;;  %v572_v10 = vmul.f32 0.044715, %v1574_v48  ;;  %v556_v29 = vmul.f32 0.5, %v1574_v48 }
 0x23c   :  { %v975_v37 = vpop.eup %974 }
 0x23d   :  { %v775_v35 = vpop.f32.mrf.mxu1  ;;  %v665_v38 = vadd.f32 1.0, %v975_v37  ;;  %976 = vtanh.f32 %v635_v31  ;;  %v588_v52 = vmul.f32 %v572_v10, %v1574_v48 }
 0x23e   :  { %v776_v33 = vadd.f32 %v1561_v18, %v775_v35  ;;  %978 = vtanh.f32 %v634_v43 }
 0x23f   :  { %v681_v11 = vmul.f32 %v665_v38, %v553_v8  ;;  %v604_v19 = vmul.f32 %v588_v52, %v1574_v48 }
 0x240   :  { %v536_v15 = vpop.f32.mrf.mxu3 }
 0x241   :  { %v989_v49 = vld [vmem:[%s1706_s0 + $0x8] sm:$0xff]  ;;  %v692_v24 = vpack.c.bf16 %v681_v11, %v680_v41  ;;  %v537_v12 = vadd.f32 %v1411_v61, %v536_v15  ;;  %v620_v26 = vadd.f32 %v604_v19, %v1574_v48 }
 0x242   :  { %v814_v51 = vadd.f32 %v989_v49, %v776_v33 }
 0x243   :  { %792 = vmatmul.bf16.vlgmr.msra.gmra.mxu2 %v692_v24  ;;  %v573_v20 = vmul.f32 0.044715, %v537_v12  ;;  %v977_v60 = vpop.eup %976  ;;  %v636_v17 = vmul.f32 0.7978846, %v620_v26  ;;  %v557_v36 = vmul.f32 0.5, %v537_v12 }
 0x244   :  { %830 = vst.msk [vmem:[%s1713_s7 + $0x8] sm:$0xff] %vm45_vm0, %v814_v51  ;;  %v979_v63 = vpop.eup %978  ;;  %v667_v58 = vadd.f32 1.0, %v977_v60 }
 0x245   :  { %v778_v53 = vpop.f32.mrf.mxu1  ;;  %v589_v44 = vmul.f32 %v573_v20, %v537_v12  ;;  %v666_v1 = vadd.f32 1.0, %v979_v63 }
 0x246   :  { %v779_v47 = vadd.f32 %v1561_v18, %v778_v53  ;;  %v683_v42 = vmul.f32 %v667_v58, %v555_v0 }
 0x247   :  { %v605_v50 = vmul.f32 %v589_v44, %v537_v12  ;;  %v682_v39 = vmul.f32 %v666_v1, %v554_v2 }
 0x248   :  { %v539_v45 = vpop.f32.mrf.mxu3 }
 0x249   :  { %v540_v59 = vadd.f32 %v1411_v61, %v539_v45  ;;  %v621_v62 = vadd.f32 %v605_v50, %v537_v12  ;;  %v693_v34 = vpack.c.bf16 %v683_v42, %v682_v39 }
 0x24b   :  { %v990_v23 = vld [vmem:[%s1706_s0 + $0x10] sm:$0xff]  ;;  %v637_v7 = vmul.f32 0.7978846, %v621_v62  ;;  %v574_v13 = vmul.f32 0.044715, %v540_v59  ;;  %v558_v12 = vmul.f32 0.5, %v540_v59 }
 0x24c   :  { %v815_v54 = vadd.f32 %v990_v23, %v779_v47 }
 0x24d   :  { %v780_v9 = vpop.f32.mrf.mxu1  ;;  %980 = vtanh.f32 %v637_v7  ;;  %v590_v27 = vmul.f32 %v574_v13, %v540_v59 }
 0x24e   :  { %831 = vst.msk [vmem:[%s1713_s7 + $0x10] sm:$0xff] %vm45_vm0, %v815_v54  ;;  %v781_v3 = vadd.f32 %v1561_v18, %v780_v9  ;;  %982 = vtanh.f32 %v636_v17 }
 0x24f   :  { %v606_v28 = vmul.f32 %v590_v27, %v540_v59 }
 0x250   :  { %v541_v6 = vpop.f32.mrf.mxu3 }
 0x251   :  { %v542_v56 = vadd.f32 %v1411_v61, %v541_v6  ;;  %v622_v61 = vadd.f32 %v606_v28, %v540_v59 }
 0x253   :  { %797 = vmatmul.bf16.gmra.mxu2 %v693_v34  ;;  %v575_v55 = vmul.f32 0.044715, %v542_v56  ;;  %v981_v21 = vpop.eup %980  ;;  %v638_v10 = vmul.f32 0.7978846, %v622_v61  ;;  %v559_v15 = vmul.f32 0.5, %v542_v56 }
 0x254   :  { %v983_v30 = vpop.eup %982  ;;  %v669_v14 = vadd.f32 1.0, %v981_v21 }
 0x255   :  { %v991_v40 = vld [vmem:[%s1706_s0 + $0x18] sm:$0xff]  ;;  %v783_v5 = vpop.f32.mrf.mxu1  ;;  %v591_v25 = vmul.f32 %v575_v55, %v542_v56  ;;  %v668_v37 = vadd.f32 1.0, %v983_v30 }
 0x256   :  { %v816_v4 = vadd.f32 %v991_v40, %v781_v3  ;;  %v784_v22 = vadd.f32 %v1561_v18, %v783_v5  ;;  %v685_v8 = vmul.f32 %v669_v14, %v557_v36 }
 0x257   :  { %v607_v57 = vmul.f32 %v591_v25, %v542_v56  ;;  %v684_v33 = vmul.f32 %v668_v37, %v556_v29 }
 0x258   :  { %832 = vst.msk [vmem:[%s1713_s7 + $0x18] sm:$0xff] %vm45_vm0, %v816_v4 }
 0x259   :  { %v623_v46 = vadd.f32 %v607_v57, %v542_v56  ;;  %v694_v11 = vpack.c.bf16 %v685_v8, %v684_v33 }
 0x25b   :  { %v639_v31 = vmul.f32 0.7978846, %v623_v46 }
 0x25d   :  { %v785_v35 = vpop.f32.mrf.mxu1  ;;  %984 = vtanh.f32 %v639_v31 }
 0x25e   :  { %v786_v38 = vadd.f32 %v1561_v18, %v785_v35  ;;  %986 = vtanh.f32 %v638_v10 }
 0x25f   :  { %v992_v32 = vld [vmem:[%s1706_s0 + $0x20] sm:$0xff] }
 0x260   :  { %v817_v16 = vadd.f32 %v992_v32, %v784_v22 }
 0x262   :  { %833 = vst.msk [vmem:[%s1713_s7 + $0x20] sm:$0xff] %vm45_vm0, %v817_v16 }
 0x263   :  { %802 = vmatmul.bf16.gmra.mxu2 %v694_v11  ;;  %v985_v48 = vpop.eup %984 }
 0x264   :  { %v987_v49 = vpop.eup %986  ;;  %v671_v51 = vadd.f32 1.0, %v985_v48 }
 0x265   :  { %v670_v24 = vadd.f32 1.0, %v987_v49 }
 0x266   :  { %v687_v52 = vmul.f32 %v671_v51, %v559_v15 }
 0x267   :  { %v686_v20 = vmul.f32 %v670_v24, %v558_v12 }
 0x269   :  { %v993_v43 = vld [vmem:[%s1706_s0 + $0x28] sm:$0xff]  ;;  %v695_v53 = vpack.c.bf16 %v687_v52, %v686_v20 }
 0x26a   :  { %v818_v41 = vadd.f32 %v993_v43, %v786_v38 }
 0x26c   :  { %834 = vst.msk [vmem:[%s1713_s7 + $0x28] sm:$0xff] %vm45_vm0, %v818_v41 }
 0x273   :  { %807 = vmatmul.bf16.gmra.mxu2 %v695_v53  ;;  %v994_v44 = vld [vmem:[%s1706_s0 + $0x30] sm:$0xff] }
 0x2af   :  { %v788_v60 = vpop.f32.mrf.mxu1 }
 0x2b0   :  { %v789_v47 = vadd.f32 %v1561_v18, %v788_v60 }
 0x2b2   :  { %v819_v19 = vadd.f32 %v994_v44, %v789_v47 }
 0x2b4   :  { %835 = vst.msk [vmem:[%s1713_s7 + $0x30] sm:$0xff] %vm45_vm0, %v819_v19 }
 0x2b7   :  { %v790_v63 = vpop.f32.mrf.mxu1 }
 0x2b8   :  { %v791_v23 = vadd.f32 %v1561_v18, %v790_v63 }
 0x2bb   :  { %v995_v54 = vld [vmem:[%s1706_s0 + $0x38] sm:$0xff] }
 0x2bc   :  { %v820_v50 = vadd.f32 %v995_v54, %v791_v23 }
 0x2be   :  { %836 = vst.msk [vmem:[%s1713_s7 + $0x38] sm:$0xff] %vm45_vm0, %v820_v50 }
 0x2c5   :  { %v996_v59 = vld [vmem:[%s1706_s0 + $0x40] sm:$0xff] }
 0x2c6   :  { %v793_v45 = vpop.f32.mrf.mxu2 }
 0x2c7   :  { %v794_v58 = vadd.f32 %v1561_v18, %v793_v45 }
 0x2c9   :  { %v821_v26 = vadd.f32 %v996_v59, %v794_v58 }
 0x2cb   :  { %837 = vst.msk [vmem:[%s1713_s7 + $0x40] sm:$0xff] %vm45_vm0, %v821_v26 }
 0x2ce   :  { %v795_v62 = vpop.f32.mrf.mxu2 }
 0x2cf   :  { %v796_v0 = vadd.f32 %v1561_v18, %v795_v62 }
 0x2d2   :  { %v997_v1 = vld [vmem:[%s1706_s0 + $0x48] sm:$0xff] }
 0x2d3   :  { %v822_v7 = vadd.f32 %v997_v1, %v796_v0 }
 0x2d5   :  { %838 = vst.msk [vmem:[%s1713_s7 + $0x48] sm:$0xff] %vm45_vm0, %v822_v7 }
 0x2d6   :  { %v798_v9 = vpop.f32.mrf.mxu2 }
 0x2d7   :  { %v799_v2 = vadd.f32 %v1561_v18, %v798_v9 }
 0x2dc   :  { %v998_v42 = vld [vmem:[%s1706_s0 + $0x50] sm:$0xff] }
 0x2dd   :  { %v823_v13 = vadd.f32 %v998_v42, %v799_v2 }
 0x2de   :  { %v800_v3 = vpop.f32.mrf.mxu2 }
 0x2df   :  { %839 = vst.msk [vmem:[%s1713_s7 + $0x50] sm:$0xff] %vm45_vm0, %v823_v13  ;;  %v801_v17 = vadd.f32 %v1561_v18, %v800_v3 }
 0x2e6   :  { %v999_v39 = vld [vmem:[%s1706_s0 + $0x58] sm:$0xff]  ;;  %v803_v4 = vpop.f32.mrf.mxu2 }
 0x2e7   :  { %v824_v40 = vadd.f32 %v999_v39, %v801_v17  ;;  %v804_v6 = vadd.f32 %v1561_v18, %v803_v4 }
 0x2e9   :  { %840 = vst.msk [vmem:[%s1713_s7 + $0x58] sm:$0xff] %vm45_vm0, %v824_v40 }
 0x2ee   :  { %v805_v27 = vpop.f32.mrf.mxu2 }
 0x2ef   :  { %v806_v55 = vadd.f32 %v1561_v18, %v805_v27 }
 0x2f0   :  { %v1000_v34 = vld [vmem:[%s1706_s0 + $0x60] sm:$0xff] }
 0x2f1   :  { %v825_v56 = vadd.f32 %v1000_v34, %v804_v6 }
 0x2f3   :  { %841 = vst.msk [vmem:[%s1713_s7 + $0x60] sm:$0xff] %vm45_vm0, %v825_v56 }
 0x2f6   :  { %v808_v22 = vpop.f32.mrf.mxu2 }
 0x2f7   :  { %v809_v25 = vadd.f32 %v1561_v18, %v808_v22 }
 0x2fa   :  { %v1001_v5 = vld [vmem:[%s1706_s0 + $0x68] sm:$0xff] }
 0x2fb   :  { %v826_v21 = vadd.f32 %v1001_v5, %v806_v55 }
 0x2fd   :  { %842 = vst.msk [vmem:[%s1713_s7 + $0x68] sm:$0xff] %vm45_vm0, %v826_v21 }
 0x2fe   :  { %v810_v32 = vpop.f32.mrf.mxu2 }
 0x2ff   :  { %v811_v16 = vadd.f32 %v1561_v18, %v810_v32 }
 0x304   :  { %v1002_v28 = vld [vmem:[%s1706_s0 + $0x70] sm:$0xff] }
 0x305   :  { %v827_v30 = vadd.f32 %v1002_v28, %v809_v25 }
 0x307   :  { %843 = vst.msk [vmem:[%s1713_s7 + $0x70] sm:$0xff] %vm45_vm0, %v827_v30 }
 0x30e   :  { %v1003_v57 = vld [vmem:[%s1706_s0 + $0x78] sm:$0xff] }
 0x30f   :  { %v828_v14 = vadd.f32 %v1003_v57, %v811_v16 }
 0x311   :  { %844 = vst.msk [vmem:[%s1713_s7 + $0x78] sm:$0xff] %vm45_vm0, %v828_v14 }

</bundles_post_ra>
